<compile_context>
chip_gen: v5e
topology: v5e:2x2
jax: 0.10.0
libtpu: 0.0.40
codegen_flags: <defaults>
</compile_context>

<pallas_src>
import jax
import jax.numpy as jnp
from jax import lax
from jax.experimental import pallas as pl
from jax.experimental.pallas import tpu as pltpu

LANE = 128


def _vmem_limit_bytes():
    # v5e/v6e: 128 MiB physical (scoped default 16/32 MiB); v7x: 64 MiB physical.
    # Use ~3/4 of capacity, capped at 96 MiB -> 48 MiB on v7x, 96 MiB on v5e/v6e.
    try:
        cap = pltpu.get_tpu_info().vmem_capacity_bytes
    except Exception:
        cap = 64 * 1024 * 1024
    return int(min(96 * 1024 * 1024, cap * 3 // 4))


_VMEM_LIMIT = _vmem_limit_bytes()


def conv_stats_kernel(x_ref, w_ref, conv_ref, sum_ref, css_ref, xp_scratch):
    # x_ref:      (H, W, Cp)       un-padded image for this grid step, f32
    # w_ref:      (9, Cp, Cp)      packed conv weights, bf16 (VMEM-resident, single buffer)
    # conv_ref:   (H*W, Cp)        bf16 conv output rows for this image (lane-dense)
    # sum_ref:    (1, 1, Cp)       per-tile channel sum (f32)
    # css_ref:    (1, 1, Cp)       per-tile centered sum of squares (f32)
    # xp_scratch: (H+2, Wpad, Cp)  VMEM halo buffer, Wpad = roundup(W+2, 8)
    H, W, Cp = x_ref.shape
    Hs, Wpad, _ = xp_scratch.shape
    rows = H * W

    # Build the zero halo in VMEM (no HBM round trip of a padded tensor).  Only the
    # border actually read by the 3x3 taps needs zeroing; the interior is fully
    # overwritten every grid step, so this is megacore-safe with "parallel".
    zrow = jnp.zeros((1, Wpad, Cp), jnp.float32)
    zcol = jnp.zeros((H, 1, Cp), jnp.float32)
    xp_scratch[pl.ds(0, 1), :, :] = zrow                       # top halo row
    xp_scratch[pl.ds(H + 1, 1), :, :] = zrow                   # bottom halo row
    xp_scratch[pl.ds(1, H), pl.ds(0, 1), :] = zcol             # left halo column
    xp_scratch[pl.ds(1, H), pl.ds(W + 1, 1), :] = zcol         # right halo column
    xp_scratch[pl.ds(1, H), pl.ds(1, W), :] = x_ref[...]       # interior copy

    # 3x3 conv as 9 windowed (rows, Cp) x (Cp, Cp) MXU dots accumulated in f32.
    # No (rows, 9*Cp) im2col temp is materialized (saves VMEM + vst/vld slots).
    # (On v6e a single K=9*Cp matmul can fill the 256-deep MXU better; measure.)
    acc = None
    for kh in range(3):
        for kw in range(3):
            tap = xp_scratch[pl.ds(kh, H), pl.ds(kw, W), :]    # (H, W, Cp) windowed load
            tap = tap.reshape(rows, Cp).astype(jnp.bfloat16)
            d = jnp.dot(tap, w_ref[kh * 3 + kw],
                        preferred_element_type=jnp.float32)    # (rows, Cp) f32
            acc = d if acc is None else acc + d

    # Per-tile BN statistics from the *f32* accumulator (centered form; the
    # numerically stable cross-tile combine happens in the wrapper).
    tsum = jnp.sum(acc, axis=0, keepdims=True)                 # (1, Cp)
    tmean = tsum * jnp.float32(1.0 / rows)
    diff = acc - tmean
    tcss = jnp.sum(diff * diff, axis=0, keepdims=True)         # (1, Cp)
    sum_ref[...] = tsum.reshape(1, 1, Cp)
    css_ref[...] = tcss.reshape(1, 1, Cp)

    # Store conv intermediate as bf16 -> halves pass-1 writeback + pass-2 read.
    conv_ref[...] = acc.astype(conv_ref.dtype)


def bn_relu_residual_kernel(conv_ref, x_ref, scale_ref, shift_ref, o_ref):
    # conv_ref: (TR, Cp) bf16 conv rows;  x_ref: (TR, Cp) f32 identity rows
    # scale_ref/shift_ref: (1, Cp) precomputed BN affine;  o_ref: (TR, Cp) f32
    y = conv_ref[...].astype(jnp.float32) * scale_ref[...] + shift_ref[...]
    y = jnp.maximum(y, jnp.float32(0.0))          # ReLU
    y = y + x_ref[...]                            # residual add (identity)
    o_ref[...] = jnp.maximum(y, jnp.float32(0.0)).astype(o_ref.dtype)  # final ReLU


@jax.jit
def residual_block(x_nchw, weight, gamma, beta):
    """x_nchw: (N, Cin, H, W) f32.  weight: (Cout, Cin, 3, 3) (PyTorch OIHW)."""
    N, Cin, H, W = x_nchw.shape
    Cout = weight.shape[0]
    assert Cin == Cout, "downsample=None path requires in_channels == out_channels"
    # W % 8 keeps the in-kernel (H, W, Cp) -> (H*W, Cp) collapse layout-preserving.
    assert W % 8 == 0 and (H * W) % 8 == 0

    Cp = ((max(Cin, Cout) + LANE - 1) // LANE) * LANE   # lane-dense channel padding
    rows = N * H * W
    TR = H * W                                          # pass-1 row tile (one image)
    Wpad = ((W + 2 + 7) // 8) * 8                       # 8-aligned halo sublane dim

    # ---- XLA glue: layout + channel zero pad (no spatial pad round trip) ----------
    x_nhwc = jnp.transpose(x_nchw, (0, 2, 3, 1)).astype(jnp.float32)        # (N,H,W,Cin)
    x_cp = jnp.pad(x_nhwc, ((0, 0), (0, 0), (0, 0), (0, Cp - Cin)))         # (N,H,W,Cp)
    x_flat = x_cp.reshape(rows, Cp)                                         # identity rows

    # Packed conv weight: tap index (kh*3 + kw) leading, (Cp_in, Cp_out) trailing.
    w_hwio = jnp.transpose(weight, (2, 3, 1, 0)).astype(jnp.float32)        # (3,3,Cin,Cout)
    w_p = jnp.pad(w_hwio, ((0, 0), (0, 0), (0, Cp - Cin), (0, Cp - Cout)))
    w_packed = w_p.reshape(9, Cp, Cp).astype(jnp.bfloat16)                  # (9, Cp, Cp)

    cparams = pltpu.CompilerParams(
        dimension_semantics=("parallel",),
        vmem_limit_bytes=_VMEM_LIMIT,
    )

    # ---- pass 1: 9-tap MXU conv (halo built in VMEM) + per-tile BN stats ----------
    conv_flat, tile_sum, tile_css = pl.pallas_call(
        conv_stats_kernel,
        grid=(N,),
        in_specs=(
            pl.BlockSpec((None, H, W, Cp), lambda n: (n, 0, 0, 0)),
            # Weight never changes across the grid -> single buffer (saves VMEM).
            pl.BlockSpec((9, Cp, Cp), lambda n: (0, 0, 0),
                         pipeline_mode=pl.Buffered(1)),
        ),
        out_specs=(
            pl.BlockSpec((TR, Cp), lambda n: (n, 0)),
            pl.BlockSpec((1, 1, Cp), lambda n: (n, 0, 0)),
            pl.BlockSpec((1, 1, Cp), lambda n: (n, 0, 0)),
        ),
        out_shape=(
            jax.ShapeDtypeStruct((rows, Cp), jnp.bfloat16),   # bf16 conv intermediate
            jax.ShapeDtypeStruct((N, 1, Cp), jnp.float32),
            jax.ShapeDtypeStruct((N, 1, Cp), jnp.float32),
        ),
        scratch_shapes=[pltpu.VMEM((H + 2, Wpad, Cp), jnp.float32)],
        compiler_params=cparams,
        cost_estimate=pl.CostEstimate(
            flops=2 * rows * Cp * Cp * 9,
            transcendentals=0,
            bytes_accessed=(rows * Cp * 4          # activation read (f32)
                            + 9 * Cp * Cp * 2      # weight (bf16)
                            + rows * Cp * 2        # conv writeback (bf16)
                            + 2 * N * Cp * 4),     # stats
        ),
    )(x_cp, w_packed)

    # ---- cross-tile BN stat combine (tiny; numerically stable parallel variance) ---
    cnt_tile = jnp.float32(TR)
    total = jnp.float32(rows)
    sums = tile_sum.reshape(N, Cp)
    css = tile_css.reshape(N, Cp)
    mean = jnp.sum(sums, axis=0) / total                                    # (Cp,)
    tile_means = sums / cnt_tile
    m2 = jnp.sum(css, axis=0) + cnt_tile * jnp.sum((tile_means - mean) ** 2, axis=0)
    var = m2 / total                                                        # biased (training BN)
    inv = lax.rsqrt(var + jnp.float32(1e-5))
    # NOTE: padded channels have var=0 -> inv~rsqrt(1e-5); this is only safe
    # because gamma/beta are ZERO-padded so scale/shift are exactly 0 there.
    gamma_p = jnp.pad(gamma.astype(jnp.float32), (0, Cp - Cout))
    beta_p = jnp.pad(beta.astype(jnp.float32), (0, Cp - Cout))
    scale = (gamma_p * inv).reshape(1, Cp)
    shift = (beta_p - mean * gamma_p * inv).reshape(1, Cp)

    # ---- pass 2: fused BN affine + ReLU + residual + ReLU (lane-dense row tiles) ---
    # Grow the row tile (merge images) under a VMEM budget to amortize per-step
    # grid overhead; pass 2 is purely HBM-bandwidth bound.
    TR2 = TR
    while rows % (2 * TR2) == 0 and 2 * TR2 * Cp * 20 <= _VMEM_LIMIT // 2:
        TR2 *= 2

    out_flat = pl.pallas_call(
        bn_relu_residual_kernel,
        grid=(rows // TR2,),
        in_specs=(
            pl.BlockSpec((TR2, Cp), lambda i: (i, 0)),
            pl.BlockSpec((TR2, Cp), lambda i: (i, 0)),
            pl.BlockSpec((1, Cp), lambda i: (0, 0)),
            pl.BlockSpec((1, Cp), lambda i: (0, 0)),
        ),
        out_specs=pl.BlockSpec((TR2, Cp), lambda i: (i, 0)),
        out_shape=jax.ShapeDtypeStruct((rows, Cp), jnp.float32),
        compiler_params=cparams,
        cost_estimate=pl.CostEstimate(
            flops=5 * rows * Cp,
            transcendentals=0,
            bytes_accessed=rows * Cp * (2 + 4 + 4) + 2 * Cp * 4,
        ),
    )(conv_flat, x_flat, scale, shift)

    out_nhwc = out_flat.reshape(N, H, W, Cp)[..., :Cout]
    return jnp.transpose(out_nhwc, (0, 3, 1, 2))                            # back to NCHW


def residual_block_reference(x_nchw, weight, gamma, beta):
    """Pure-JAX f32 reference (NCHW conv + training-mode BN + relu + skip + relu)."""
    conv = lax.conv_general_dilated(
        x_nchw, weight, window_strides=(1, 1), padding=((1, 1), (1, 1)),
        dimension_numbers=("NCHW", "OIHW", "NCHW"))
    mean = jnp.mean(conv, axis=(0, 2, 3), keepdims=True)
    var = jnp.mean((conv - mean) ** 2, axis=(0, 2, 3), keepdims=True)
    bn = (conv - mean) * lax.rsqrt(var + 1e-5)
    bn = bn * gamma.reshape(1, -1, 1, 1) + beta.reshape(1, -1, 1, 1)
    out = jnp.maximum(bn, 0.0) + x_nchw
    return jnp.maximum(out, 0.0)


if __name__ == "__main__":
    N, C, H, W = 2, 4, 16, 16

    key = jax.random.PRNGKey(0)
    kx, kw = jax.random.split(key)
    x = jax.random.normal(kx, (N, C, H, W), dtype=jnp.float32)
    weight = 0.1 * jax.random.normal(kw, (C, C, 3, 3), dtype=jnp.float32)  # OIHW, bias=False
    gamma = jnp.ones((C,), jnp.float32)   # BatchNorm2d default init
    beta = jnp.zeros((C,), jnp.float32)

    out = jax.block_until_ready(residual_block(x, weight, gamma, beta))

    ref = residual_block_reference(x, weight, gamma, beta)
    assert out.shape == ref.shape == (N, C, H, W)
    # bf16 MXU operands + bf16 conv intermediate (f32 accumulation / f32 BN stats)
    # -> loosened tolerance vs the f32 reference.
    max_diff = float(jnp.max(jnp.abs(out - ref)))
    assert jnp.allclose(out, ref, rtol=5e-2, atol=5e-2), (
        f"mismatch vs reference: max abs diff {max_diff}")

    print("KERNEL_OK")
</pallas_src>

<mosaic_0001>
module attributes {stable_mosaic.version = 11 : i64} {
  func.func @conv_stats_kernel(%arg0: i32, %arg1: memref<1x16x16x128xf32, #tpu.memory_space<vmem>>, %arg2: memref<9x128x128xbf16, #tpu.memory_space<vmem>>, %arg3: memref<256x128xbf16, #tpu.memory_space<vmem>>, %arg4: memref<1x1x128xf32, #tpu.memory_space<vmem>>, %arg5: memref<1x1x128xf32, #tpu.memory_space<vmem>>, %arg6: memref<18x24x128xf32, #tpu.memory_space<vmem>>) attributes {dimension_semantics = [#tpu.dimension_semantics<parallel>], iteration_bounds = array<i64: 2>, scalar_prefetch = 0 : i64, scratch_operands = 1 : i64, tpu.core_type = #tpu.core_type<tc>, window_params = [{transform_indices = @transform_0, window_bounds = array<i64: 1, 16, 16, 128>}, {pipeline_mode = #tpu.pipeline_mode<synchronous>, transform_indices = @transform_1, window_bounds = array<i64: 9, 128, 128>}, {transform_indices = @transform_2, window_bounds = array<i64: 256, 128>}, {transform_indices = @transform_3, window_bounds = array<i64: 1, 1, 128>}, {transform_indices = @transform_4, window_bounds = array<i64: 1, 1, 128>}]} {
    %cst = arith.constant 0.000000e+00 : f32
    %0 = vector.broadcast %cst : f32 to vector<1x24x128xf32>
    %cst_0 = arith.constant 0.000000e+00 : f32
    %1 = vector.broadcast %cst_0 : f32 to vector<16x1x128xf32>
    %c0 = arith.constant 0 : index
    %c0_1 = arith.constant 0 : index
    %c0_2 = arith.constant 0 : index
    %2 = vector.load %arg6[%c0, %c0_1, %c0_2] : memref<18x24x128xf32, #tpu.memory_space<vmem>>, vector<1x24x128xf32>
    tpu.vector_store %arg6[%c0, %c0_1, %c0_2], %0 {strides = array<i32>} : memref<18x24x128xf32, #tpu.memory_space<vmem>>, vector<1x24x128xf32>,
    %c17 = arith.constant 17 : index
    %c0_3 = arith.constant 0 : index
    %c0_4 = arith.constant 0 : index
    %3 = vector.load %arg6[%c17, %c0_3, %c0_4] : memref<18x24x128xf32, #tpu.memory_space<vmem>>, vector<1x24x128xf32>
    tpu.vector_store %arg6[%c17, %c0_3, %c0_4], %0 {strides = array<i32>} : memref<18x24x128xf32, #tpu.memory_space<vmem>>, vector<1x24x128xf32>,
    %c1 = arith.constant 1 : index
    %c0_5 = arith.constant 0 : index
    %c0_6 = arith.constant 0 : index
    %4 = vector.load %arg6[%c1, %c0_5, %c0_6] : memref<18x24x128xf32, #tpu.memory_space<vmem>>, vector<16x1x128xf32>
    tpu.vector_store %arg6[%c1, %c0_5, %c0_6], %1 {strides = array<i32>} : memref<18x24x128xf32, #tpu.memory_space<vmem>>, vector<16x1x128xf32>,
    %c1_7 = arith.constant 1 : index
    %c17_8 = arith.constant 17 : index
    %c0_9 = arith.constant 0 : index
    %5 = vector.load %arg6[%c1_7, %c17_8, %c0_9] : memref<18x24x128xf32, #tpu.memory_space<vmem>>, vector<16x1x128xf32>
    tpu.vector_store %arg6[%c1_7, %c17_8, %c0_9], %1 {strides = array<i32>} : memref<18x24x128xf32, #tpu.memory_space<vmem>>, vector<16x1x128xf32>,
    %c0_10 = arith.constant 0 : index
    %c0_11 = arith.constant 0 : index
    %c0_12 = arith.constant 0 : index
    %c0_13 = arith.constant 0 : index
    %6 = vector.load %arg1[%c0_10, %c0_11, %c0_12, %c0_13] : memref<1x16x16x128xf32, #tpu.memory_space<vmem>>, vector<1x16x16x128xf32>
    %7 = vector.shape_cast %6 : vector<1x16x16x128xf32> to vector<16x16x128xf32>
    %c1_14 = arith.constant 1 : index
    %c1_15 = arith.constant 1 : index
    %c0_16 = arith.constant 0 : index
    %8 = vector.load %arg6[%c1_14, %c1_15, %c0_16] : memref<18x24x128xf32, #tpu.memory_space<vmem>>, vector<16x16x128xf32>
    tpu.vector_store %arg6[%c1_14, %c1_15, %c0_16], %7 {strides = array<i32>} : memref<18x24x128xf32, #tpu.memory_space<vmem>>, vector<16x16x128xf32>,
    %c0_17 = arith.constant 0 : index
    %c0_18 = arith.constant 0 : index
    %c0_19 = arith.constant 0 : index
    %9 = vector.load %arg6[%c0_17, %c0_18, %c0_19] : memref<18x24x128xf32, #tpu.memory_space<vmem>>, vector<16x16x128xf32>
    %10 = vector.shape_cast %9 : vector<16x16x128xf32> to vector<256x128xf32>
    %11 = arith.truncf %10 : vector<256x128xf32> to vector<256x128xbf16>
    %c0_20 = arith.constant 0 : index
    %c0_21 = arith.constant 0 : index
    %c0_22 = arith.constant 0 : index
    %12 = vector.load %arg2[%c0_20, %c0_21, %c0_22] : memref<9x128x128xbf16, #tpu.memory_space<vmem>>, vector<1x128x128xbf16>
    %13 = vector.shape_cast %12 : vector<1x128x128xbf16> to vector<128x128xbf16>
    %cst_23 = arith.constant dense<0.000000e+00> : vector<256x128xf32>
    %14 = tpu.matmul %11, %13, %cst_23 {dimension_numbers = #tpu.dot_dimension_numbers<[1], [0], [0], [1], [0, 0, 1, 1], [], []>} : vector<256x128xbf16>, vector<128x128xbf16>, vector<256x128xf32> -> vector<256x128xf32>
    %c0_24 = arith.constant 0 : index
    %c1_25 = arith.constant 1 : index
    %c0_26 = arith.constant 0 : index
    %15 = vector.load %arg6[%c0_24, %c1_25, %c0_26] : memref<18x24x128xf32, #tpu.memory_space<vmem>>, vector<16x16x128xf32>
    %16 = vector.shape_cast %15 : vector<16x16x128xf32> to vector<256x128xf32>
    %17 = arith.truncf %16 : vector<256x128xf32> to vector<256x128xbf16>
    %c1_27 = arith.constant 1 : index
    %c0_28 = arith.constant 0 : index
    %c0_29 = arith.constant 0 : index
    %18 = vector.load %arg2[%c1_27, %c0_28, %c0_29] : memref<9x128x128xbf16, #tpu.memory_space<vmem>>, vector<1x128x128xbf16>
    %19 = vector.shape_cast %18 : vector<1x128x128xbf16> to vector<128x128xbf16>
    %cst_30 = arith.constant dense<0.000000e+00> : vector<256x128xf32>
    %20 = tpu.matmul %17, %19, %cst_30 {dimension_numbers = #tpu.dot_dimension_numbers<[1], [0], [0], [1], [0, 0, 1, 1], [], []>} : vector<256x128xbf16>, vector<128x128xbf16>, vector<256x128xf32> -> vector<256x128xf32>
    %21 = arith.addf %14, %20 : vector<256x128xf32>
    %c0_31 = arith.constant 0 : index
    %c2 = arith.constant 2 : index
    %c0_32 = arith.constant 0 : index
    %22 = vector.load %arg6[%c0_31, %c2, %c0_32] : memref<18x24x128xf32, #tpu.memory_space<vmem>>, vector<16x16x128xf32>
    %23 = vector.shape_cast %22 : vector<16x16x128xf32> to vector<256x128xf32>
    %24 = arith.truncf %23 : vector<256x128xf32> to vector<256x128xbf16>
    %c2_33 = arith.constant 2 : index
    %c0_34 = arith.constant 0 : index
    %c0_35 = arith.constant 0 : index
    %25 = vector.load %arg2[%c2_33, %c0_34, %c0_35] : memref<9x128x128xbf16, #tpu.memory_space<vmem>>, vector<1x128x128xbf16>
    %26 = vector.shape_cast %25 : vector<1x128x128xbf16> to vector<128x128xbf16>
    %cst_36 = arith.constant dense<0.000000e+00> : vector<256x128xf32>
    %27 = tpu.matmul %24, %26, %cst_36 {dimension_numbers = #tpu.dot_dimension_numbers<[1], [0], [0], [1], [0, 0, 1, 1], [], []>} : vector<256x128xbf16>, vector<128x128xbf16>, vector<256x128xf32> -> vector<256x128xf32>
    %28 = arith.addf %21, %27 : vector<256x128xf32>
    %c1_37 = arith.constant 1 : index
    %c0_38 = arith.constant 0 : index
    %c0_39 = arith.constant 0 : index
    %29 = vector.load %arg6[%c1_37, %c0_38, %c0_39] : memref<18x24x128xf32, #tpu.memory_space<vmem>>, vector<16x16x128xf32>
    %30 = vector.shape_cast %29 : vector<16x16x128xf32> to vector<256x128xf32>
    %31 = arith.truncf %30 : vector<256x128xf32> to vector<256x128xbf16>
    %c3 = arith.constant 3 : index
    %c0_40 = arith.constant 0 : index
    %c0_41 = arith.constant 0 : index
    %32 = vector.load %arg2[%c3, %c0_40, %c0_41] : memref<9x128x128xbf16, #tpu.memory_space<vmem>>, vector<1x128x128xbf16>
    %33 = vector.shape_cast %32 : vector<1x128x128xbf16> to vector<128x128xbf16>
    %cst_42 = arith.constant dense<0.000000e+00> : vector<256x128xf32>
    %34 = tpu.matmul %31, %33, %cst_42 {dimension_numbers = #tpu.dot_dimension_numbers<[1], [0], [0], [1], [0, 0, 1, 1], [], []>} : vector<256x128xbf16>, vector<128x128xbf16>, vector<256x128xf32> -> vector<256x128xf32>
    %35 = arith.addf %28, %34 : vector<256x128xf32>
    %c1_43 = arith.constant 1 : index
    %c1_44 = arith.constant 1 : index
    %c0_45 = arith.constant 0 : index
    %36 = vector.load %arg6[%c1_43, %c1_44, %c0_45] : memref<18x24x128xf32, #tpu.memory_space<vmem>>, vector<16x16x128xf32>
    %37 = vector.shape_cast %36 : vector<16x16x128xf32> to vector<256x128xf32>
    %38 = arith.truncf %37 : vector<256x128xf32> to vector<256x128xbf16>
    %c4 = arith.constant 4 : index
    %c0_46 = arith.constant 0 : index
    %c0_47 = arith.constant 0 : index
    %39 = vector.load %arg2[%c4, %c0_46, %c0_47] : memref<9x128x128xbf16, #tpu.memory_space<vmem>>, vector<1x128x128xbf16>
    %40 = vector.shape_cast %39 : vector<1x128x128xbf16> to vector<128x128xbf16>
    %cst_48 = arith.constant dense<0.000000e+00> : vector<256x128xf32>
    %41 = tpu.matmul %38, %40, %cst_48 {dimension_numbers = #tpu.dot_dimension_numbers<[1], [0], [0], [1], [0, 0, 1, 1], [], []>} : vector<256x128xbf16>, vector<128x128xbf16>, vector<256x128xf32> -> vector<256x128xf32>
    %42 = arith.addf %35, %41 : vector<256x128xf32>
    %c1_49 = arith.constant 1 : index
    %c2_50 = arith.constant 2 : index
    %c0_51 = arith.constant 0 : index
    %43 = vector.load %arg6[%c1_49, %c2_50, %c0_51] : memref<18x24x128xf32, #tpu.memory_space<vmem>>, vector<16x16x128xf32>
    %44 = vector.shape_cast %43 : vector<16x16x128xf32> to vector<256x128xf32>
    %45 = arith.truncf %44 : vector<256x128xf32> to vector<256x128xbf16>
    %c5 = arith.constant 5 : index
    %c0_52 = arith.constant 0 : index
    %c0_53 = arith.constant 0 : index
    %46 = vector.load %arg2[%c5, %c0_52, %c0_53] : memref<9x128x128xbf16, #tpu.memory_space<vmem>>, vector<1x128x128xbf16>
    %47 = vector.shape_cast %46 : vector<1x128x128xbf16> to vector<128x128xbf16>
    %cst_54 = arith.constant dense<0.000000e+00> : vector<256x128xf32>
    %48 = tpu.matmul %45, %47, %cst_54 {dimension_numbers = #tpu.dot_dimension_numbers<[1], [0], [0], [1], [0, 0, 1, 1], [], []>} : vector<256x128xbf16>, vector<128x128xbf16>, vector<256x128xf32> -> vector<256x128xf32>
    %49 = arith.addf %42, %48 : vector<256x128xf32>
    %c2_55 = arith.constant 2 : index
    %c0_56 = arith.constant 0 : index
    %c0_57 = arith.constant 0 : index
    %50 = vector.load %arg6[%c2_55, %c0_56, %c0_57] : memref<18x24x128xf32, #tpu.memory_space<vmem>>, vector<16x16x128xf32>
    %51 = vector.shape_cast %50 : vector<16x16x128xf32> to vector<256x128xf32>
    %52 = arith.truncf %51 : vector<256x128xf32> to vector<256x128xbf16>
    %c6 = arith.constant 6 : index
    %c0_58 = arith.constant 0 : index
    %c0_59 = arith.constant 0 : index
    %53 = vector.load %arg2[%c6, %c0_58, %c0_59] : memref<9x128x128xbf16, #tpu.memory_space<vmem>>, vector<1x128x128xbf16>
    %54 = vector.shape_cast %53 : vector<1x128x128xbf16> to vector<128x128xbf16>
    %cst_60 = arith.constant dense<0.000000e+00> : vector<256x128xf32>
    %55 = tpu.matmul %52, %54, %cst_60 {dimension_numbers = #tpu.dot_dimension_numbers<[1], [0], [0], [1], [0, 0, 1, 1], [], []>} : vector<256x128xbf16>, vector<128x128xbf16>, vector<256x128xf32> -> vector<256x128xf32>
    %56 = arith.addf %49, %55 : vector<256x128xf32>
    %c2_61 = arith.constant 2 : index
    %c1_62 = arith.constant 1 : index
    %c0_63 = arith.constant 0 : index
    %57 = vector.load %arg6[%c2_61, %c1_62, %c0_63] : memref<18x24x128xf32, #tpu.memory_space<vmem>>, vector<16x16x128xf32>
    %58 = vector.shape_cast %57 : vector<16x16x128xf32> to vector<256x128xf32>
    %59 = arith.truncf %58 : vector<256x128xf32> to vector<256x128xbf16>
    %c7 = arith.constant 7 : index
    %c0_64 = arith.constant 0 : index
    %c0_65 = arith.constant 0 : index
    %60 = vector.load %arg2[%c7, %c0_64, %c0_65] : memref<9x128x128xbf16, #tpu.memory_space<vmem>>, vector<1x128x128xbf16>
    %61 = vector.shape_cast %60 : vector<1x128x128xbf16> to vector<128x128xbf16>
    %cst_66 = arith.constant dense<0.000000e+00> : vector<256x128xf32>
    %62 = tpu.matmul %59, %61, %cst_66 {dimension_numbers = #tpu.dot_dimension_numbers<[1], [0], [0], [1], [0, 0, 1, 1], [], []>} : vector<256x128xbf16>, vector<128x128xbf16>, vector<256x128xf32> -> vector<256x128xf32>
    %63 = arith.addf %56, %62 : vector<256x128xf32>
    %c2_67 = arith.constant 2 : index
    %c2_68 = arith.constant 2 : index
    %c0_69 = arith.constant 0 : index
    %64 = vector.load %arg6[%c2_67, %c2_68, %c0_69] : memref<18x24x128xf32, #tpu.memory_space<vmem>>, vector<16x16x128xf32>
    %65 = vector.shape_cast %64 : vector<16x16x128xf32> to vector<256x128xf32>
    %66 = arith.truncf %65 : vector<256x128xf32> to vector<256x128xbf16>
    %c8 = arith.constant 8 : index
    %c0_70 = arith.constant 0 : index
    %c0_71 = arith.constant 0 : index
    %67 = vector.load %arg2[%c8, %c0_70, %c0_71] : memref<9x128x128xbf16, #tpu.memory_space<vmem>>, vector<1x128x128xbf16>
    %68 = vector.shape_cast %67 : vector<1x128x128xbf16> to vector<128x128xbf16>
    %cst_72 = arith.constant dense<0.000000e+00> : vector<256x128xf32>
    %69 = tpu.matmul %66, %68, %cst_72 {dimension_numbers = #tpu.dot_dimension_numbers<[1], [0], [0], [1], [0, 0, 1, 1], [], []>} : vector<256x128xbf16>, vector<128x128xbf16>, vector<256x128xf32> -> vector<256x128xf32>
    %70 = arith.addf %63, %69 : vector<256x128xf32>
    %cst_73 = arith.constant dense<0.000000e+00> : vector<128xf32>
    %71 = vector.multi_reduction <add>, %70, %cst_73 [0] : vector<256x128xf32> to vector<128xf32>
    %72 = vector.shape_cast %71 : vector<128xf32> to vector<1x128xf32>
    %cst_74 = arith.constant 3.906250e-03 : f32
    %73 = vector.broadcast %cst_74 : f32 to vector<1x128xf32>
    %74 = arith.mulf %72, %73 : vector<1x128xf32>
    %75 = vector.broadcast %74 : vector<1x128xf32> to vector<256x128xf32>
    %76 = arith.subf %70, %75 : vector<256x128xf32>
    %77 = arith.mulf %76, %76 : vector<256x128xf32>
    %cst_75 = arith.constant dense<0.000000e+00> : vector<128xf32>
    %78 = vector.multi_reduction <add>, %77, %cst_75 [0] : vector<256x128xf32> to vector<128xf32>
    %79 = vector.shape_cast %78 : vector<128xf32> to vector<1x128xf32>
    %80 = vector.shape_cast %72 : vector<1x128xf32> to vector<1x1x128xf32>
    %c0_76 = arith.constant 0 : index
    %c0_77 = arith.constant 0 : index
    %c0_78 = arith.constant 0 : index
    %81 = vector.load %arg4[%c0_76, %c0_77, %c0_78] : memref<1x1x128xf32, #tpu.memory_space<vmem>>, vector<1x1x128xf32>
    tpu.vector_store %arg4[%c0_76, %c0_77, %c0_78], %80 {strides = array<i32>} : memref<1x1x128xf32, #tpu.memory_space<vmem>>, vector<1x1x128xf32>,
    %82 = vector.shape_cast %79 : vector<1x128xf32> to vector<1x1x128xf32>
    %c0_79 = arith.constant 0 : index
    %c0_80 = arith.constant 0 : index
    %c0_81 = arith.constant 0 : index
    %83 = vector.load %arg5[%c0_79, %c0_80, %c0_81] : memref<1x1x128xf32, #tpu.memory_space<vmem>>, vector<1x1x128xf32>
    tpu.vector_store %arg5[%c0_79, %c0_80, %c0_81], %82 {strides = array<i32>} : memref<1x1x128xf32, #tpu.memory_space<vmem>>, vector<1x1x128xf32>,
    %84 = arith.truncf %70 : vector<256x128xf32> to vector<256x128xbf16>
    %c0_82 = arith.constant 0 : index
    %c0_83 = arith.constant 0 : index
    %85 = vector.load %arg3[%c0_82, %c0_83] : memref<256x128xbf16, #tpu.memory_space<vmem>>, vector<256x128xbf16>
    tpu.vector_store %arg3[%c0_82, %c0_83], %84 {strides = array<i32>} : memref<256x128xbf16, #tpu.memory_space<vmem>>, vector<256x128xbf16>,
    return
  }
  func.func @transform_0(%arg0: i32) -> (i32, i32, i32, i32) {
    %c0_i32 = arith.constant 0 : i32
    %c0_i32_0 = arith.constant 0 : i32
    %c0_i32_1 = arith.constant 0 : i32
    %c0_i32_2 = arith.constant 0 : i32
    return %arg0, %c0_i32, %c0_i32_0, %c0_i32_1 : i32, i32, i32, i32
  }
  func.func @transform_1(%arg0: i32) -> (i32, i32, i32) {
    %c0_i32 = arith.constant 0 : i32
    %c0_i32_0 = arith.constant 0 : i32
    %c0_i32_1 = arith.constant 0 : i32
    %c0_i32_2 = arith.constant 0 : i32
    return %c0_i32, %c0_i32_0, %c0_i32_1 : i32, i32, i32
  }
  func.func @transform_2(%arg0: i32) -> (i32, i32) {
    %c0_i32 = arith.constant 0 : i32
    %c0_i32_0 = arith.constant 0 : i32
    return %arg0, %c0_i32 : i32, i32
  }
  func.func @transform_3(%arg0: i32) -> (i32, i32, i32) {
    %c0_i32 = arith.constant 0 : i32
    %c0_i32_0 = arith.constant 0 : i32
    %c0_i32_1 = arith.constant 0 : i32
    return %arg0, %c0_i32, %c0_i32_0 : i32, i32, i32
  }
  func.func @transform_4(%arg0: i32) -> (i32, i32, i32) {
    %c0_i32 = arith.constant 0 : i32
    %c0_i32_0 = arith.constant 0 : i32
    %c0_i32_1 = arith.constant 0 : i32
    return %arg0, %c0_i32, %c0_i32_0 : i32, i32, i32
  }
}

module attributes {stable_mosaic.version = 11 : i64} {
  func.func @bn_relu_residual_kernel(%arg0: i32, %arg1: memref<512x128xbf16, #tpu.memory_space<vmem>>, %arg2: memref<512x128xf32, #tpu.memory_space<vmem>>, %arg3: memref<1x128xf32, #tpu.memory_space<vmem>>, %arg4: memref<1x128xf32, #tpu.memory_space<vmem>>, %arg5: memref<512x128xf32, #tpu.memory_space<vmem>>) attributes {dimension_semantics = [#tpu.dimension_semantics<parallel>], iteration_bounds = array<i64: 1>, scalar_prefetch = 0 : i64, scratch_operands = 0 : i64, tpu.core_type = #tpu.core_type<tc>, window_params = [{transform_indices = @transform_0, window_bounds = array<i64: 512, 128>}, {transform_indices = @transform_1, window_bounds = array<i64: 512, 128>}, {pipeline_mode = #tpu.pipeline_mode<synchronous>, transform_indices = @transform_2, window_bounds = array<i64: 1, 128>}, {pipeline_mode = #tpu.pipeline_mode<synchronous>, transform_indices = @transform_3, window_bounds = array<i64: 1, 128>}, {transform_indices = @transform_4, window_bounds = array<i64: 512, 128>}]} {
    %c0 = arith.constant 0 : index
    %c0_0 = arith.constant 0 : index
    %0 = vector.load %arg1[%c0, %c0_0] : memref<512x128xbf16, #tpu.memory_space<vmem>>, vector<512x128xbf16>
    %1 = arith.extf %0 : vector<512x128xbf16> to vector<512x128xf32>
    %c0_1 = arith.constant 0 : index
    %c0_2 = arith.constant 0 : index
    %2 = vector.load %arg3[%c0_1, %c0_2] : memref<1x128xf32, #tpu.memory_space<vmem>>, vector<1x128xf32>
    %3 = vector.broadcast %2 : vector<1x128xf32> to vector<512x128xf32>
    %4 = arith.mulf %1, %3 : vector<512x128xf32>
    %c0_3 = arith.constant 0 : index
    %c0_4 = arith.constant 0 : index
    %5 = vector.load %arg4[%c0_3, %c0_4] : memref<1x128xf32, #tpu.memory_space<vmem>>, vector<1x128xf32>
    %6 = vector.broadcast %5 : vector<1x128xf32> to vector<512x128xf32>
    %7 = arith.addf %4, %6 : vector<512x128xf32>
    %cst = arith.constant 0.000000e+00 : f32
    %8 = vector.broadcast %cst : f32 to vector<512x128xf32>
    %9 = arith.maximumf %7, %8 : vector<512x128xf32>
    %c0_5 = arith.constant 0 : index
    %c0_6 = arith.constant 0 : index
    %10 = vector.load %arg2[%c0_5, %c0_6] : memref<512x128xf32, #tpu.memory_space<vmem>>, vector<512x128xf32>
    %11 = arith.addf %9, %10 : vector<512x128xf32>
    %cst_7 = arith.constant 0.000000e+00 : f32
    %12 = vector.broadcast %cst_7 : f32 to vector<512x128xf32>
    %13 = arith.maximumf %11, %12 : vector<512x128xf32>
    %c0_8 = arith.constant 0 : index
    %c0_9 = arith.constant 0 : index
    %14 = vector.load %arg5[%c0_8, %c0_9] : memref<512x128xf32, #tpu.memory_space<vmem>>, vector<512x128xf32>
    tpu.vector_store %arg5[%c0_8, %c0_9], %13 {strides = array<i32>} : memref<512x128xf32, #tpu.memory_space<vmem>>, vector<512x128xf32>,
    return
  }
  func.func @transform_0(%arg0: i32) -> (i32, i32) {
    %c0_i32 = arith.constant 0 : i32
    %c0_i32_0 = arith.constant 0 : i32
    return %arg0, %c0_i32 : i32, i32
  }
  func.func @transform_1(%arg0: i32) -> (i32, i32) {
    %c0_i32 = arith.constant 0 : i32
    %c0_i32_0 = arith.constant 0 : i32
    return %arg0, %c0_i32 : i32, i32
  }
  func.func @transform_2(%arg0: i32) -> (i32, i32) {
    %c0_i32 = arith.constant 0 : i32
    %c0_i32_0 = arith.constant 0 : i32
    %c0_i32_1 = arith.constant 0 : i32
    return %c0_i32, %c0_i32_0 : i32, i32
  }
  func.func @transform_3(%arg0: i32) -> (i32, i32) {
    %c0_i32 = arith.constant 0 : i32
    %c0_i32_0 = arith.constant 0 : i32
    %c0_i32_1 = arith.constant 0 : i32
    return %c0_i32, %c0_i32_0 : i32, i32
  }
  func.func @transform_4(%arg0: i32) -> (i32, i32) {
    %c0_i32 = arith.constant 0 : i32
    %c0_i32_0 = arith.constant 0 : i32
    return %arg0, %c0_i32 : i32, i32
  }
}

</mosaic_0001>

<bundles_post_ra>
// kernel: residual_block.3
= control target key start
LH: loop header
LB: loop body
LE: loop exit
PB: predicated region body
PF: predicated region fallthrough
CT: control target
= control target key end

     0   :  { %s1411_s0 = inlined_call_operand.vmem [shape: bf16[512,128], index: 0, kind: input, shape index: {}]   ;;  %s1412_s2 = inlined_call_operand.vmem [shape: f32[1,128], index: 2, kind: input, shape index: {}]   ;;  %s1413_s3 = inlined_call_operand.vmem [shape: f32[1,128], index: 3, kind: input, shape index: {}]   ;;  %s1414_s1 = inlined_call_operand.vmem [shape: f32[512,128], index: 1, kind: input, shape index: {}]   ;;  %s1415_s4 = inlined_call_operand.vmem [shape: f32[512,128], index: 4, kind: output, shape index: {}]  }
   0x1   :  { %v606_v0 = vld [vmem:[%s1411_s0] sm:$0xff]   ;;  %v733_v5 = vld [vmem:[%s1411_s0 + $0x8] sm:$0xff]   ;;  %v734_v10 = vld [vmem:[%s1411_s0 + $0x10] sm:$0xff]  }
   0x2   :  { %v798_v1 = vld [vmem:[%s1412_s2] ss:$0 sm:$0xff]  ;;  %v607_v2 = vunpack.c.l.bf16 %v606_v0  ;;  %v608_v4 = vunpack.c.h.bf16 %v606_v0  ;;  %v611_v8 = vunpack.c.l.bf16 %v733_v5  ;;  %v612_v9 = vunpack.c.h.bf16 %v733_v5  ;;  %v735_v13 = vld [vmem:[%s1411_s0 + $0x18] sm:$0xff]   ;;  %v346_v19 = vld [vmem:[%s1414_s1 + $0x8] sm:$0xff] }
   0x3   :  { %v803_v3 = vld [vmem:[%s1413_s3] ss:$0 sm:$0xff]  ;;  %v615_v11 = vunpack.c.l.bf16 %v734_v10  ;;  %v616_v12 = vunpack.c.h.bf16 %v734_v10  ;;  %v619_v22 = vunpack.c.l.bf16 %v735_v13  ;;  %v620_v23 = vunpack.c.h.bf16 %v735_v13  ;;  %v347_v28 = vld [vmem:[%s1414_s1 + $0x10] sm:$0xff]  ;;  %v348_v29 = vld [vmem:[%s1414_s1 + $0x18] sm:$0xff] }
   0x4   :  { %v149_v6 = vmul.f32 %v798_v1, %v607_v2  ;;  %v150_v7 = vmul.f32 %v798_v1, %v608_v4  ;;  %v151_v16 = vmul.f32 %v798_v1, %v611_v8  ;;  %v152_v17 = vmul.f32 %v798_v1, %v612_v9  ;;  %v345_v18 = vld [vmem:[%s1414_s1] sm:$0xff]  ;;  %v350_v39 = vld [vmem:[%s1414_s1 + $0x28] sm:$0xff]  ;;  %v351_v49 = vld [vmem:[%s1414_s1 + $0x30] sm:$0xff] }
   0x5   :  { %v153_v20 = vmul.f32 %v798_v1, %v615_v11  ;;  %v154_v21 = vmul.f32 %v798_v1, %v616_v12  ;;  %v155_v32 = vmul.f32 %v798_v1, %v619_v22  ;;  %v156_v33 = vmul.f32 %v798_v1, %v620_v23  ;;  %v349_v38 = vld [vmem:[%s1414_s1 + $0x20] sm:$0xff]  ;;  %v352_v50 = vld [vmem:[%s1414_s1 + $0x38] sm:$0xff]  ;;  %v737_v55 = vld [vmem:[%s1411_s0 + $0x28] sm:$0xff]  }
   0x6   :  { %v217_v14 = vadd.f32 %v803_v3, %v149_v6  ;;  %v218_v15 = vadd.f32 %v803_v3, %v150_v7  ;;  %v219_v26 = vadd.f32 %v803_v3, %v151_v16  ;;  %v220_v27 = vadd.f32 %v803_v3, %v152_v17  ;;  %v736_v44 = vld [vmem:[%s1411_s0 + $0x20] sm:$0xff]   ;;  %v738_v60 = vld [vmem:[%s1411_s0 + $0x30] sm:$0xff]   ;;  %v739_v7 = vld [vmem:[%s1411_s0 + $0x38] sm:$0xff]  }
   0x7   :  { %v221_v30 = vadd.f32 %v803_v3, %v153_v20  ;;  %v222_v31 = vadd.f32 %v803_v3, %v154_v21  ;;  %v223_v42 = vadd.f32 %v803_v3, %v155_v32  ;;  %v224_v43 = vadd.f32 %v803_v3, %v156_v33  ;;  %v353_v16 = vld [vmem:[%s1414_s1 + $0x40] sm:$0xff]  ;;  %v354_v17 = vld [vmem:[%s1414_s1 + $0x48] sm:$0xff] }
   0x8   :  { %v281_v24 = vmax.f32 %v217_v14, 0.0  ;;  %v282_v25 = vmax.f32 %v218_v15, 0.0  ;;  %v283_v36 = vmax.f32 %v219_v26, 0.0  ;;  %v284_v37 = vmax.f32 %v220_v27, 0.0  ;;  %v355_v26 = vld [vmem:[%s1414_s1 + $0x50] sm:$0xff]  ;;  %v356_v27 = vld [vmem:[%s1414_s1 + $0x58] sm:$0xff] }
   0x9   :  { %v285_v40 = vmax.f32 %v221_v30, 0.0  ;;  %v286_v41 = vmax.f32 %v222_v31, 0.0  ;;  %v287_v53 = vmax.f32 %v223_v42, 0.0  ;;  %v288_v54 = vmax.f32 %v224_v43, 0.0  ;;  %v740_v42 = vld [vmem:[%s1411_s0 + $0x40] sm:$0xff]  }
   0xa   :  { %v409_v34 = vadd.f32 %v345_v18, %v281_v24  ;;  %v410_v35 = vadd.f32 %v346_v19, %v282_v25  ;;  %v411_v47 = vadd.f32 %v347_v28, %v283_v36  ;;  %v412_v48 = vadd.f32 %v348_v29, %v284_v37  ;;  %v357_v36 = vld [vmem:[%s1414_s1 + $0x60] sm:$0xff]  ;;  %v358_v37 = vld [vmem:[%s1414_s1 + $0x68] sm:$0xff] }
   0xb   :  { %v413_v51 = vadd.f32 %v349_v38, %v285_v40  ;;  %v414_v52 = vadd.f32 %v350_v39, %v286_v41  ;;  %v623_v58 = vunpack.c.l.bf16 %v736_v44  ;;  %v624_v59 = vunpack.c.h.bf16 %v736_v44 }
   0xc   :  { %v473_v45 = vmax.f32 %v409_v34, 0.0  ;;  %v474_v46 = vmax.f32 %v410_v35, 0.0  ;;  %v475_v56 = vmax.f32 %v411_v47, 0.0  ;;  %v476_v57 = vmax.f32 %v412_v48, 0.0  ;;  %v359_v47 = vld [vmem:[%s1414_s1 + $0x70] sm:$0xff]  ;;  %v360_v48 = vld [vmem:[%s1414_s1 + $0x78] sm:$0xff] }
   0xd   :  { %v477_v61 = vmax.f32 %v413_v51, 0.0  ;;  %v478_v62 = vmax.f32 %v414_v52, 0.0  ;;  %v415_v63 = vadd.f32 %v351_v49, %v287_v53  ;;  %v416_v0 = vadd.f32 %v352_v50, %v288_v54  ;;  %v741_v53 = vld [vmem:[%s1411_s0 + $0x48] sm:$0xff]  }
   0xe   :  { %537 = vst [vmem:[%s1415_s4] sm:$0xff] %v473_v45  ;;  %v157_v2 = vmul.f32 %v798_v1, %v623_v58  ;;  %v158_v4 = vmul.f32 %v798_v1, %v624_v59  ;;  %v627_v5 = vunpack.c.l.bf16 %v737_v55  ;;  %v628_v6 = vunpack.c.h.bf16 %v737_v55  ;;  %v742_v58 = vld [vmem:[%s1411_s0 + $0x50] sm:$0xff]  }
   0xf   :  { %538 = vst [vmem:[%s1415_s4 + $0x8] sm:$0xff] %v474_v46  ;;  %v479_v8 = vmax.f32 %v415_v63, 0.0  ;;  %v480_v9 = vmax.f32 %v416_v0, 0.0  ;;  %v631_v10 = vunpack.c.l.bf16 %v738_v60  ;;  %v632_v11 = vunpack.c.h.bf16 %v738_v60 }
  0x10   :  { %539 = vst [vmem:[%s1415_s4 + $0x10] sm:$0xff] %v475_v56  ;;  %v225_v12 = vadd.f32 %v803_v3, %v157_v2  ;;  %v226_v13 = vadd.f32 %v803_v3, %v158_v4  ;;  %v159_v14 = vmul.f32 %v798_v1, %v627_v5  ;;  %v160_v15 = vmul.f32 %v798_v1, %v628_v6  ;;  %v743_v5 = vld [vmem:[%s1411_s0 + $0x58] sm:$0xff]  }
  0x11   :  { %540 = vst [vmem:[%s1415_s4 + $0x18] sm:$0xff] %v476_v57  ;;  %v161_v18 = vmul.f32 %v798_v1, %v631_v10  ;;  %v162_v19 = vmul.f32 %v798_v1, %v632_v11  ;;  %v635_v20 = vunpack.c.l.bf16 %v739_v7  ;;  %v636_v21 = vunpack.c.h.bf16 %v739_v7 }
  0x12   :  { %541 = vst [vmem:[%s1415_s4 + $0x20] sm:$0xff] %v477_v61  ;;  %v289_v22 = vmax.f32 %v225_v12, 0.0  ;;  %v290_v23 = vmax.f32 %v226_v13, 0.0  ;;  %v227_v24 = vadd.f32 %v803_v3, %v159_v14  ;;  %v228_v25 = vadd.f32 %v803_v3, %v160_v15  ;;  %v361_v14 = vld [vmem:[%s1414_s1 + $0x80] sm:$0xff]  ;;  %v362_v15 = vld [vmem:[%s1414_s1 + $0x88] sm:$0xff] }
  0x13   :  { %542 = vst [vmem:[%s1415_s4 + $0x28] sm:$0xff] %v478_v62  ;;  %v229_v28 = vadd.f32 %v803_v3, %v161_v18  ;;  %v230_v29 = vadd.f32 %v803_v3, %v162_v19  ;;  %v163_v30 = vmul.f32 %v798_v1, %v635_v20  ;;  %v164_v31 = vmul.f32 %v798_v1, %v636_v21 }
  0x14   :  { %543 = vst [vmem:[%s1415_s4 + $0x30] sm:$0xff] %v479_v8  ;;  %v417_v32 = vadd.f32 %v353_v16, %v289_v22  ;;  %v418_v33 = vadd.f32 %v354_v17, %v290_v23  ;;  %v291_v34 = vmax.f32 %v227_v24, 0.0  ;;  %v292_v35 = vmax.f32 %v228_v25, 0.0  ;;  %v363_v24 = vld [vmem:[%s1414_s1 + $0x90] sm:$0xff]  ;;  %v364_v25 = vld [vmem:[%s1414_s1 + $0x98] sm:$0xff] }
  0x15   :  { %544 = vst [vmem:[%s1415_s4 + $0x38] sm:$0xff] %v480_v9  ;;  %v293_v38 = vmax.f32 %v229_v28, 0.0  ;;  %v294_v39 = vmax.f32 %v230_v29, 0.0  ;;  %v231_v40 = vadd.f32 %v803_v3, %v163_v30  ;;  %v232_v41 = vadd.f32 %v803_v3, %v164_v31 }
  0x16   :  { %v481_v43 = vmax.f32 %v417_v32, 0.0  ;;  %v482_v44 = vmax.f32 %v418_v33, 0.0  ;;  %v419_v45 = vadd.f32 %v355_v26, %v291_v34  ;;  %v420_v46 = vadd.f32 %v356_v27, %v292_v35  ;;  %v365_v34 = vld [vmem:[%s1414_s1 + $0xa0] sm:$0xff]  ;;  %v366_v35 = vld [vmem:[%s1414_s1 + $0xa8] sm:$0xff] }
  0x17   :  { %v421_v49 = vadd.f32 %v357_v36, %v293_v38  ;;  %v422_v50 = vadd.f32 %v358_v37, %v294_v39  ;;  %v295_v51 = vmax.f32 %v231_v40, 0.0  ;;  %v296_v52 = vmax.f32 %v232_v41, 0.0  ;;  %v744_v40 = vld [vmem:[%s1411_s0 + $0x60] sm:$0xff]  }
  0x18   :  { %545 = vst [vmem:[%s1415_s4 + $0x40] sm:$0xff] %v481_v43  ;;  %v483_v54 = vmax.f32 %v419_v45, 0.0  ;;  %v484_v55 = vmax.f32 %v420_v46, 0.0  ;;  %v639_v56 = vunpack.c.l.bf16 %v740_v42  ;;  %v640_v57 = vunpack.c.h.bf16 %v740_v42  ;;  %v367_v45 = vld [vmem:[%s1414_s1 + $0xb0] sm:$0xff]  ;;  %v368_v46 = vld [vmem:[%s1414_s1 + $0xb8] sm:$0xff] }
  0x19   :  { %546 = vst [vmem:[%s1415_s4 + $0x48] sm:$0xff] %v482_v44  ;;  %v485_v59 = vmax.f32 %v421_v49, 0.0  ;;  %v486_v60 = vmax.f32 %v422_v50, 0.0  ;;  %v423_v61 = vadd.f32 %v359_v47, %v295_v51  ;;  %v424_v62 = vadd.f32 %v360_v48, %v296_v52  ;;  %v745_v51 = vld [vmem:[%s1411_s0 + $0x68] sm:$0xff]  }
  0x1a   :  { %547 = vst [vmem:[%s1415_s4 + $0x50] sm:$0xff] %v483_v54  ;;  %v165_v63 = vmul.f32 %v798_v1, %v639_v56  ;;  %v166_v0 = vmul.f32 %v798_v1, %v640_v57  ;;  %v643_v2 = vunpack.c.l.bf16 %v741_v53  ;;  %v644_v4 = vunpack.c.h.bf16 %v741_v53  ;;  %v746_v56 = vld [vmem:[%s1411_s0 + $0x70] sm:$0xff]  }
  0x1b   :  { %548 = vst [vmem:[%s1415_s4 + $0x58] sm:$0xff] %v484_v55  ;;  %v487_v6 = vmax.f32 %v423_v61, 0.0  ;;  %v488_v7 = vmax.f32 %v424_v62, 0.0  ;;  %v647_v8 = vunpack.c.l.bf16 %v742_v58  ;;  %v648_v9 = vunpack.c.h.bf16 %v742_v58 }
  0x1c   :  { %549 = vst [vmem:[%s1415_s4 + $0x60] sm:$0xff] %v485_v59  ;;  %v233_v10 = vadd.f32 %v803_v3, %v165_v63  ;;  %v234_v11 = vadd.f32 %v803_v3, %v166_v0  ;;  %v167_v12 = vmul.f32 %v798_v1, %v643_v2  ;;  %v168_v13 = vmul.f32 %v798_v1, %v644_v4  ;;  %v747_v2 = vld [vmem:[%s1411_s0 + $0x78] sm:$0xff]  }
  0x1d   :  { %550 = vst [vmem:[%s1415_s4 + $0x68] sm:$0xff] %v486_v60  ;;  %v169_v16 = vmul.f32 %v798_v1, %v647_v8  ;;  %v170_v17 = vmul.f32 %v798_v1, %v648_v9  ;;  %v651_v18 = vunpack.c.l.bf16 %v743_v5  ;;  %v652_v19 = vunpack.c.h.bf16 %v743_v5 }
  0x1e   :  { %551 = vst [vmem:[%s1415_s4 + $0x70] sm:$0xff] %v487_v6  ;;  %v297_v20 = vmax.f32 %v233_v10, 0.0  ;;  %v298_v21 = vmax.f32 %v234_v11, 0.0  ;;  %v235_v22 = vadd.f32 %v803_v3, %v167_v12  ;;  %v236_v23 = vadd.f32 %v803_v3, %v168_v13  ;;  %v369_v12 = vld [vmem:[%s1414_s1 + $0xc0] sm:$0xff]  ;;  %v370_v13 = vld [vmem:[%s1414_s1 + $0xc8] sm:$0xff] }
  0x1f   :  { %552 = vst [vmem:[%s1415_s4 + $0x78] sm:$0xff] %v488_v7  ;;  %v237_v26 = vadd.f32 %v803_v3, %v169_v16  ;;  %v238_v27 = vadd.f32 %v803_v3, %v170_v17  ;;  %v171_v28 = vmul.f32 %v798_v1, %v651_v18  ;;  %v172_v29 = vmul.f32 %v798_v1, %v652_v19 }
  0x20   :  { %v425_v30 = vadd.f32 %v361_v14, %v297_v20  ;;  %v426_v31 = vadd.f32 %v362_v15, %v298_v21  ;;  %v299_v32 = vmax.f32 %v235_v22, 0.0  ;;  %v300_v33 = vmax.f32 %v236_v23, 0.0  ;;  %v371_v22 = vld [vmem:[%s1414_s1 + $0xd0] sm:$0xff]  ;;  %v372_v23 = vld [vmem:[%s1414_s1 + $0xd8] sm:$0xff] }
  0x21   :  { %v301_v36 = vmax.f32 %v237_v26, 0.0  ;;  %v302_v37 = vmax.f32 %v238_v27, 0.0  ;;  %v239_v38 = vadd.f32 %v803_v3, %v171_v28  ;;  %v240_v39 = vadd.f32 %v803_v3, %v172_v29 }
  0x22   :  { %v489_v41 = vmax.f32 %v425_v30, 0.0  ;;  %v490_v42 = vmax.f32 %v426_v31, 0.0  ;;  %v427_v43 = vadd.f32 %v363_v24, %v299_v32  ;;  %v428_v44 = vadd.f32 %v364_v25, %v300_v33  ;;  %v373_v32 = vld [vmem:[%s1414_s1 + $0xe0] sm:$0xff]  ;;  %v374_v33 = vld [vmem:[%s1414_s1 + $0xe8] sm:$0xff] }
  0x23   :  { %v429_v47 = vadd.f32 %v365_v34, %v301_v36  ;;  %v430_v48 = vadd.f32 %v366_v35, %v302_v37  ;;  %v303_v49 = vmax.f32 %v239_v38, 0.0  ;;  %v304_v50 = vmax.f32 %v240_v39, 0.0  ;;  %v748_v38 = vld [vmem:[%s1411_s0 + $0x80] sm:$0xff]  }
  0x24   :  { %553 = vst [vmem:[%s1415_s4 + $0x80] sm:$0xff] %v489_v41  ;;  %v491_v52 = vmax.f32 %v427_v43, 0.0  ;;  %v492_v53 = vmax.f32 %v428_v44, 0.0  ;;  %v655_v54 = vunpack.c.l.bf16 %v744_v40  ;;  %v656_v55 = vunpack.c.h.bf16 %v744_v40  ;;  %v375_v43 = vld [vmem:[%s1414_s1 + $0xf0] sm:$0xff]  ;;  %v376_v44 = vld [vmem:[%s1414_s1 + $0xf8] sm:$0xff] }
  0x25   :  { %554 = vst [vmem:[%s1415_s4 + $0x88] sm:$0xff] %v490_v42  ;;  %v493_v57 = vmax.f32 %v429_v47, 0.0  ;;  %v494_v58 = vmax.f32 %v430_v48, 0.0  ;;  %v431_v59 = vadd.f32 %v367_v45, %v303_v49  ;;  %v432_v60 = vadd.f32 %v368_v46, %v304_v50  ;;  %v749_v49 = vld [vmem:[%s1411_s0 + $0x88] sm:$0xff]  }
  0x26   :  { %555 = vst [vmem:[%s1415_s4 + $0x90] sm:$0xff] %v491_v52  ;;  %v173_v61 = vmul.f32 %v798_v1, %v655_v54  ;;  %v174_v62 = vmul.f32 %v798_v1, %v656_v55  ;;  %v659_v63 = vunpack.c.l.bf16 %v745_v51  ;;  %v660_v0 = vunpack.c.h.bf16 %v745_v51  ;;  %v750_v54 = vld [vmem:[%s1411_s0 + $0x90] sm:$0xff]  }
  0x27   :  { %556 = vst [vmem:[%s1415_s4 + $0x98] sm:$0xff] %v492_v53  ;;  %v495_v4 = vmax.f32 %v431_v59, 0.0  ;;  %v496_v5 = vmax.f32 %v432_v60, 0.0  ;;  %v663_v6 = vunpack.c.l.bf16 %v746_v56  ;;  %v664_v7 = vunpack.c.h.bf16 %v746_v56 }
  0x28   :  { %557 = vst [vmem:[%s1415_s4 + $0xa0] sm:$0xff] %v493_v57  ;;  %v241_v8 = vadd.f32 %v803_v3, %v173_v61  ;;  %v242_v9 = vadd.f32 %v803_v3, %v174_v62  ;;  %v175_v10 = vmul.f32 %v798_v1, %v659_v63  ;;  %v176_v11 = vmul.f32 %v798_v1, %v660_v0  ;;  %v751_v63 = vld [vmem:[%s1411_s0 + $0x98] sm:$0xff]  }
  0x29   :  { %558 = vst [vmem:[%s1415_s4 + $0xa8] sm:$0xff] %v494_v58  ;;  %v177_v14 = vmul.f32 %v798_v1, %v663_v6  ;;  %v178_v15 = vmul.f32 %v798_v1, %v664_v7  ;;  %v667_v16 = vunpack.c.l.bf16 %v747_v2  ;;  %v668_v17 = vunpack.c.h.bf16 %v747_v2 }
  0x2a   :  { %559 = vst [vmem:[%s1415_s4 + $0xb0] sm:$0xff] %v495_v4  ;;  %v305_v18 = vmax.f32 %v241_v8, 0.0  ;;  %v306_v19 = vmax.f32 %v242_v9, 0.0  ;;  %v243_v20 = vadd.f32 %v803_v3, %v175_v10  ;;  %v244_v21 = vadd.f32 %v803_v3, %v176_v11  ;;  %v377_v10 = vld [vmem:[%s1414_s1 + $0x100] sm:$0xff]  ;;  %v378_v11 = vld [vmem:[%s1414_s1 + $0x108] sm:$0xff] }
  0x2b   :  { %560 = vst [vmem:[%s1415_s4 + $0xb8] sm:$0xff] %v496_v5  ;;  %v245_v24 = vadd.f32 %v803_v3, %v177_v14  ;;  %v246_v25 = vadd.f32 %v803_v3, %v178_v15  ;;  %v179_v26 = vmul.f32 %v798_v1, %v667_v16  ;;  %v180_v27 = vmul.f32 %v798_v1, %v668_v17 }
  0x2c   :  { %v433_v28 = vadd.f32 %v369_v12, %v305_v18  ;;  %v434_v29 = vadd.f32 %v370_v13, %v306_v19  ;;  %v307_v30 = vmax.f32 %v243_v20, 0.0  ;;  %v308_v31 = vmax.f32 %v244_v21, 0.0  ;;  %v379_v20 = vld [vmem:[%s1414_s1 + $0x110] sm:$0xff]  ;;  %v380_v21 = vld [vmem:[%s1414_s1 + $0x118] sm:$0xff] }
  0x2d   :  { %v309_v34 = vmax.f32 %v245_v24, 0.0  ;;  %v310_v35 = vmax.f32 %v246_v25, 0.0  ;;  %v247_v36 = vadd.f32 %v803_v3, %v179_v26  ;;  %v248_v37 = vadd.f32 %v803_v3, %v180_v27 }
  0x2e   :  { %v497_v39 = vmax.f32 %v433_v28, 0.0  ;;  %v498_v40 = vmax.f32 %v434_v29, 0.0  ;;  %v435_v41 = vadd.f32 %v371_v22, %v307_v30  ;;  %v436_v42 = vadd.f32 %v372_v23, %v308_v31  ;;  %v381_v30 = vld [vmem:[%s1414_s1 + $0x120] sm:$0xff]  ;;  %v382_v31 = vld [vmem:[%s1414_s1 + $0x128] sm:$0xff] }
  0x2f   :  { %v437_v45 = vadd.f32 %v373_v32, %v309_v34  ;;  %v438_v46 = vadd.f32 %v374_v33, %v310_v35  ;;  %v311_v47 = vmax.f32 %v247_v36, 0.0  ;;  %v312_v48 = vmax.f32 %v248_v37, 0.0  ;;  %v752_v36 = vld [vmem:[%s1411_s0 + $0xa0] sm:$0xff]  }
  0x30   :  { %561 = vst [vmem:[%s1415_s4 + $0xc0] sm:$0xff] %v497_v39  ;;  %v499_v50 = vmax.f32 %v435_v41, 0.0  ;;  %v500_v51 = vmax.f32 %v436_v42, 0.0  ;;  %v671_v52 = vunpack.c.l.bf16 %v748_v38  ;;  %v672_v53 = vunpack.c.h.bf16 %v748_v38  ;;  %v383_v41 = vld [vmem:[%s1414_s1 + $0x130] sm:$0xff]  ;;  %v384_v42 = vld [vmem:[%s1414_s1 + $0x138] sm:$0xff] }
  0x31   :  { %562 = vst [vmem:[%s1415_s4 + $0xc8] sm:$0xff] %v498_v40  ;;  %v501_v55 = vmax.f32 %v437_v45, 0.0  ;;  %v502_v56 = vmax.f32 %v438_v46, 0.0  ;;  %v439_v57 = vadd.f32 %v375_v43, %v311_v47  ;;  %v440_v58 = vadd.f32 %v376_v44, %v312_v48  ;;  %v753_v47 = vld [vmem:[%s1411_s0 + $0xa8] sm:$0xff]  }
  0x32   :  { %563 = vst [vmem:[%s1415_s4 + $0xd0] sm:$0xff] %v499_v50  ;;  %v181_v59 = vmul.f32 %v798_v1, %v671_v52  ;;  %v182_v60 = vmul.f32 %v798_v1, %v672_v53  ;;  %v675_v61 = vunpack.c.l.bf16 %v749_v49  ;;  %v676_v62 = vunpack.c.h.bf16 %v749_v49  ;;  %v754_v52 = vld [vmem:[%s1411_s0 + $0xb0] sm:$0xff]  }
  0x33   :  { %564 = vst [vmem:[%s1415_s4 + $0xd8] sm:$0xff] %v500_v51  ;;  %v503_v0 = vmax.f32 %v439_v57, 0.0  ;;  %v504_v2 = vmax.f32 %v440_v58, 0.0  ;;  %v679_v4 = vunpack.c.l.bf16 %v750_v54  ;;  %v680_v5 = vunpack.c.h.bf16 %v750_v54 }
  0x34   :  { %565 = vst [vmem:[%s1415_s4 + $0xe0] sm:$0xff] %v501_v55  ;;  %v249_v6 = vadd.f32 %v803_v3, %v181_v59  ;;  %v250_v7 = vadd.f32 %v803_v3, %v182_v60  ;;  %v183_v8 = vmul.f32 %v798_v1, %v675_v61  ;;  %v184_v9 = vmul.f32 %v798_v1, %v676_v62  ;;  %v755_v61 = vld [vmem:[%s1411_s0 + $0xb8] sm:$0xff]  }
  0x35   :  { %566 = vst [vmem:[%s1415_s4 + $0xe8] sm:$0xff] %v502_v56  ;;  %v185_v12 = vmul.f32 %v798_v1, %v679_v4  ;;  %v186_v13 = vmul.f32 %v798_v1, %v680_v5  ;;  %v683_v14 = vunpack.c.l.bf16 %v751_v63  ;;  %v684_v15 = vunpack.c.h.bf16 %v751_v63 }
  0x36   :  { %567 = vst [vmem:[%s1415_s4 + $0xf0] sm:$0xff] %v503_v0  ;;  %v313_v16 = vmax.f32 %v249_v6, 0.0  ;;  %v314_v17 = vmax.f32 %v250_v7, 0.0  ;;  %v251_v18 = vadd.f32 %v803_v3, %v183_v8  ;;  %v252_v19 = vadd.f32 %v803_v3, %v184_v9  ;;  %v385_v8 = vld [vmem:[%s1414_s1 + $0x140] sm:$0xff]  ;;  %v386_v9 = vld [vmem:[%s1414_s1 + $0x148] sm:$0xff] }
  0x37   :  { %568 = vst [vmem:[%s1415_s4 + $0xf8] sm:$0xff] %v504_v2  ;;  %v253_v22 = vadd.f32 %v803_v3, %v185_v12  ;;  %v254_v23 = vadd.f32 %v803_v3, %v186_v13  ;;  %v187_v24 = vmul.f32 %v798_v1, %v683_v14  ;;  %v188_v25 = vmul.f32 %v798_v1, %v684_v15 }
  0x38   :  { %v441_v26 = vadd.f32 %v377_v10, %v313_v16  ;;  %v442_v27 = vadd.f32 %v378_v11, %v314_v17  ;;  %v315_v28 = vmax.f32 %v251_v18, 0.0  ;;  %v316_v29 = vmax.f32 %v252_v19, 0.0  ;;  %v387_v18 = vld [vmem:[%s1414_s1 + $0x150] sm:$0xff]  ;;  %v388_v19 = vld [vmem:[%s1414_s1 + $0x158] sm:$0xff] }
  0x39   :  { %v317_v32 = vmax.f32 %v253_v22, 0.0  ;;  %v318_v33 = vmax.f32 %v254_v23, 0.0  ;;  %v255_v34 = vadd.f32 %v803_v3, %v187_v24  ;;  %v256_v35 = vadd.f32 %v803_v3, %v188_v25 }
  0x3a   :  { %v505_v37 = vmax.f32 %v441_v26, 0.0  ;;  %v506_v38 = vmax.f32 %v442_v27, 0.0  ;;  %v443_v39 = vadd.f32 %v379_v20, %v315_v28  ;;  %v444_v40 = vadd.f32 %v380_v21, %v316_v29  ;;  %v389_v28 = vld [vmem:[%s1414_s1 + $0x160] sm:$0xff]  ;;  %v390_v29 = vld [vmem:[%s1414_s1 + $0x168] sm:$0xff] }
  0x3b   :  { %v445_v43 = vadd.f32 %v381_v30, %v317_v32  ;;  %v446_v44 = vadd.f32 %v382_v31, %v318_v33  ;;  %v319_v45 = vmax.f32 %v255_v34, 0.0  ;;  %v320_v46 = vmax.f32 %v256_v35, 0.0  ;;  %v756_v34 = vld [vmem:[%s1411_s0 + $0xc0] sm:$0xff]  }
  0x3c   :  { %569 = vst [vmem:[%s1415_s4 + $0x100] sm:$0xff] %v505_v37  ;;  %v507_v48 = vmax.f32 %v443_v39, 0.0  ;;  %v508_v49 = vmax.f32 %v444_v40, 0.0  ;;  %v687_v50 = vunpack.c.l.bf16 %v752_v36  ;;  %v688_v51 = vunpack.c.h.bf16 %v752_v36  ;;  %v391_v39 = vld [vmem:[%s1414_s1 + $0x170] sm:$0xff]  ;;  %v392_v40 = vld [vmem:[%s1414_s1 + $0x178] sm:$0xff] }
  0x3d   :  { %570 = vst [vmem:[%s1415_s4 + $0x108] sm:$0xff] %v506_v38  ;;  %v509_v53 = vmax.f32 %v445_v43, 0.0  ;;  %v510_v54 = vmax.f32 %v446_v44, 0.0  ;;  %v447_v55 = vadd.f32 %v383_v41, %v319_v45  ;;  %v448_v56 = vadd.f32 %v384_v42, %v320_v46  ;;  %v757_v45 = vld [vmem:[%s1411_s0 + $0xc8] sm:$0xff]  }
  0x3e   :  { %571 = vst [vmem:[%s1415_s4 + $0x110] sm:$0xff] %v507_v48  ;;  %v189_v57 = vmul.f32 %v798_v1, %v687_v50  ;;  %v190_v58 = vmul.f32 %v798_v1, %v688_v51  ;;  %v691_v59 = vunpack.c.l.bf16 %v753_v47  ;;  %v692_v60 = vunpack.c.h.bf16 %v753_v47  ;;  %v758_v50 = vld [vmem:[%s1411_s0 + $0xd0] sm:$0xff]  }
  0x3f   :  { %572 = vst [vmem:[%s1415_s4 + $0x118] sm:$0xff] %v508_v49  ;;  %v511_v62 = vmax.f32 %v447_v55, 0.0  ;;  %v512_v63 = vmax.f32 %v448_v56, 0.0  ;;  %v695_v0 = vunpack.c.l.bf16 %v754_v52  ;;  %v696_v2 = vunpack.c.h.bf16 %v754_v52 }
  0x40   :  { %573 = vst [vmem:[%s1415_s4 + $0x120] sm:$0xff] %v509_v53  ;;  %v257_v4 = vadd.f32 %v803_v3, %v189_v57  ;;  %v258_v5 = vadd.f32 %v803_v3, %v190_v58  ;;  %v191_v6 = vmul.f32 %v798_v1, %v691_v59  ;;  %v192_v7 = vmul.f32 %v798_v1, %v692_v60  ;;  %v759_v59 = vld [vmem:[%s1411_s0 + $0xd8] sm:$0xff]  }
  0x41   :  { %574 = vst [vmem:[%s1415_s4 + $0x128] sm:$0xff] %v510_v54  ;;  %v193_v10 = vmul.f32 %v798_v1, %v695_v0  ;;  %v194_v11 = vmul.f32 %v798_v1, %v696_v2  ;;  %v699_v12 = vunpack.c.l.bf16 %v755_v61  ;;  %v700_v13 = vunpack.c.h.bf16 %v755_v61 }
  0x42   :  { %575 = vst [vmem:[%s1415_s4 + $0x130] sm:$0xff] %v511_v62  ;;  %v321_v14 = vmax.f32 %v257_v4, 0.0  ;;  %v322_v15 = vmax.f32 %v258_v5, 0.0  ;;  %v259_v16 = vadd.f32 %v803_v3, %v191_v6  ;;  %v260_v17 = vadd.f32 %v803_v3, %v192_v7  ;;  %v393_v6 = vld [vmem:[%s1414_s1 + $0x180] sm:$0xff]  ;;  %v394_v7 = vld [vmem:[%s1414_s1 + $0x188] sm:$0xff] }
  0x43   :  { %576 = vst [vmem:[%s1415_s4 + $0x138] sm:$0xff] %v512_v63  ;;  %v261_v20 = vadd.f32 %v803_v3, %v193_v10  ;;  %v262_v21 = vadd.f32 %v803_v3, %v194_v11  ;;  %v195_v22 = vmul.f32 %v798_v1, %v699_v12  ;;  %v196_v23 = vmul.f32 %v798_v1, %v700_v13 }
  0x44   :  { %v449_v24 = vadd.f32 %v385_v8, %v321_v14  ;;  %v450_v25 = vadd.f32 %v386_v9, %v322_v15  ;;  %v323_v26 = vmax.f32 %v259_v16, 0.0  ;;  %v324_v27 = vmax.f32 %v260_v17, 0.0  ;;  %v395_v16 = vld [vmem:[%s1414_s1 + $0x190] sm:$0xff]  ;;  %v396_v17 = vld [vmem:[%s1414_s1 + $0x198] sm:$0xff] }
  0x45   :  { %v325_v30 = vmax.f32 %v261_v20, 0.0  ;;  %v326_v31 = vmax.f32 %v262_v21, 0.0  ;;  %v263_v32 = vadd.f32 %v803_v3, %v195_v22  ;;  %v264_v33 = vadd.f32 %v803_v3, %v196_v23 }
  0x46   :  { %v513_v35 = vmax.f32 %v449_v24, 0.0  ;;  %v514_v36 = vmax.f32 %v450_v25, 0.0  ;;  %v451_v37 = vadd.f32 %v387_v18, %v323_v26  ;;  %v452_v38 = vadd.f32 %v388_v19, %v324_v27  ;;  %v397_v26 = vld [vmem:[%s1414_s1 + $0x1a0] sm:$0xff]  ;;  %v398_v27 = vld [vmem:[%s1414_s1 + $0x1a8] sm:$0xff] }
  0x47   :  { %v453_v41 = vadd.f32 %v389_v28, %v325_v30  ;;  %v454_v42 = vadd.f32 %v390_v29, %v326_v31  ;;  %v327_v43 = vmax.f32 %v263_v32, 0.0  ;;  %v328_v44 = vmax.f32 %v264_v33, 0.0  ;;  %v760_v32 = vld [vmem:[%s1411_s0 + $0xe0] sm:$0xff]  }
  0x48   :  { %577 = vst [vmem:[%s1415_s4 + $0x140] sm:$0xff] %v513_v35  ;;  %v515_v46 = vmax.f32 %v451_v37, 0.0  ;;  %v516_v47 = vmax.f32 %v452_v38, 0.0  ;;  %v703_v48 = vunpack.c.l.bf16 %v756_v34  ;;  %v704_v49 = vunpack.c.h.bf16 %v756_v34  ;;  %v399_v37 = vld [vmem:[%s1414_s1 + $0x1b0] sm:$0xff]  ;;  %v400_v38 = vld [vmem:[%s1414_s1 + $0x1b8] sm:$0xff] }
  0x49   :  { %578 = vst [vmem:[%s1415_s4 + $0x148] sm:$0xff] %v514_v36  ;;  %v517_v51 = vmax.f32 %v453_v41, 0.0  ;;  %v518_v52 = vmax.f32 %v454_v42, 0.0  ;;  %v455_v53 = vadd.f32 %v391_v39, %v327_v43  ;;  %v456_v54 = vadd.f32 %v392_v40, %v328_v44  ;;  %v761_v43 = vld [vmem:[%s1411_s0 + $0xe8] sm:$0xff]  }
  0x4a   :  { %579 = vst [vmem:[%s1415_s4 + $0x150] sm:$0xff] %v515_v46  ;;  %v197_v55 = vmul.f32 %v798_v1, %v703_v48  ;;  %v198_v56 = vmul.f32 %v798_v1, %v704_v49  ;;  %v707_v57 = vunpack.c.l.bf16 %v757_v45  ;;  %v708_v58 = vunpack.c.h.bf16 %v757_v45  ;;  %v762_v48 = vld [vmem:[%s1411_s0 + $0xf0] sm:$0xff]  }
  0x4b   :  { %580 = vst [vmem:[%s1415_s4 + $0x158] sm:$0xff] %v516_v47  ;;  %v519_v60 = vmax.f32 %v455_v53, 0.0  ;;  %v520_v61 = vmax.f32 %v456_v54, 0.0  ;;  %v711_v62 = vunpack.c.l.bf16 %v758_v50  ;;  %v712_v63 = vunpack.c.h.bf16 %v758_v50 }
  0x4c   :  { %581 = vst [vmem:[%s1415_s4 + $0x160] sm:$0xff] %v517_v51  ;;  %v265_v0 = vadd.f32 %v803_v3, %v197_v55  ;;  %v266_v2 = vadd.f32 %v803_v3, %v198_v56  ;;  %v199_v4 = vmul.f32 %v798_v1, %v707_v57  ;;  %v200_v5 = vmul.f32 %v798_v1, %v708_v58  ;;  %v763_v57 = vld [vmem:[%s1411_s0 + $0xf8] sm:$0xff]  }
  0x4d   :  { %582 = vst [vmem:[%s1415_s4 + $0x168] sm:$0xff] %v518_v52  ;;  %v201_v8 = vmul.f32 %v798_v1, %v711_v62  ;;  %v202_v9 = vmul.f32 %v798_v1, %v712_v63  ;;  %v715_v10 = vunpack.c.l.bf16 %v759_v59  ;;  %v716_v11 = vunpack.c.h.bf16 %v759_v59 }
  0x4e   :  { %583 = vst [vmem:[%s1415_s4 + $0x170] sm:$0xff] %v519_v60  ;;  %v329_v12 = vmax.f32 %v265_v0, 0.0  ;;  %v330_v13 = vmax.f32 %v266_v2, 0.0  ;;  %v267_v14 = vadd.f32 %v803_v3, %v199_v4  ;;  %v268_v15 = vadd.f32 %v803_v3, %v200_v5  ;;  %v401_v4 = vld [vmem:[%s1414_s1 + $0x1c0] sm:$0xff]  ;;  %v402_v5 = vld [vmem:[%s1414_s1 + $0x1c8] sm:$0xff] }
  0x4f   :  { %584 = vst [vmem:[%s1415_s4 + $0x178] sm:$0xff] %v520_v61  ;;  %v269_v18 = vadd.f32 %v803_v3, %v201_v8  ;;  %v270_v19 = vadd.f32 %v803_v3, %v202_v9  ;;  %v203_v20 = vmul.f32 %v798_v1, %v715_v10  ;;  %v204_v21 = vmul.f32 %v798_v1, %v716_v11 }
  0x50   :  { %v457_v22 = vadd.f32 %v393_v6, %v329_v12  ;;  %v458_v23 = vadd.f32 %v394_v7, %v330_v13  ;;  %v331_v24 = vmax.f32 %v267_v14, 0.0  ;;  %v332_v25 = vmax.f32 %v268_v15, 0.0  ;;  %v403_v14 = vld [vmem:[%s1414_s1 + $0x1d0] sm:$0xff]  ;;  %v404_v15 = vld [vmem:[%s1414_s1 + $0x1d8] sm:$0xff] }
  0x51   :  { %v333_v28 = vmax.f32 %v269_v18, 0.0  ;;  %v334_v29 = vmax.f32 %v270_v19, 0.0  ;;  %v271_v30 = vadd.f32 %v803_v3, %v203_v20  ;;  %v272_v31 = vadd.f32 %v803_v3, %v204_v21 }
  0x52   :  { %v521_v33 = vmax.f32 %v457_v22, 0.0  ;;  %v522_v34 = vmax.f32 %v458_v23, 0.0  ;;  %v459_v35 = vadd.f32 %v395_v16, %v331_v24  ;;  %v460_v36 = vadd.f32 %v396_v17, %v332_v25  ;;  %v405_v24 = vld [vmem:[%s1414_s1 + $0x1e0] sm:$0xff]  ;;  %v406_v25 = vld [vmem:[%s1414_s1 + $0x1e8] sm:$0xff] }
  0x53   :  { %v461_v39 = vadd.f32 %v397_v26, %v333_v28  ;;  %v462_v40 = vadd.f32 %v398_v27, %v334_v29  ;;  %v335_v41 = vmax.f32 %v271_v30, 0.0  ;;  %v336_v42 = vmax.f32 %v272_v31, 0.0 }
  0x54   :  { %585 = vst [vmem:[%s1415_s4 + $0x180] sm:$0xff] %v521_v33  ;;  %v523_v44 = vmax.f32 %v459_v35, 0.0  ;;  %v524_v45 = vmax.f32 %v460_v36, 0.0  ;;  %v719_v46 = vunpack.c.l.bf16 %v760_v32  ;;  %v720_v47 = vunpack.c.h.bf16 %v760_v32  ;;  %v407_v33 = vld [vmem:[%s1414_s1 + $0x1f0] sm:$0xff] }
  0x55   :  { %586 = vst [vmem:[%s1415_s4 + $0x188] sm:$0xff] %v522_v34  ;;  %v525_v49 = vmax.f32 %v461_v39, 0.0  ;;  %v526_v50 = vmax.f32 %v462_v40, 0.0  ;;  %v463_v51 = vadd.f32 %v399_v37, %v335_v41  ;;  %v464_v52 = vadd.f32 %v400_v38, %v336_v42  ;;  %v408_v34 = vld [vmem:[%s1414_s1 + $0x1f8] sm:$0xff] }
  0x56   :  { %587 = vst [vmem:[%s1415_s4 + $0x190] sm:$0xff] %v523_v44  ;;  %v205_v53 = vmul.f32 %v798_v1, %v719_v46  ;;  %v206_v54 = vmul.f32 %v798_v1, %v720_v47  ;;  %v723_v55 = vunpack.c.l.bf16 %v761_v43  ;;  %v724_v56 = vunpack.c.h.bf16 %v761_v43 }
  0x57   :  { %588 = vst [vmem:[%s1415_s4 + $0x198] sm:$0xff] %v524_v45  ;;  %v527_v58 = vmax.f32 %v463_v51, 0.0  ;;  %v528_v59 = vmax.f32 %v464_v52, 0.0  ;;  %v727_v60 = vunpack.c.l.bf16 %v762_v48  ;;  %v728_v61 = vunpack.c.h.bf16 %v762_v48 }
  0x58   :  { %589 = vst [vmem:[%s1415_s4 + $0x1a0] sm:$0xff] %v525_v49  ;;  %v273_v62 = vadd.f32 %v803_v3, %v205_v53  ;;  %v274_v63 = vadd.f32 %v803_v3, %v206_v54  ;;  %v207_v0 = vmul.f32 %v798_v1, %v723_v55  ;;  %v208_v2 = vmul.f32 %v798_v1, %v724_v56 }
  0x59   :  { %590 = vst [vmem:[%s1415_s4 + $0x1a8] sm:$0xff] %v526_v50  ;;  %v209_v6 = vmul.f32 %v798_v1, %v727_v60  ;;  %v210_v7 = vmul.f32 %v798_v1, %v728_v61  ;;  %v731_v8 = vunpack.c.l.bf16 %v763_v57  ;;  %v732_v9 = vunpack.c.h.bf16 %v763_v57 }
  0x5a   :  { %591 = vst [vmem:[%s1415_s4 + $0x1b0] sm:$0xff] %v527_v58  ;;  %v337_v10 = vmax.f32 %v273_v62, 0.0  ;;  %v338_v11 = vmax.f32 %v274_v63, 0.0  ;;  %v275_v12 = vadd.f32 %v803_v3, %v207_v0  ;;  %v276_v13 = vadd.f32 %v803_v3, %v208_v2 }
  0x5b   :  { %592 = vst [vmem:[%s1415_s4 + $0x1b8] sm:$0xff] %v528_v59  ;;  %v277_v16 = vadd.f32 %v803_v3, %v209_v6  ;;  %v278_v17 = vadd.f32 %v803_v3, %v210_v7  ;;  %v211_v18 = vmul.f32 %v798_v1, %v731_v8  ;;  %v212_v19 = vmul.f32 %v798_v1, %v732_v9  ;;  %v766_v3 = vld [vmem:[%s1413_s3] ss:$0 sm:$0xff] }
  0x5c   :  { %v465_v20 = vadd.f32 %v401_v4, %v337_v10  ;;  %v466_v21 = vadd.f32 %v402_v5, %v338_v11  ;;  %v339_v22 = vmax.f32 %v275_v12, 0.0  ;;  %v340_v23 = vmax.f32 %v276_v13, 0.0 }
  0x5d   :  { %v341_v26 = vmax.f32 %v277_v16, 0.0  ;;  %v342_v27 = vmax.f32 %v278_v17, 0.0  ;;  %v279_v28 = vadd.f32 %v766_v3, %v211_v18  ;;  %v280_v1 = vadd.f32 %v766_v3, %v212_v19 }
  0x5e   :  { %v529_v29 = vmax.f32 %v465_v20, 0.0  ;;  %v530_v30 = vmax.f32 %v466_v21, 0.0  ;;  %v467_v31 = vadd.f32 %v403_v14, %v339_v22  ;;  %v468_v32 = vadd.f32 %v404_v15, %v340_v23 }
  0x5f   :  { %v469_v35 = vadd.f32 %v405_v24, %v341_v26  ;;  %v470_v36 = vadd.f32 %v406_v25, %v342_v27  ;;  %v343_v37 = vmax.f32 %v279_v28, 0.0  ;;  %v344_v38 = vmax.f32 %v280_v1, 0.0 }
  0x60   :  { %593 = vst [vmem:[%s1415_s4 + $0x1c0] sm:$0xff] %v529_v29  ;;  %v531_v39 = vmax.f32 %v467_v31, 0.0  ;;  %v532_v40 = vmax.f32 %v468_v32, 0.0 }
  0x61   :  { %594 = vst [vmem:[%s1415_s4 + $0x1c8] sm:$0xff] %v530_v30  ;;  %v533_v41 = vmax.f32 %v469_v35, 0.0  ;;  %v534_v42 = vmax.f32 %v470_v36, 0.0  ;;  %v471_v43 = vadd.f32 %v407_v33, %v343_v37  ;;  %v472_v44 = vadd.f32 %v408_v34, %v344_v38 }
  0x62   :  { %595 = vst [vmem:[%s1415_s4 + $0x1d0] sm:$0xff] %v531_v39 }
  0x63   :  { %596 = vst [vmem:[%s1415_s4 + $0x1d8] sm:$0xff] %v532_v40  ;;  %v535_v45 = vmax.f32 %v471_v43, 0.0  ;;  %v536_v46 = vmax.f32 %v472_v44, 0.0 }
  0x64   :  { %597 = vst [vmem:[%s1415_s4 + $0x1e0] sm:$0xff] %v533_v41 }
  0x65   :  { %598 = vst [vmem:[%s1415_s4 + $0x1e8] sm:$0xff] %v534_v42 }
  0x66   :  { %599 = vst [vmem:[%s1415_s4 + $0x1f0] sm:$0xff] %v535_v45 }
  0x67   :  { %600 = vst [vmem:[%s1415_s4 + $0x1f8] sm:$0xff] %v536_v46 }

// kernel: residual_block.2
= control target key start
LH: loop header
LB: loop body
LE: loop exit
PB: predicated region body
PF: predicated region fallthrough
CT: control target
= control target key end

     0   :  { %s3337_s15 = smov 0   ;;  %s4250_s0 = inlined_call_operand.vmem [shape: f32[2,16,16,128], index: 0, kind: input, shape index: {}]   ;;  %s4251_s1 = inlined_call_operand.vmem [shape: bf16[9,128,128], index: 1, kind: input, shape index: {}]   ;;  %s4252_s2 = inlined_call_operand.vmem [shape: bf16[512,128], index: 2, kind: output, shape index: {0}]   ;;  %s4253_s3 = inlined_call_operand.vmem [shape: f32[2,1,128], index: 3, kind: output, shape index: {1}]   ;;  %s4254_s4 = inlined_call_operand.vmem [shape: f32[2,1,128], index: 4, kind: output, shape index: {2}]  }
   0x1 LB: > { %s3343_s16 = sadd.s32 4294967295, %s3308_s15   ;;  %p2677_p0 = scmp.ge.s32.totalorder %s3308_s15, 1  ;;  %s3308_s15 = sphi %s3337_s15, %s15_s15  }
   0x2   : > { %p167_p1 = scmp.lt.s32.totalorder %s3308_s15, 3 }
   0x4   : > { %p168_p2 = pnand %p2677_p0, %p167_p1 }
   0x6   : > { %171 = sbr.rel (%p168_p2) target bundleno = 845 (0x34d), region = 28 }
   0xb   : > { %v3116_v0 = vld [vmem:[%s4251_s1 + $0x78] sm:$0xff]  ;;  %p199_p3 = scmp.lt.s32.totalorder %s3343_s16, 1  ;;  %v3310_v1 = vmov 0.0   ;;  %v3115_v2 = vld [vmem:[%s4251_s1 + $0x70] sm:$0xff]  ;;  %v3114_v3 = vld [vmem:[%s4251_s1 + $0x68] sm:$0xff] }
   0xc   : > { %216 = vst [vmem:[#allocation2] sm:$0xff] %v3310_v1  ;;  %3268 = vmatpush.bf16.msra.mxu1 %v3116_v0  ;;  %3269 = vmatpush.bf16.msra.mxu2 %v3116_v0  ;;  %v3113_v8 = vld [vmem:[%s4251_s1 + $0x60] sm:$0xff]  ;;  %v3112_v11 = vld [vmem:[%s4251_s1 + $0x58] sm:$0xff]  ;;  %v3111_v12 = vld [vmem:[%s4251_s1 + $0x50] sm:$0xff] }
   0xd   : > { %s3356_s21 = scalar_select %p199_p3, %s3343_s16, 1  ;;  %217 = vst [vmem:[#allocation2 + $0x8] sm:$0xff] %v3310_v1  ;;  %3270 = vmatpush.bf16.msra.mxu3 %v3116_v0  ;;  %497 = vmatpush.bf16.msra.mxu0 %v3116_v0  ;;  %v3110_v13 = vld [vmem:[%s4251_s1 + $0x48] sm:$0xff]  ;;  %v3109_v14 = vld [vmem:[%s4251_s1 + $0x40] sm:$0xff]  ;;  %v3124_v17 = vld [vmem:[%s4251_s1 + $0xb8] sm:$0xff] }
   0xe   : > { %218 = vst [vmem:[#allocation2 + $0x10] sm:$0xff] %v3310_v1  ;;  %v3132_v18 = vld [vmem:[%s4251_s1 + $0xf8] sm:$0xff]  ;;  %v3123_v25 = vld [vmem:[%s4251_s1 + $0xb0] sm:$0xff]  ;;  %v3122_v29 = vld [vmem:[%s4251_s1 + $0xa8] sm:$0xff] }
   0xf   : > { %s3100_s22 = sshll.u32 %s3356_s21, 8  ;;  %220 = vst [vmem:[#allocation2 + $0x198] sm:$0xff] %v3310_v1  ;;  %v3108_v23 = vld [vmem:[%s4251_s1 + $0x38] sm:$0xff]  ;;  %v3131_v26 = vld [vmem:[%s4251_s1 + $0xf0] sm:$0xff]  ;;  %v3130_v30 = vld [vmem:[%s4251_s1 + $0xe8] sm:$0xff]  ;;  %s212_s13 = scalar_lea.vmem %s4253_s3, %s3356_s21 }
  0x10   : > { %s3365_s25 = scalar_lea.vmem %s4250_s0, %s3100_s22  ;;  %221 = vst [vmem:[#allocation2 + $0x1a0] sm:$0xff] %v3310_v1  ;;  %3271 = vmatpush.bf16.msra.mxu1 %v3115_v2  ;;  %3272 = vmatpush.bf16.msra.mxu2 %v3115_v2  ;;  %v3140_v24 = vld [vmem:[%s4251_s1 + $0x138] sm:$0xff]  ;;  %v3107_v27 = vld [vmem:[%s4251_s1 + $0x30] sm:$0xff]  ;;  %v3106_v31 = vld [vmem:[%s4251_s1 + $0x28] sm:$0xff]  ;;  %s215_s18 = scalar_lea.vmem %s4254_s4, %s3356_s21 }
  0x11   : > { %v262_v4 = vld [vmem:[%s3365_s25 + $0x30] sm:$0xff]  ;;  %222 = vst [vmem:[#allocation2 + $0x1a8] sm:$0xff] %v3310_v1  ;;  %3273 = vmatpush.bf16.msra.mxu3 %v3115_v2  ;;  %498 = vmatpush.bf16.msra.mxu0 %v3115_v2  ;;  %v263_v5 = vld [vmem:[%s3365_s25 + $0x38] sm:$0xff]  ;;  %v3138_v32 = vld [vmem:[%s4251_s1 + $0x128] sm:$0xff] }
  0x12   : > { %294 = vst [vmem:[#allocation2 + $0x61] sm:$0xff] %v262_v4  ;;  %v270_v6 = vld [vmem:[%s3365_s25 + $0x70] sm:$0xff]  ;;  %v271_v7 = vld [vmem:[%s3365_s25 + $0x78] sm:$0xff]  ;;  %v3421_v19 = vpack.c.bf16 %v263_v5, %v262_v4  ;;  %v264_v33 = vld [vmem:[%s3365_s25 + $0x40] sm:$0xff] }
  0x13   : > { %295 = vst [vmem:[#allocation2 + $0x69] sm:$0xff] %v263_v5  ;;  %v3380_v9 = vld [vmem:[%s3365_s25 + $0xb0] sm:$0xff]  ;;  %v3383_v10 = vld [vmem:[%s3365_s25 + $0xb8] sm:$0xff]  ;;  %v3423_v20 = vpack.c.bf16 %v271_v7, %v270_v6  ;;  %v3121_v34 = vld [vmem:[%s4251_s1 + $0xa0] sm:$0xff] }
  0x14   : > { %302 = vst [vmem:[#allocation2 + $0xc1] sm:$0xff] %v270_v6  ;;  %3274 = vmatpush.bf16.msra.mxu1 %v3114_v3  ;;  %3275 = vmatpush.bf16.msra.mxu2 %v3114_v3  ;;  %v384_v15 = vld [vmem:[#allocation2 + $0x1] sm:$0xff]  ;;  %v428_v21 = vpack.c.bf16 %v3383_v10, %v3380_v9  ;;  %v3139_v28 = vld [vmem:[%s4251_s1 + $0x130] sm:$0xff]  ;;  %v3120_v45 = vld [vmem:[%s4251_s1 + $0x98] sm:$0xff] }
  0x15   : > { %303 = vst [vmem:[#allocation2 + $0xc9] sm:$0xff] %v271_v7  ;;  %3276 = vmatpush.bf16.msra.mxu3 %v3114_v3  ;;  %499 = vmatpush.bf16.msra.mxu0 %v3114_v3  ;;  %v385_v16 = vld [vmem:[#allocation2 + $0x9] sm:$0xff]  ;;  %v3129_v35 = vld [vmem:[%s4251_s1 + $0xe0] sm:$0xff]  ;;  %v3128_v46 = vld [vmem:[%s4251_s1 + $0xd8] sm:$0xff] }
  0x16   : > { %310 = vst [vmem:[#allocation2 + $0x121] sm:$0xff] %v3380_v9  ;;  %v416_v22 = vpack.c.bf16 %v385_v16, %v384_v15  ;;  %v265_v36 = vld [vmem:[%s3365_s25 + $0x48] sm:$0xff]  ;;  %v272_v37 = vld [vmem:[%s3365_s25 + $0x80] sm:$0xff]  ;;  %v3104_v51 = vld [vmem:[%s4251_s1 + $0x18] sm:$0xff] }
  0x17   : > { %311 = vst [vmem:[#allocation2 + $0x129] sm:$0xff] %v3383_v10  ;;  %v273_v38 = vld [vmem:[%s3365_s25 + $0x88] sm:$0xff]  ;;  %v280_v39 = vld [vmem:[%s3365_s25 + $0xc0] sm:$0xff]  ;;  %v3501_v47 = vpack.c.bf16 %v265_v36, %v264_v33  ;;  %v3136_v52 = vld [vmem:[%s4251_s1 + $0x118] sm:$0xff] }
  0x18   : > { %224 = vst [vmem:[#allocation2 + $0x18] sm:$0x1] %v3310_v1  ;;  %3277 = vmatpush.bf16.msra.mxu1 %v3113_v8  ;;  %3278 = vmatpush.bf16.msra.mxu2 %v3113_v8  ;;  %v281_v40 = vld [vmem:[%s3365_s25 + $0xc8] sm:$0xff]  ;;  %v256_v41 = vld [vmem:[%s3365_s25] sm:$0xff]  ;;  %v3503_v48 = vpack.c.bf16 %v273_v38, %v272_v37  ;;  %v3119_v53 = vld [vmem:[%s4251_s1 + $0x90] sm:$0xff] }
  0x19   : > { %225 = vst [vmem:[#allocation2 + $0x30] sm:$0x1] %v3310_v1  ;;  %3279 = vmatpush.bf16.msra.mxu3 %v3113_v8  ;;  %500 = vmatpush.bf16.msra.mxu0 %v3113_v8  ;;  %v257_v42 = vld [vmem:[%s3365_s25 + $0x8] sm:$0xff]  ;;  %v3105_v43 = vld [vmem:[%s4251_s1 + $0x20] sm:$0xff]  ;;  %v429_v49 = vpack.c.bf16 %v281_v40, %v280_v39  ;;  %v3127_v54 = vld [vmem:[%s4251_s1 + $0xd0] sm:$0xff] }
  0x1a   : > { %226 = vst [vmem:[#allocation2 + $0x48] sm:$0x1] %v3310_v1  ;;  %v3137_v44 = vld [vmem:[%s4251_s1 + $0x120] sm:$0xff]  ;;  %v3505_v50 = vpack.c.bf16 %v257_v42, %v256_v41  ;;  %v3103_v55 = vld [vmem:[%s4251_s1 + $0x10] sm:$0xff]  ;;  %v3118_v58 = vld [vmem:[%s4251_s1 + $0x88] sm:$0xff] }
  0x1b   : > { %227 = vst [vmem:[#allocation2 + $0x60] sm:$0x1] %v3310_v1  ;;  %v3135_v56 = vld [vmem:[%s4251_s1 + $0x110] sm:$0xff]  ;;  %v3126_v59 = vld [vmem:[%s4251_s1 + $0xc8] sm:$0xff]  ;;  %v267_v60 = vld [vmem:[%s3365_s25 + $0x58] sm:$0xff] }
  0x1c   : > { %228 = vst [vmem:[#allocation2 + $0x78] sm:$0x1] %v3310_v1  ;;  %3280 = vmatpush.bf16.msra.mxu1 %v3112_v11  ;;  %3281 = vmatpush.bf16.msra.mxu2 %v3112_v11  ;;  %v266_v57 = vld [vmem:[%s3365_s25 + $0x50] sm:$0xff]  ;;  %v275_v62 = vld [vmem:[%s3365_s25 + $0x98] sm:$0xff]  ;;  %v3102_v63 = vld [vmem:[%s4251_s1 + $0x8] sm:$0xff] }
  0x1d   : > { %229 = vst [vmem:[#allocation2 + $0x90] sm:$0x1] %v3310_v1  ;;  %3282 = vmatpush.bf16.msra.mxu3 %v3112_v11  ;;  %501 = vmatpush.bf16.msra.mxu0 %v3112_v11  ;;  %v274_v61 = vld [vmem:[%s3365_s25 + $0x90] sm:$0xff]  ;;  %v3134_v0 = vld [vmem:[%s4251_s1 + $0x108] sm:$0xff]  ;;  %v3117_v2 = vld [vmem:[%s4251_s1 + $0x80] sm:$0xff]  ;;  %v3561_v10 = vpack.c.bf16 %v267_v60, %v266_v57 }
  0x1e   : > { %230 = vst [vmem:[#allocation2 + $0xa8] sm:$0x1] %v3310_v1  ;;  %v3125_v3 = vld [vmem:[%s4251_s1 + $0xc0] sm:$0xff]  ;;  %v283_v4 = vld [vmem:[%s3365_s25 + $0xd8] sm:$0xff]  ;;  %v258_v5 = vld [vmem:[%s3365_s25 + $0x10] sm:$0xff]  ;;  %v3563_v11 = vpack.c.bf16 %v275_v62, %v274_v61 }
  0x1f   : > { %231 = vst [vmem:[#allocation2 + $0xc0] sm:$0x1] %v3310_v1  ;;  %v259_v6 = vld [vmem:[%s3365_s25 + $0x18] sm:$0xff]  ;;  %v3101_v7 = vld [vmem:[%s4251_s1] sm:$0xff]  ;;  %v277_v16 = vld [vmem:[%s3365_s25 + $0xa8] sm:$0xff] }
  0x20   : > { %232 = vst [vmem:[#allocation2 + $0xd8] sm:$0x1] %v3310_v1  ;;  %3283 = vmatpush.bf16.msra.mxu1 %v3111_v12  ;;  %3284 = vmatpush.bf16.msra.mxu2 %v3111_v12  ;;  %v3133_v8 = vld [vmem:[%s4251_s1 + $0x100] sm:$0xff] }
  0x21   : > { %233 = vst [vmem:[#allocation2 + $0xf0] sm:$0x1] %v3310_v1  ;;  %3285 = vmatpush.bf16.msra.mxu3 %v3111_v12  ;;  %502 = vmatpush.bf16.msra.mxu0 %v3111_v12  ;;  %v268_v9 = vld [vmem:[%s3365_s25 + $0x60] sm:$0xff]  ;;  %v269_v12 = vld [vmem:[%s3365_s25 + $0x68] sm:$0xff] }
  0x22   : > { %234 = vst [vmem:[#allocation2 + $0x108] sm:$0x1] %v3310_v1  ;;  %v276_v15 = vld [vmem:[%s3365_s25 + $0xa0] sm:$0xff] }
  0x23   : > { %235 = vst [vmem:[#allocation2 + $0x120] sm:$0x1] %v3310_v1 }
  0x24   : > { %236 = vst [vmem:[#allocation2 + $0x138] sm:$0x1] %v3310_v1  ;;  %3286 = vmatpush.bf16.msra.mxu1 %v3110_v13  ;;  %3287 = vmatpush.bf16.msra.mxu2 %v3110_v13 }
  0x25   : > { %237 = vst [vmem:[#allocation2 + $0x150] sm:$0x1] %v3310_v1  ;;  %3288 = vmatpush.bf16.msra.mxu3 %v3110_v13  ;;  %503 = vmatpush.bf16.msra.mxu0 %v3110_v13 }
  0x26   : > { %238 = vst [vmem:[#allocation2 + $0x168] sm:$0x1] %v3310_v1 }
  0x27   : > { %239 = vst [vmem:[#allocation2 + $0x180] sm:$0x1] %v3310_v1 }
  0x28   : > { %240 = vst [vmem:[#allocation2 + $0x29] sm:$0x1] %v3310_v1  ;;  %3289 = vmatpush.bf16.msra.mxu1 %v3109_v14  ;;  %3290 = vmatpush.bf16.msra.mxu2 %v3109_v14 }
  0x29   : > { %241 = vst [vmem:[#allocation2 + $0x41] sm:$0x1] %v3310_v1  ;;  %3291 = vmatpush.bf16.msra.mxu3 %v3109_v14  ;;  %504 = vmatpush.bf16.msra.mxu0 %v3109_v14  ;;  %v3566_v14 = vpack.c.bf16 %v259_v6, %v258_v5 }
  0x2a   : > { %242 = vst [vmem:[#allocation2 + $0x59] sm:$0x1] %v3310_v1 }
  0x2b   : > { %243 = vst [vmem:[#allocation2 + $0x71] sm:$0x1] %v3310_v1  ;;  %525 = vmatmul.bf16.vlgmr.msra.gmra.mxu1 %v3421_v19  ;;  %545 = vmatmul.bf16.vlgmr.msra.gmra.mxu2 %v3423_v20 }
  0x2c   : > { %836 = vmatpush.bf16.msrb.mxu2 %v3124_v17  ;;  %244 = vst [vmem:[#allocation2 + $0x89] sm:$0x1] %v3310_v1  ;;  %565 = vmatmul.bf16.vlgmr.msra.gmra.mxu3 %v428_v21  ;;  %v284_v17 = vld [vmem:[%s3365_s25 + $0xe0] sm:$0xff] }
  0x2d   : > { %1070 = vmatpush.bf16.msrb.mxu3 %v3132_v18  ;;  %505 = vmatmul.bf16.vlgmr.msra.gmra.mxu0 %v416_v22  ;;  %245 = vst [vmem:[#allocation2 + $0xa1] sm:$0x1] %v3310_v1  ;;  %v285_v18 = vld [vmem:[%s3365_s25 + $0xe8] sm:$0xff]  ;;  %v260_v21 = vld [vmem:[%s3365_s25 + $0x20] sm:$0xff]  ;;  %v3156_v22 = vld [vmem:[%s4251_s1 + $0x1b8] sm:$0xff] }
  0x2e   : > { %246 = vst [vmem:[#allocation2 + $0xb9] sm:$0x1] %v3310_v1  ;;  %634 = vmatpush.bf16.msrb.mxu1 %v3108_v23  ;;  %1304 = vmatpush.bf16.msrb.mxu0 %v3140_v24  ;;  %v3164_v23 = vld [vmem:[%s4251_s1 + $0x1f8] sm:$0xff] }
  0x2f   : > { %247 = vst [vmem:[#allocation2 + $0xd1] sm:$0x1] %v3310_v1  ;;  %v3148_v24 = vld [vmem:[%s4251_s1 + $0x178] sm:$0xff] }
  0x30   : > { %837 = vmatpush.bf16.msrb.mxu2 %v3123_v25  ;;  %248 = vst [vmem:[#allocation2 + $0xe9] sm:$0x1] %v3310_v1  ;;  %v261_v25 = vld [vmem:[%s3365_s25 + $0x28] sm:$0xff] }
  0x31   : > { %1071 = vmatpush.bf16.msrb.mxu3 %v3131_v26  ;;  %249 = vst [vmem:[#allocation2 + $0x101] sm:$0x1] %v3310_v1  ;;  %v3172_v26 = vld [vmem:[%s4251_s1 + $0x238] sm:$0xff] }
  0x32   : > { %250 = vst [vmem:[#allocation2 + $0x119] sm:$0x1] %v3310_v1  ;;  %635 = vmatpush.bf16.msrb.mxu1 %v3107_v27  ;;  %1305 = vmatpush.bf16.msrb.mxu0 %v3139_v28  ;;  %v3589_v27 = vpack.c.bf16 %v269_v12, %v268_v9  ;;  %v3591_v28 = vpack.c.bf16 %v277_v16, %v276_v15 }
  0x33   : > { %251 = vst [vmem:[#allocation2 + $0x131] sm:$0x1] %v3310_v1 }
  0x34   : > { %838 = vmatpush.bf16.msrb.mxu2 %v3122_v29  ;;  %252 = vst [vmem:[#allocation2 + $0x149] sm:$0x1] %v3310_v1  ;;  %v431_v29 = vpack.c.bf16 %v285_v18, %v284_v17 }
  0x35   : > { %1072 = vmatpush.bf16.msrb.mxu3 %v3130_v30  ;;  %253 = vst [vmem:[#allocation2 + $0x161] sm:$0x1] %v3310_v1  ;;  %v419_v30 = vpack.c.bf16 %v261_v25, %v260_v21 }
  0x36   : > { %254 = vst [vmem:[#allocation2 + $0x179] sm:$0x1] %v3310_v1  ;;  %636 = vmatpush.bf16.msrb.mxu1 %v3106_v31  ;;  %1306 = vmatpush.bf16.msrb.mxu0 %v3138_v32  ;;  %v723_v31 = vld [vmem:[#allocation2 + $0x2] sm:$0xff]  ;;  %v724_v32 = vld [vmem:[#allocation2 + $0xa] sm:$0xff] }
  0x37   : > { %255 = vst [vmem:[#allocation2 + $0x191] sm:$0x1] %v3310_v1  ;;  %v282_v1 = vld [vmem:[%s3365_s25 + $0xd0] sm:$0xff] }
  0x38   : > { %839 = vmatpush.bf16.msrb.mxu2 %v3121_v34  ;;  %296 = vst [vmem:[#allocation2 + $0x79] sm:$0xff] %v264_v33  ;;  %v430_v13 = vpack.c.bf16 %v283_v4, %v282_v1 }
  0x39   : > { %1073 = vmatpush.bf16.msrb.mxu3 %v3129_v35  ;;  %297 = vst [vmem:[#allocation2 + $0x81] sm:$0xff] %v265_v36  ;;  %v755_v35 = vpack.c.bf16 %v724_v32, %v723_v31 }
  0x3a   : > { %304 = vst [vmem:[#allocation2 + $0xd9] sm:$0xff] %v272_v37  ;;  %637 = vmatpush.bf16.msrb.mxu1 %v3105_v43  ;;  %1307 = vmatpush.bf16.msrb.mxu0 %v3137_v44  ;;  %v3311_v37 = vmov 0.0|0.0  }
  0x3b   : > { %305 = vst [vmem:[#allocation2 + $0xe1] sm:$0xff] %v273_v38  ;;  %530 = vmatmul.bf16.gmra.mxu1 %v3501_v47  ;;  %550 = vmatmul.bf16.gmra.mxu2 %v3503_v48  ;;  %v3155_v38 = vld [vmem:[%s4251_s1 + $0x1b0] sm:$0xff] }
  0x3c   : > { %840 = vmatpush.bf16.msrb.mxu2 %v3120_v45  ;;  %312 = vst [vmem:[#allocation2 + $0x139] sm:$0xff] %v280_v39  ;;  %570 = vmatmul.bf16.gmra.mxu3 %v429_v49  ;;  %v3163_v39 = vld [vmem:[%s4251_s1 + $0x1f0] sm:$0xff] }
  0x3d   : > { %1074 = vmatpush.bf16.msrb.mxu3 %v3128_v46  ;;  %313 = vst [vmem:[#allocation2 + $0x141] sm:$0xff] %v281_v40  ;;  %510 = vmatmul.bf16.gmra.mxu0 %v3505_v50  ;;  %v3147_v40 = vld [vmem:[%s4251_s1 + $0x170] sm:$0xff] }
  0x3e   : > { %288 = vst [vmem:[#allocation2 + $0x19] sm:$0xff] %v256_v41  ;;  %638 = vmatpush.bf16.msrb.mxu1 %v3104_v51  ;;  %1308 = vmatpush.bf16.msrb.mxu0 %v3136_v52  ;;  %v3171_v41 = vld [vmem:[%s4251_s1 + $0x230] sm:$0xff] }
  0x3f   : > { %289 = vst [vmem:[#allocation2 + $0x21] sm:$0xff] %v257_v42 }
  0x40   : > { %841 = vmatpush.bf16.msrb.mxu2 %v3119_v53  ;;  %298 = vst [vmem:[#allocation2 + $0x91] sm:$0xff] %v266_v57  ;;  %v3162_v57 = vld [vmem:[%s4251_s1 + $0x1e8] sm:$0xff] }
  0x41   : > { %1075 = vmatpush.bf16.msrb.mxu3 %v3127_v54  ;;  %299 = vst [vmem:[#allocation2 + $0x99] sm:$0xff] %v267_v60 }
  0x42   : > { %306 = vst [vmem:[#allocation2 + $0xf1] sm:$0xff] %v274_v61  ;;  %639 = vmatpush.bf16.msrb.mxu1 %v3103_v55  ;;  %1309 = vmatpush.bf16.msrb.mxu0 %v3135_v56  ;;  %v3154_v56 = vld [vmem:[%s4251_s1 + $0x1a8] sm:$0xff] }
  0x43   : > { %307 = vst [vmem:[#allocation2 + $0xf9] sm:$0xff] %v275_v62  ;;  %v963_v62 = vld [vmem:[#allocation2 + $0x60] sm:$0xff] }
  0x44   : > { %842 = vmatpush.bf16.msrb.mxu2 %v3118_v58  ;;  %314 = vst [vmem:[#allocation2 + $0x151] sm:$0xff] %v282_v1  ;;  %v3146_v58 = vld [vmem:[%s4251_s1 + $0x168] sm:$0xff] }
  0x45   : > { %1076 = vmatpush.bf16.msrb.mxu3 %v3126_v59  ;;  %315 = vst [vmem:[#allocation2 + $0x159] sm:$0xff] %v283_v4  ;;  %v957_v33 = vld [vmem:[#allocation2 + $0x18] sm:$0xff]  ;;  %v3170_v59 = vld [vmem:[%s4251_s1 + $0x228] sm:$0xff] }
  0x46   : > { %290 = vst [vmem:[#allocation2 + $0x31] sm:$0xff] %v258_v5  ;;  %640 = vmatpush.bf16.msrb.mxu1 %v3102_v63  ;;  %1310 = vmatpush.bf16.msrb.mxu0 %v3134_v0  ;;  %v958_v34 = vld [vmem:[#allocation2 + $0x20] sm:$0xff]  ;;  %v964_v63 = vld [vmem:[#allocation2 + $0x68] sm:$0xff]  ;;  %v965_v4 = vld [vmem:[#allocation2 + $0x78] sm:$0xff] }
  0x47   : > { %291 = vst [vmem:[#allocation2 + $0x39] sm:$0xff] %v259_v6  ;;  %v989_v36 = vpack.c.bf16 %v958_v34, %v957_v33  ;;  %v725_v42 = vld [vmem:[#allocation2 + $0x1a] sm:$0xff]  ;;  %v726_v43 = vld [vmem:[#allocation2 + $0x22] sm:$0xff]  ;;  %v3633_v1 = vpack.c.bf16 %v964_v63, %v963_v62 }
  0x48   : > { %843 = vmatpush.bf16.msrb.mxu2 %v3117_v2  ;;  %300 = vst [vmem:[#allocation2 + $0xa9] sm:$0xff] %v268_v9  ;;  %v3608_v46 = vpack.c.bf16 %v726_v43, %v725_v42  ;;  %v731_v2 = vld [vmem:[#allocation2 + $0x62] sm:$0xff] }
  0x49   : > { %1077 = vmatpush.bf16.msrb.mxu3 %v3125_v3  ;;  %301 = vst [vmem:[#allocation2 + $0xb1] sm:$0xff] %v269_v12  ;;  %v732_v3 = vld [vmem:[#allocation2 + $0x6a] sm:$0xff]  ;;  %v966_v5 = vld [vmem:[#allocation2 + $0x80] sm:$0xff] }
  0x4a   : > { %308 = vst [vmem:[#allocation2 + $0x109] sm:$0xff] %v276_v15  ;;  %641 = vmatpush.bf16.msrb.mxu1 %v3101_v7  ;;  %1311 = vmatpush.bf16.msrb.mxu0 %v3133_v8  ;;  %v3638_v6 = vpack.c.bf16 %v732_v3, %v731_v2  ;;  %v993_v8 = vpack.c.bf16 %v966_v5, %v965_v4  ;;  %v3161_v12 = vld [vmem:[%s4251_s1 + $0x1e0] sm:$0xff] }
  0x4b   : > { %309 = vst [vmem:[#allocation2 + $0x111] sm:$0xff] %v277_v16  ;;  %535 = vmatmul.bf16.gmra.mxu1 %v3561_v10  ;;  %555 = vmatmul.bf16.gmra.mxu2 %v3563_v11  ;;  %v3145_v15 = vld [vmem:[%s4251_s1 + $0x160] sm:$0xff] }
  0x4c   : > { %316 = vst [vmem:[#allocation2 + $0x169] sm:$0xff] %v284_v17  ;;  %575 = vmatmul.bf16.gmra.mxu3 %v430_v13  ;;  %1773 = vmatpush.bf16.msra.mxu2 %v3156_v22  ;;  %v3169_v17 = vld [vmem:[%s4251_s1 + $0x220] sm:$0xff]  ;;  %v967_v22 = vld [vmem:[#allocation2 + $0x90] sm:$0xff] }
  0x4d   : > { %515 = vmatmul.bf16.gmra.mxu0 %v3566_v14  ;;  %317 = vst [vmem:[#allocation2 + $0x171] sm:$0xff] %v285_v18  ;;  %2007 = vmatpush.bf16.msra.mxu3 %v3164_v23  ;;  %v959_v44 = vld [vmem:[#allocation2 + $0x30] sm:$0xff]  ;;  %v733_v18 = vld [vmem:[#allocation2 + $0x7a] sm:$0xff] }
  0x4e   : > { %292 = vst [vmem:[#allocation2 + $0x49] sm:$0xff] %v260_v21  ;;  %1538 = vmatpush.bf16.msra.mxu1 %v3148_v24  ;;  %2241 = vmatpush.bf16.msra.mxu0 %v3172_v26  ;;  %v960_v45 = vld [vmem:[#allocation2 + $0x38] sm:$0xff]  ;;  %v734_v21 = vld [vmem:[#allocation2 + $0x82] sm:$0xff] }
  0x4f   : > { %293 = vst [vmem:[#allocation2 + $0x51] sm:$0xff] %v261_v25  ;;  %v3610_v49 = vpack.c.bf16 %v960_v45, %v959_v44  ;;  %v728_v51 = vld [vmem:[#allocation2 + $0x3a] sm:$0xff]  ;;  %v3671_v26 = vpack.c.bf16 %v734_v21, %v733_v18 }
  0x50   : > { %1774 = vmatpush.bf16.msra.mxu2 %v3155_v38  ;;  %v968_v23 = vld [vmem:[#allocation2 + $0x98] sm:$0xff]  ;;  %v969_v38 = vld [vmem:[#allocation2 + $0xa8] sm:$0xff]  ;;  %v974_v21 = vld [vmem:[#allocation2 + $0xe0] sm:$0xff] }
  0x51   : > { %2008 = vmatpush.bf16.msra.mxu3 %v3163_v39  ;;  %v970_v39 = vld [vmem:[#allocation2 + $0xb0] sm:$0xff]  ;;  %v3152_v45 = vld [vmem:[%s4251_s1 + $0x198] sm:$0xff] }
  0x52   : > { %1539 = vmatpush.bf16.msra.mxu1 %v3147_v40  ;;  %2242 = vmatpush.bf16.msra.mxu0 %v3171_v41  ;;  %v973_v18 = vld [vmem:[#allocation2 + $0xd8] sm:$0xff] }
  0x54   : > { %1775 = vmatpush.bf16.msra.mxu2 %v3154_v56  ;;  %v3168_v56 = vld [vmem:[%s4251_s1 + $0x218] sm:$0xff] }
  0x55   : > { %v961_v52 = vld [vmem:[#allocation2 + $0x48] sm:$0xff]  ;;  %2009 = vmatpush.bf16.msra.mxu3 %v3162_v57 }
  0x56   : > { %v962_v53 = vld [vmem:[#allocation2 + $0x50] sm:$0xff]  ;;  %1540 = vmatpush.bf16.msra.mxu1 %v3146_v58  ;;  %2243 = vmatpush.bf16.msra.mxu0 %v3170_v59  ;;  %v971_v59 = vld [vmem:[#allocation2 + $0xc0] sm:$0xff] }
  0x57   : > { %v991_v55 = vpack.c.bf16 %v962_v53, %v961_v52  ;;  %v729_v60 = vld [vmem:[#allocation2 + $0x4a] sm:$0xff]  ;;  %v730_v61 = vld [vmem:[#allocation2 + $0x52] sm:$0xff] }
  0x58   : > { %v3631_v0 = vpack.c.bf16 %v730_v61, %v729_v60  ;;  %v737_v57 = vld [vmem:[#allocation2 + $0xaa] sm:$0xff]  ;;  %v738_v58 = vld [vmem:[#allocation2 + $0xb2] sm:$0xff] }
  0x59   : > { %2010 = vmatpush.bf16.msra.mxu3 %v3161_v12  ;;  %v972_v60 = vld [vmem:[#allocation2 + $0xc8] sm:$0xff]  ;;  %v3723_v63 = vpack.c.bf16 %v738_v58, %v737_v57 }
  0x5a   : > { %1541 = vmatpush.bf16.msra.mxu1 %v3145_v15  ;;  %2244 = vmatpush.bf16.msra.mxu0 %v3169_v17  ;;  %v3727_v3 = vpack.c.bf16 %v972_v60, %v971_v59  ;;  %v739_v15 = vld [vmem:[#allocation2 + $0xc2] sm:$0xff]  ;;  %v740_v17 = vld [vmem:[#allocation2 + $0xca] sm:$0xff] }
  0x5b   : > { %540 = vmatmul.bf16.gmra.mxu1 %v3589_v27  ;;  %560 = vmatmul.bf16.gmra.mxu2 %v3591_v28  ;;  %v3167_v59 = vld [vmem:[%s4251_s1 + $0x210] sm:$0xff] }
  0x5c   : > { %580 = vmatmul.bf16.gmra.mxu3 %v431_v29 }
  0x5d   : > { %520 = vmatmul.bf16.gmra.mxu0 %v419_v30 }
  0x5e   : > { %2245 = vmatpush.bf16.msra.mxu0 %v3168_v56 }
  0x62   : > { %2246 = vmatpush.bf16.msra.mxu0 %v3167_v59 }
  0x6b   : > { %642 = vmatmul.bf16.vlgmr.msrb.gmra.mxu1 %v3311_v37  ;;  %844 = vmatmul.bf16.vlgmr.msrb.gmra.mxu2 %v755_v35  ;;  %v736_v37 = vld [vmem:[#allocation2 + $0x9a] sm:$0xff] }
  0x6c   : > { %1078 = vmatmul.bf16.vlgmr.msrb.gmra.mxu3 %v989_v36 }
  0x6d   : > { %1312 = vmatmul.bf16.vlgmr.msrb.gmra.mxu0 %v3505_v50  ;;  %v727_v50 = vld [vmem:[#allocation2 + $0x32] sm:$0xff] }
  0x6e   : > { %v3615_v54 = vpack.c.bf16 %v728_v51, %v727_v50  ;;  %v3160_v50 = vld [vmem:[%s4251_s1 + $0x1d8] sm:$0xff] }
  0x6f   : > { %2011 = vmatpush.bf16.msra.mxu3 %v3160_v50 }
  0x7b   : > { %647 = vmatmul.bf16.gmra.mxu1 %v989_v36  ;;  %849 = vmatmul.bf16.gmra.mxu2 %v3608_v46  ;;  %v735_v36 = vld [vmem:[#allocation2 + $0x92] sm:$0xff] }
  0x7c   : > { %1083 = vmatmul.bf16.gmra.mxu3 %v3610_v49  ;;  %v3691_v42 = vpack.c.bf16 %v736_v37, %v735_v36 }
  0x7d   : > { %1317 = vmatmul.bf16.gmra.mxu0 %v3566_v14 }
  0x8b   : > { %652 = vmatmul.bf16.gmra.mxu1 %v3610_v49  ;;  %854 = vmatmul.bf16.gmra.mxu2 %v3615_v54 }
  0x8c   : > { %1088 = vmatmul.bf16.gmra.mxu3 %v991_v55 }
  0x8d   : > { %1322 = vmatmul.bf16.gmra.mxu0 %v419_v30  ;;  %v994_v30 = vpack.c.bf16 %v968_v23, %v967_v22 }
  0x9b   : > { %657 = vmatmul.bf16.gmra.mxu1 %v991_v55  ;;  %859 = vmatmul.bf16.gmra.mxu2 %v3631_v0 }
  0x9c   : > { %1093 = vmatmul.bf16.gmra.mxu3 %v3633_v1 }
  0x9d   : > { %1327 = vmatmul.bf16.gmra.mxu0 %v3421_v19  ;;  %v3153_v19 = vld [vmem:[%s4251_s1 + $0x1a0] sm:$0xff] }
  0x9e   : > { %1776 = vmatpush.bf16.msra.mxu2 %v3153_v19 }
  0xa2   : > { %1777 = vmatpush.bf16.msra.mxu2 %v3152_v45 }
  0xa8   : > { %v3640_v7 = vpop.f32.mrf.mxu1 }
  0xaa   : > { %v3642_v9 = vpop.f32.mrf.mxu0 }
  0xab   : > { %662 = vmatmul.bf16.gmra.mxu1 %v3633_v1  ;;  %864 = vmatmul.bf16.gmra.mxu2 %v3638_v6 }
  0xac   : > { %1098 = vmatmul.bf16.gmra.mxu3 %v993_v8 }
  0xad   : > { %1332 = vmatmul.bf16.gmra.mxu0 %v3501_v47 }
  0xae   : > { %v3653_v13 = vpop.f32.mrf.mxu2 }
  0xaf   : > { %v3655_v14 = vpop.f32.mrf.mxu3 }
  0xb0   : > { %v3660_v16 = vpop.f32.mrf.mxu1 }
  0xb2   : > { %v3662_v47 = vpop.f32.mrf.mxu0 }
  0xb6   : > { %v3667_v24 = vpop.f32.mrf.mxu2 }
  0xb7   : > { %v3669_v25 = vpop.f32.mrf.mxu3 }
  0xb8   : > { %v3673_v29 = vpop.f32.mrf.mxu1 }
  0xba   : > { %v3675_v31 = vpop.f32.mrf.mxu0 }
  0xbb   : > { %667 = vmatmul.bf16.gmra.mxu1 %v993_v8  ;;  %869 = vmatmul.bf16.gmra.mxu2 %v3671_v26 }
  0xbc   : > { %1103 = vmatmul.bf16.gmra.mxu3 %v994_v30 }
  0xbd   : > { %1337 = vmatmul.bf16.gmra.mxu0 %v3561_v10  ;;  %v995_v10 = vpack.c.bf16 %v970_v39, %v969_v38  ;;  %v3151_v39 = vld [vmem:[%s4251_s1 + $0x190] sm:$0xff] }
  0xbe   : > { %v3679_v32 = vpop.f32.mrf.mxu2  ;;  %1778 = vmatpush.bf16.msra.mxu2 %v3151_v39 }
  0xbf   : > { %v3681_v33 = vpop.f32.mrf.mxu3 }
  0xc0   : > { %v3683_v34 = vpop.f32.mrf.mxu1 }
  0xc2   : > { %v3685_v35 = vpop.f32.mrf.mxu0 }
  0xc6   : > { %v3687_v40 = vpop.f32.mrf.mxu2 }
  0xc7   : > { %v3689_v41 = vpop.f32.mrf.mxu3 }
  0xc8   : > { %v3693_v43 = vpop.f32.mrf.mxu1 }
  0xca   : > { %v3695_v44 = vpop.f32.mrf.mxu0 }
  0xcb   : > { %672 = vmatmul.bf16.gmra.mxu1 %v994_v30  ;;  %874 = vmatmul.bf16.gmra.mxu2 %v3691_v42  ;;  %v3746_v30 = vpack.c.bf16 %v740_v17, %v739_v15  ;;  %v741_v15 = vld [vmem:[#allocation2 + $0xda] sm:$0xff]  ;;  %v742_v17 = vld [vmem:[#allocation2 + $0xe2] sm:$0xff] }
  0xcc   : > { %1108 = vmatmul.bf16.gmra.mxu3 %v995_v10  ;;  %v3767_v39 = vpack.c.bf16 %v742_v17, %v741_v15 }
  0xcd   : > { %1342 = vmatmul.bf16.gmra.mxu0 %v3589_v27  ;;  %v3144_v27 = vld [vmem:[%s4251_s1 + $0x158] sm:$0xff] }
  0xce   : > { %v3705_v51 = vpop.f32.mrf.mxu2  ;;  %1542 = vmatpush.bf16.msra.mxu1 %v3144_v27 }
  0xcf   : > { %v3707_v52 = vpop.f32.mrf.mxu3 }
  0xd0   : > { %v3709_v53 = vpop.f32.mrf.mxu1 }
  0xd2   : > { %v3711_v55 = vpop.f32.mrf.mxu0 }
  0xd6   : > { %v3719_v61 = vpop.f32.mrf.mxu2 }
  0xd7   : > { %v3721_v62 = vpop.f32.mrf.mxu3 }
  0xd8   : > { %v3725_v2 = vpop.f32.mrf.mxu1 }
  0xda   : > { %v3729_v4 = vpop.f32.mrf.mxu0 }
  0xdb   : > { %677 = vmatmul.bf16.gmra.mxu1 %v995_v10  ;;  %879 = vmatmul.bf16.gmra.mxu2 %v3723_v63  ;;  %v3159_v10 = vld [vmem:[%s4251_s1 + $0x1d0] sm:$0xff] }
  0xdc   : > { %1113 = vmatmul.bf16.gmra.mxu3 %v3727_v3 }
  0xdd   : > { %1347 = vmatmul.bf16.gmra.mxu0 %v3423_v20  ;;  %v997_v20 = vpack.c.bf16 %v974_v21, %v973_v18  ;;  %2012 = vmatpush.bf16.msra.mxu3 %v3159_v10  ;;  %v975_v18 = vld [vmem:[#allocation2 + $0xf0] sm:$0xff]  ;;  %v976_v21 = vld [vmem:[#allocation2 + $0xf8] sm:$0xff] }
  0xde   : > { %v3734_v5 = vpop.f32.mrf.mxu2 }
  0xdf   : > { %v3736_v8 = vpop.f32.mrf.mxu3 }
  0xe0   : > { %v3738_v19 = vpop.f32.mrf.mxu1 }
  0xe2   : > { %v3740_v12 = vpop.f32.mrf.mxu0 }
  0xe6   : > { %v3742_v22 = vpop.f32.mrf.mxu2 }
  0xe7   : > { %v3744_v23 = vpop.f32.mrf.mxu3 }
  0xe8   : > { %v643_v36 = vpop.f32.mrf.mxu1 }
  0xe9   : > { %v644_v37 = vadd.f32 %v643_v36, %v3642_v9 }
  0xea   : > { %v1313_v38 = vpop.f32.mrf.mxu0 }
  0xeb   : > { %682 = vmatmul.bf16.gmra.mxu1 %v3727_v3  ;;  %884 = vmatmul.bf16.gmra.mxu2 %v3746_v30 }
  0xec   : > { %1118 = vmatmul.bf16.gmra.mxu3 %v997_v20 }
  0xed   : > { %1352 = vmatmul.bf16.gmra.mxu0 %v3503_v48  ;;  %v3143_v48 = vld [vmem:[%s4251_s1 + $0x150] sm:$0xff] }
  0xee   : > { %v845_v45 = vpop.f32.mrf.mxu2  ;;  %1543 = vmatpush.bf16.msra.mxu1 %v3143_v48 }
  0xef   : > { %v925_v9 = vadd.f32 %v845_v45, %v644_v37  ;;  %v1079_v50 = vpop.f32.mrf.mxu3  ;;  %v3769_v45 = vpack.c.bf16 %v976_v21, %v975_v18 }
  0xf0   : > { %v645_v27 = vpop.f32.mrf.mxu1 }
  0xf1   : > { %v1159_v56 = vadd.f32 %v1079_v50, %v925_v9  ;;  %v646_v57 = vadd.f32 %v645_v27, %v3662_v47 }
  0xf2   : > { %v1315_v58 = vpop.f32.mrf.mxu0 }
  0xf3   : > { %v3765_v60 = vadd.f32 %v1313_v38, %v1159_v56 }
  0xf6   : > { %v847_v36 = vpop.f32.mrf.mxu2 }
  0xf7   : > { %v926_v37 = vadd.f32 %v847_v36, %v646_v57  ;;  %v1081_v47 = vpop.f32.mrf.mxu3  ;;  %v977_v36 = vld [vmem:[#allocation2 + $0x108] sm:$0xff] }
  0xf8   : > { %v648_v10 = vpop.f32.mrf.mxu1 }
  0xf9   : > { %v1160_v9 = vadd.f32 %v1081_v47, %v926_v37  ;;  %v649_v50 = vadd.f32 %v648_v10, %v3675_v31  ;;  %v743_v31 = vld [vmem:[#allocation2 + $0xf2] sm:$0xff] }
  0xfa   : > { %v1318_v27 = vpop.f32.mrf.mxu0  ;;  %v978_v37 = vld [vmem:[#allocation2 + $0x110] sm:$0xff] }
  0xfb   : > { %687 = vmatmul.bf16.gmra.mxu1 %v997_v20  ;;  %889 = vmatmul.bf16.gmra.mxu2 %v3767_v39  ;;  %v3773_v38 = vadd.f32 %v1315_v58, %v1160_v9  ;;  %v744_v20 = vld [vmem:[#allocation2 + $0xfa] sm:$0xff] }
  0xfc   : > { %1123 = vmatmul.bf16.gmra.mxu3 %v3769_v45  ;;  %v3780_v9 = vpack.c.bf16 %v744_v20, %v743_v31 }
  0xfd   : > { %4263 = vst [vmem:[#allocation3_spill] sm:$0xff] %v3773_v38  ;;  %1357 = vmatmul.bf16.gmra.mxu0 %v3563_v11  ;;  %v3782_v38 = vpack.c.bf16 %v978_v37, %v977_v36  ;;  %v3166_v36 = vld [vmem:[%s4251_s1 + $0x208] sm:$0xff] }
  0xfe   : > { %v850_v56 = vpop.f32.mrf.mxu2  ;;  %2247 = vmatpush.bf16.msra.mxu0 %v3166_v36 }
  0xff   : > { %v927_v57 = vadd.f32 %v850_v56, %v649_v50  ;;  %v1084_v48 = vpop.f32.mrf.mxu3 }
 0x100   : > { %v650_v59 = vpop.f32.mrf.mxu1 }
 0x101   : > { %v1161_v15 = vadd.f32 %v1084_v48, %v927_v57  ;;  %v651_v17 = vadd.f32 %v650_v59, %v3685_v35  ;;  %v3158_v48 = vld [vmem:[%s4251_s1 + $0x1c8] sm:$0xff] }
 0x102   : > { %v1320_v18 = vpop.f32.mrf.mxu0  ;;  %2013 = vmatpush.bf16.msra.mxu3 %v3158_v48 }
 0x103   : > { %v3778_v21 = vadd.f32 %v1318_v27, %v1161_v15  ;;  %v3150_v27 = vld [vmem:[%s4251_s1 + $0x188] sm:$0xff] }
 0x104   : > { %1779 = vmatpush.bf16.msra.mxu2 %v3150_v27 }
 0x106   : > { %v852_v58 = vpop.f32.mrf.mxu2 }
 0x107   : > { %v928_v47 = vadd.f32 %v852_v58, %v651_v17  ;;  %v1086_v10 = vpop.f32.mrf.mxu3  ;;  %v745_v58 = vld [vmem:[#allocation2 + $0x10a] sm:$0xff] }
 0x108   : > { %v653_v11 = vpop.f32.mrf.mxu1 }
 0x109   : > { %v1162_v50 = vadd.f32 %v1086_v10, %v928_v47  ;;  %v654_v56 = vadd.f32 %v653_v11, %v3695_v44  ;;  %v746_v47 = vld [vmem:[#allocation2 + $0x112] sm:$0xff]  ;;  %v979_v10 = vld [vmem:[#allocation2 + $0x120] sm:$0xff]  ;;  %v980_v11 = vld [vmem:[#allocation2 + $0x128] sm:$0xff] }
 0x10a   : > { %v1323_v57 = vpop.f32.mrf.mxu0 }
 0x10b   : > { %692 = vmatmul.bf16.gmra.mxu1 %v3769_v45  ;;  %894 = vmatmul.bf16.gmra.mxu2 %v3780_v9  ;;  %v3787_v35 = vadd.f32 %v1320_v18, %v1162_v50  ;;  %v1213_v50 = vld [vmem:[#allocation2 + $0x121] sm:$0xff] }
 0x10c   : > { %1128 = vmatmul.bf16.gmra.mxu3 %v3782_v38 }
 0x10d   : > { %4264 = vst [vmem:[#allocation4_spill] sm:$0xff] %v3787_v35  ;;  %1362 = vmatmul.bf16.gmra.mxu0 %v3591_v28  ;;  %v3142_v28 = vld [vmem:[%s4251_s1 + $0x148] sm:$0xff] }
 0x10e   : > { %v855_v44 = vpop.f32.mrf.mxu2  ;;  %1544 = vmatpush.bf16.msra.mxu1 %v3142_v28 }
 0x10f   : > { %v929_v59 = vadd.f32 %v855_v44, %v654_v56  ;;  %v1089_v15 = vpop.f32.mrf.mxu3  ;;  %v1214_v56 = vld [vmem:[#allocation2 + $0x129] sm:$0xff]  ;;  %v3806_v44 = vpack.c.bf16 %v746_v47, %v745_v58 }
 0x110   : > { %v655_v17 = vpop.f32.mrf.mxu1 }
 0x111   : > { %v1163_v18 = vadd.f32 %v1089_v15, %v929_v59  ;;  %v656_v31 = vadd.f32 %v655_v17, %v3711_v55  ;;  %v3808_v15 = vpack.c.bf16 %v980_v11, %v979_v10  ;;  %v3810_v17 = vpack.c.bf16 %v1214_v56, %v1213_v50 }
 0x112   : > { %v1325_v20 = vpop.f32.mrf.mxu0 }
 0x113   : > { %v3804_v37 = vadd.f32 %v1323_v57, %v1163_v18  ;;  %4266 = vst [vmem:[#allocation6_spill] sm:$0xff] %v3810_v17 }
 0x115   : > { %4265 = vst [vmem:[#allocation5_spill] sm:$0xff] %v3804_v37 }
 0x116   : > { %v857_v55 = vpop.f32.mrf.mxu2 }
 0x117   : > { %v930_v27 = vadd.f32 %v857_v55, %v656_v31  ;;  %v1091_v48 = vpop.f32.mrf.mxu3  ;;  %v747_v55 = vld [vmem:[#allocation2 + $0x122] sm:$0xff] }
 0x118   : > { %v658_v59 = vpop.f32.mrf.mxu1 }
 0x119   : > { %v1164_v28 = vadd.f32 %v1091_v48, %v930_v27  ;;  %v659_v57 = vadd.f32 %v658_v59, %v3729_v4  ;;  %v748_v27 = vld [vmem:[#allocation2 + $0x12a] sm:$0xff]  ;;  %v981_v48 = vld [vmem:[#allocation2 + $0x138] sm:$0xff]  ;;  %v982_v59 = vld [vmem:[#allocation2 + $0x140] sm:$0xff] }
 0x11a   : > { %v1328_v18 = vpop.f32.mrf.mxu0 }
 0x11b   : > { %697 = vmatmul.bf16.gmra.mxu1 %v3782_v38  ;;  %899 = vmatmul.bf16.gmra.mxu2 %v3806_v44  ;;  %v3815_v36 = vadd.f32 %v1325_v20, %v1164_v28  ;;  %v1215_v20 = vld [vmem:[#allocation2 + $0x139] sm:$0xff]  ;;  %v1216_v28 = vld [vmem:[#allocation2 + $0x141] sm:$0xff] }
 0x11c   : > { %1133 = vmatmul.bf16.gmra.mxu3 %v3808_v15 }
 0x11d   : > { %4267 = vst [vmem:[#allocation7_spill] sm:$0xff] %v3815_v36  ;;  %1367 = vmatmul.bf16.gmra.mxu0 %v3810_v17  ;;  %v3822_v17 = vpack.c.bf16 %v748_v27, %v747_v55 }
 0x11e   : > { %v860_v31 = vpop.f32.mrf.mxu2 }
 0x11f   : > { %v931_v58 = vadd.f32 %v860_v31, %v659_v57  ;;  %v1094_v47 = vpop.f32.mrf.mxu3  ;;  %4269 = vst [vmem:[#allocation9_spill] sm:$0xff] %v3822_v17  ;;  %v3824_v31 = vpack.c.bf16 %v982_v59, %v981_v48  ;;  %v3141_v48 = vld [vmem:[%s4251_s1 + $0x140] sm:$0xff] }
 0x120   : > { %v660_v10 = vpop.f32.mrf.mxu1  ;;  %v3165_v59 = vld [vmem:[%s4251_s1 + $0x200] sm:$0xff]  ;;  %1545 = vmatpush.bf16.msra.mxu1 %v3141_v48 }
 0x121   : > { %v1165_v11 = vadd.f32 %v1094_v47, %v931_v58  ;;  %v661_v50 = vadd.f32 %v660_v10, %v3740_v12  ;;  %4270 = vst [vmem:[#allocation10_spill] sm:$0xff] %v3824_v31  ;;  %v3826_v58 = vpack.c.bf16 %v1216_v28, %v1215_v20  ;;  %v3848_v20 = vld [vmem:[%s3365_s25 + $0xf0] sm:$0xff]  ;;  %v3851_v28 = vld [vmem:[%s3365_s25 + $0xf8] sm:$0xff]  ;;  %2248 = vmatpush.bf16.msra.mxu0 %v3165_v59  ;;  %s2680_s25 = sshll.u32 %s3343_s16, 5 }
 0x122   : > { %v1330_v56 = vpop.f32.mrf.mxu0  ;;  %318 = vst [vmem:[#allocation2 + $0x181] sm:$0xff] %v3848_v20  ;;  %p205_p4 = scmp.lt.s32.totalorder %s2680_s25, 63 }
 0x123   : > { %v3820_v4 = vadd.f32 %v1328_v18, %v1165_v11  ;;  %4271 = vst [vmem:[#allocation11_spill] sm:$0xff] %v3826_v58 }
 0x124   : > { %319 = vst [vmem:[#allocation2 + $0x189] sm:$0xff] %v3851_v28  ;;  %s4300_s25 = smov (!%p205_p4, %s2680_s25), 63 }
 0x125   : > { %4268 = vst [vmem:[#allocation8_spill] sm:$0xff] %v3820_v4  ;;  %s2681_s8 = sshll.u32 %s4300_s25, 2 }
 0x126   : > { %v862_v36 = vpop.f32.mrf.mxu2  ;;  %s3987_s10 = scalar_lea.vmem %s4252_s2, %s2681_s8 }
 0x127   : > { %v932_v37 = vadd.f32 %v862_v36, %v661_v50  ;;  %v1096_v35 = vpop.f32.mrf.mxu3  ;;  %v3149_v36 = vld [vmem:[%s4251_s1 + $0x180] sm:$0xff] }
 0x128   : > { %v663_v57 = vpop.f32.mrf.mxu1  ;;  %1780 = vmatpush.bf16.msra.mxu2 %v3149_v36  ;;  %v983_v36 = vld [vmem:[#allocation2 + $0x150] sm:$0xff] }
 0x129   : > { %v1166_v12 = vadd.f32 %v1096_v35, %v932_v37  ;;  %v3157_v35 = vld [vmem:[%s4251_s1 + $0x1c0] sm:$0xff]  ;;  %v664_v37 = vadd.f32 %v663_v57, %v3640_v7 }
 0x12a   : > { %v1333_v47 = vpop.f32.mrf.mxu0  ;;  %2014 = vmatpush.bf16.msra.mxu3 %v3157_v35  ;;  %v749_v57 = vld [vmem:[#allocation2 + $0x13a] sm:$0xff] }
 0x12b   : > { %702 = vmatmul.bf16.gmra.mxu1 %v3808_v15  ;;  %904 = vmatmul.bf16.gmra.mxu2 %v3822_v17  ;;  %v3830_v18 = vadd.f32 %v1330_v56, %v1166_v12  ;;  %v750_v12 = vld [vmem:[#allocation2 + $0x142] sm:$0xff] }
 0x12c   : > { %1138 = vmatmul.bf16.gmra.mxu3 %v3824_v31 }
 0x12d   : > { %4272 = vst [vmem:[#allocation12_spill] sm:$0xff] %v3830_v18  ;;  %1372 = vmatmul.bf16.gmra.mxu0 %v3826_v58  ;;  %v3858_v58 = vpack.c.bf16 %v750_v12, %v749_v57 }
 0x12e   : > { %v865_v10 = vpop.f32.mrf.mxu2 }
 0x12f   : > { %v933_v11 = vadd.f32 %v865_v10, %v664_v37  ;;  %v1099_v50 = vpop.f32.mrf.mxu3  ;;  %v984_v37 = vld [vmem:[#allocation2 + $0x158] sm:$0xff]  ;;  %4274 = vst [vmem:[#allocation14_spill] sm:$0xff] %v3858_v58 }
 0x130   : > { %v665_v56 = vpop.f32.mrf.mxu1  ;;  %v1217_v10 = vld [vmem:[#allocation2 + $0x151] sm:$0xff]  ;;  %v3860_v48 = vpack.c.bf16 %v984_v37, %v983_v36 }
 0x131   : > { %v1167_v55 = vadd.f32 %v1099_v50, %v933_v11  ;;  %v666_v35 = vadd.f32 %v665_v56, %v3660_v16  ;;  %v1218_v11 = vld [vmem:[#allocation2 + $0x159] sm:$0xff] }
 0x132   : > { %v1335_v27 = vpop.f32.mrf.mxu0  ;;  %v3862_v59 = vpack.c.bf16 %v1218_v11, %v1217_v10  ;;  %v752_v11 = vld [vmem:[#allocation2 + $0x15a] sm:$0xff] }
 0x133   : > { %v3855_v7 = vadd.f32 %v1333_v47, %v1167_v55 }
 0x134   : > { %4275 = vst [vmem:[#allocation15_spill] sm:$0xff] %v3862_v59 }
 0x135   : > { %4273 = vst [vmem:[#allocation13_spill] sm:$0xff] %v3855_v7  ;;  %v1220_v7 = vld [vmem:[#allocation2 + $0x171] sm:$0xff] }
 0x136   : > { %v867_v50 = vpop.f32.mrf.mxu2 }
 0x137   : > { %v934_v18 = vadd.f32 %v867_v50, %v666_v35  ;;  %v1101_v4 = vpop.f32.mrf.mxu3  ;;  %v985_v50 = vld [vmem:[#allocation2 + $0x168] sm:$0xff] }
 0x138   : > { %v668_v17 = vpop.f32.mrf.mxu1 }
 0x139   : > { %v1168_v47 = vadd.f32 %v1101_v4, %v934_v18  ;;  %v669_v56 = vadd.f32 %v668_v17, %v3673_v29  ;;  %v751_v18 = vld [vmem:[#allocation2 + $0x152] sm:$0xff] }
 0x13a   : > { %v1338_v55 = vpop.f32.mrf.mxu0  ;;  %v3874_v29 = vpack.c.bf16 %v752_v11, %v751_v18  ;;  %v754_v11 = vld [vmem:[#allocation2 + $0x172] sm:$0xff] }
 0x13b   : > { %707 = vmatmul.bf16.gmra.mxu1 %v3824_v31  ;;  %909 = vmatmul.bf16.gmra.mxu2 %v3858_v58  ;;  %v3866_v16 = vadd.f32 %v1335_v27, %v1168_v47  ;;  %v986_v47 = vld [vmem:[#allocation2 + $0x170] sm:$0xff] }
 0x13c   : > { %1143 = vmatmul.bf16.gmra.mxu3 %v3860_v48 }
 0x13d   : > { %4276 = vst [vmem:[#allocation16_spill] sm:$0xff] %v3866_v16  ;;  %1377 = vmatmul.bf16.gmra.mxu0 %v3862_v59  ;;  %v1219_v16 = vld [vmem:[#allocation2 + $0x169] sm:$0xff] }
 0x13e   : > { %v870_v57 = vpop.f32.mrf.mxu2 }
 0x13f   : > { %v935_v12 = vadd.f32 %v870_v57, %v669_v56  ;;  %v1104_v36 = vpop.f32.mrf.mxu3  ;;  %v3876_v56 = vpack.c.bf16 %v986_v47, %v985_v50  ;;  %v3878_v57 = vpack.c.bf16 %v1220_v7, %v1219_v16 }
 0x140   : > { %v670_v35 = vpop.f32.mrf.mxu1 }
 0x141   : > { %v1169_v37 = vadd.f32 %v1104_v36, %v935_v12  ;;  %v671_v27 = vadd.f32 %v670_v35, %v3683_v34 }
 0x142   : > { %v1340_v10 = vpop.f32.mrf.mxu0 }
 0x143   : > { %v3871_v4 = vadd.f32 %v1338_v55, %v1169_v37 }
 0x145   : > { %4277 = vst [vmem:[#allocation17_spill] sm:$0xff] %v3871_v4 }
 0x146   : > { %v872_v58 = vpop.f32.mrf.mxu2 }
 0x147   : > { %v936_v59 = vadd.f32 %v872_v58, %v671_v27  ;;  %v1106_v31 = vpop.f32.mrf.mxu3  ;;  %v988_v27 = vld [vmem:[#allocation2 + $0x188] sm:$0xff] }
 0x148   : > { %v673_v17 = vpop.f32.mrf.mxu1 }
 0x149   : > { %v1170_v55 = vadd.f32 %v1106_v31, %v936_v59  ;;  %v674_v58 = vadd.f32 %v673_v17, %v3693_v43  ;;  %v753_v59 = vld [vmem:[#allocation2 + $0x16a] sm:$0xff] }
 0x14a   : > { %v1343_v12 = vpop.f32.mrf.mxu0  ;;  %v3890_v4 = vpack.c.bf16 %v754_v11, %v753_v59 }
 0x14b   : > { %712 = vmatmul.bf16.gmra.mxu1 %v3860_v48  ;;  %914 = vmatmul.bf16.gmra.mxu2 %v3874_v29  ;;  %v3882_v34 = vadd.f32 %v1340_v10, %v1170_v55  ;;  %v987_v10 = vld [vmem:[#allocation2 + $0x180] sm:$0xff] }
 0x14c   : > { %1148 = vmatmul.bf16.gmra.mxu3 %v3876_v56  ;;  %v3892_v17 = vpack.c.bf16 %v988_v27, %v987_v10  ;;  %v1895_v10 = vld [vmem:[#allocation2 + $0x39] sm:$0xff] }
 0x14d   : > { %4278 = vst [vmem:[#allocation18_spill] sm:$0xff] %v3882_v34  ;;  %1382 = vmatmul.bf16.gmra.mxu0 %v3878_v57 }
 0x14e   : > { %v875_v36 = vpop.f32.mrf.mxu2 }
 0x14f   : > { %v937_v35 = vadd.f32 %v875_v36, %v674_v58  ;;  %v1109_v37 = vpop.f32.mrf.mxu3  ;;  %v3896_v58 = vpack.c.bf16 %v3851_v28, %v3848_v20 }
 0x150   : > { %v675_v18 = vpop.f32.mrf.mxu1 }
 0x151   : > { %v1171_v7 = vadd.f32 %v1109_v37, %v937_v35  ;;  %v676_v50 = vadd.f32 %v675_v18, %v3709_v53 }
 0x152   : > { %v1345_v16 = vpop.f32.mrf.mxu0 }
 0x153   : > { %v3887_v31 = vadd.f32 %v1343_v12, %v1171_v7 }
 0x155   : > { %4279 = vst [vmem:[#allocation19_spill] sm:$0xff] %v3887_v31 }
 0x156   : > { %v877_v47 = vpop.f32.mrf.mxu2 }
 0x157   : > { %v938_v55 = vadd.f32 %v877_v47, %v676_v50  ;;  %v1111_v34 = vpop.f32.mrf.mxu3  ;;  %v1894_v50 = vld [vmem:[#allocation2 + $0x31] sm:$0xff] }
 0x158   : > { %v678_v43 = vpop.f32.mrf.mxu1 }
 0x159   : > { %v1172_v12 = vadd.f32 %v1111_v34, %v938_v55  ;;  %v679_v35 = vadd.f32 %v678_v43, %v3725_v2 }
 0x15a   : > { %v1348_v36 = vpop.f32.mrf.mxu0 }
 0x15b   : > { %717 = vmatmul.bf16.gmra.mxu1 %v3876_v56  ;;  %919 = vmatmul.bf16.gmra.mxu2 %v3890_v4  ;;  %v3900_v53 = vadd.f32 %v1345_v16, %v1172_v12  ;;  %v1926_v12 = vpack.c.bf16 %v1895_v10, %v1894_v50  ;;  %v1663_v50 = vld [vmem:[#allocation2 + $0x50] sm:$0xff] }
 0x15c   : > { %1153 = vmatmul.bf16.gmra.mxu3 %v3892_v17 }
 0x15d   : > { %4280 = vst [vmem:[#allocation20_spill] sm:$0xff] %v3900_v53  ;;  %1387 = vmatmul.bf16.gmra.mxu0 %v3896_v58 }
 0x15e   : > { %v880_v37 = vpop.f32.mrf.mxu2 }
 0x15f   : > { %v939_v18 = vadd.f32 %v880_v37, %v679_v35  ;;  %v1114_v7 = vpop.f32.mrf.mxu3 }
 0x160   : > { %v680_v59 = vpop.f32.mrf.mxu1 }
 0x161   : > { %v1173_v20 = vadd.f32 %v1114_v7, %v939_v18  ;;  %v681_v11 = vadd.f32 %v680_v59, %v3738_v19  ;;  %v1427_v59 = vld [vmem:[#allocation2 + $0x32] sm:$0xff] }
 0x162   : > { %v1350_v28 = vpop.f32.mrf.mxu0 }
 0x163   : > { %v3905_v34 = vadd.f32 %v1348_v36, %v1173_v20 }
 0x166   : > { %v882_v16 = vpop.f32.mrf.mxu2 }
 0x167   : > { %v940_v27 = vadd.f32 %v882_v16, %v681_v11  ;;  %v1116_v47 = vpop.f32.mrf.mxu3  ;;  %v1428_v11 = vld [vmem:[#allocation2 + $0x3a] sm:$0xff] }
 0x168   : > { %v683_v55 = vpop.f32.mrf.mxu1 }
 0x169   : > { %v1174_v53 = vadd.f32 %v1116_v47, %v940_v27  ;;  %v684_v19 = vadd.f32 %v683_v55, %v3653_v13  ;;  %v1458_v13 = vpack.c.bf16 %v1428_v11, %v1427_v59 }
 0x16a   : > { %v1353_v31 = vpop.f32.mrf.mxu0 }
 0x16b   : > { %1546 = vmatmul.bf16.vlgmr.msra.gmra.mxu1 %v3608_v46  ;;  %1781 = vmatmul.bf16.vlgmr.msra.gmra.mxu2 %v3610_v49  ;;  %v3910_v2 = vadd.f32 %v1350_v28, %v1174_v53  ;;  %v1662_v46 = vld [vmem:[#allocation2 + $0x48] sm:$0xff]  ;;  %v1897_v28 = vld [vmem:[#allocation2 + $0x51] sm:$0xff] }
 0x16c   : > { %2015 = vmatmul.bf16.vlgmr.msra.gmra.mxu3 %v1926_v12  ;;  %v1896_v53 = vld [vmem:[#allocation2 + $0x49] sm:$0xff]  ;;  %v1693_v27 = vpack.c.bf16 %v1663_v50, %v1662_v46  ;;  %v1898_v50 = vld [vmem:[#allocation2 + $0x61] sm:$0xff] }
 0x16d   : > { %2249 = vmatmul.bf16.vlgmr.msra.gmra.mxu0 %v3615_v54  ;;  %v1927_v55 = vpack.c.bf16 %v1897_v28, %v1896_v53 }
 0x16e   : > { %v885_v43 = vpop.f32.mrf.mxu2 }
 0x16f   : > { %v941_v36 = vadd.f32 %v885_v43, %v684_v19  ;;  %v1119_v35 = vpop.f32.mrf.mxu3 }
 0x170   : > { %v685_v37 = vpop.f32.mrf.mxu1 }
 0x171   : > { %v1175_v18 = vadd.f32 %v1119_v35, %v941_v36  ;;  %v686_v49 = vadd.f32 %v685_v37, %v3667_v24 }
 0x172   : > { %v1355_v7 = vpop.f32.mrf.mxu0 }
 0x173   : > { %v3914_v20 = vadd.f32 %v1353_v31, %v1175_v18 }
 0x176   : > { %v887_v10 = vpop.f32.mrf.mxu2 }
 0x177   : > { %v942_v54 = vadd.f32 %v887_v10, %v686_v49  ;;  %v1121_v16 = vpop.f32.mrf.mxu3  ;;  %v1899_v49 = vld [vmem:[#allocation2 + $0x69] sm:$0xff] }
 0x178   : > { %v688_v47 = vpop.f32.mrf.mxu1 }
 0x179   : > { %v1176_v12 = vadd.f32 %v1121_v16, %v942_v54  ;;  %v689_v24 = vadd.f32 %v688_v47, %v3679_v32  ;;  %v1928_v54 = vpack.c.bf16 %v1899_v49, %v1898_v50 }
 0x17a   : > { %v1358_v19 = vpop.f32.mrf.mxu0 }
 0x17b   : > { %1551 = vmatmul.bf16.gmra.mxu1 %v1458_v13  ;;  %1786 = vmatmul.bf16.gmra.mxu2 %v1693_v27  ;;  %v3917_v31 = vadd.f32 %v1355_v7, %v1176_v12 }
 0x17c   : > { %2020 = vmatmul.bf16.gmra.mxu3 %v1927_v55 }
 0x17d   : > { %2254 = vmatmul.bf16.gmra.mxu0 %v3631_v0 }
 0x17e   : > { %v890_v43 = vpop.f32.mrf.mxu2 }
 0x17f   : > { %v943_v36 = vadd.f32 %v890_v43, %v689_v24  ;;  %v1124_v35 = vpop.f32.mrf.mxu3  ;;  %v1431_v43 = vld [vmem:[#allocation2 + $0x62] sm:$0xff] }
 0x180   : > { %v690_v37 = vpop.f32.mrf.mxu1 }
 0x181   : > { %v1177_v18 = vadd.f32 %v1124_v35, %v943_v36  ;;  %v691_v46 = vadd.f32 %v690_v37, %v3687_v40  ;;  %v1432_v35 = vld [vmem:[#allocation2 + $0x6a] sm:$0xff]  ;;  %v1667_v37 = vld [vmem:[#allocation2 + $0x80] sm:$0xff] }
 0x182   : > { %v1360_v59 = vpop.f32.mrf.mxu0 }
 0x183   : > { %v3921_v11 = vadd.f32 %v1358_v19, %v1177_v18  ;;  %v1900_v18 = vld [vmem:[#allocation2 + $0x79] sm:$0xff] }
 0x186   : > { %v892_v53 = vpop.f32.mrf.mxu2 }
 0x187   : > { %v944_v7 = vadd.f32 %v892_v53, %v691_v46  ;;  %v1126_v28 = vpop.f32.mrf.mxu3 }
 0x188   : > { %v693_v10 = vpop.f32.mrf.mxu1 }
 0x189   : > { %v1178_v16 = vadd.f32 %v1126_v28, %v944_v7  ;;  %v694_v40 = vadd.f32 %v693_v10, %v3705_v51  ;;  %v1460_v51 = vpack.c.bf16 %v1432_v35, %v1431_v43  ;;  %v1434_v43 = vld [vmem:[#allocation2 + $0x82] sm:$0xff]  ;;  %v1668_v35 = vld [vmem:[#allocation2 + $0x90] sm:$0xff] }
 0x18a   : > { %v1363_v13 = vpop.f32.mrf.mxu0 }
 0x18b   : > { %1556 = vmatmul.bf16.gmra.mxu1 %v3631_v0  ;;  %1791 = vmatmul.bf16.gmra.mxu2 %v3633_v1  ;;  %v3926_v32 = vadd.f32 %v1360_v59, %v1178_v16  ;;  %v1666_v0 = vld [vmem:[#allocation2 + $0x78] sm:$0xff]  ;;  %v1901_v59 = vld [vmem:[#allocation2 + $0x81] sm:$0xff] }
 0x18c   : > { %2025 = vmatmul.bf16.gmra.mxu3 %v1928_v54  ;;  %v1695_v49 = vpack.c.bf16 %v1667_v37, %v1666_v0  ;;  %v1929_v7 = vpack.c.bf16 %v1901_v59, %v1900_v18  ;;  %v1669_v0 = vld [vmem:[#allocation2 + $0x98] sm:$0xff] }
 0x18d   : > { %2259 = vmatmul.bf16.gmra.mxu0 %v3638_v6  ;;  %v1902_v37 = vld [vmem:[#allocation2 + $0x91] sm:$0xff] }
 0x18e   : > { %v895_v27 = vpop.f32.mrf.mxu2 }
 0x18f   : > { %v945_v47 = vadd.f32 %v895_v27, %v694_v40  ;;  %v1129_v55 = vpop.f32.mrf.mxu3 }
 0x190   : > { %v695_v12 = vpop.f32.mrf.mxu1 }
 0x191   : > { %v1179_v19 = vadd.f32 %v1129_v55, %v945_v47  ;;  %v696_v1 = vadd.f32 %v695_v12, %v3719_v61  ;;  %v1433_v12 = vld [vmem:[#allocation2 + $0x7a] sm:$0xff] }
 0x192   : > { %v1365_v24 = vpop.f32.mrf.mxu0 }
 0x193   : > { %v3930_v36 = vadd.f32 %v1363_v13, %v1179_v19 }
 0x196   : > { %v897_v46 = vpop.f32.mrf.mxu2 }
 0x197   : > { %v946_v6 = vadd.f32 %v897_v46, %v696_v1  ;;  %v1131_v50 = vpop.f32.mrf.mxu3  ;;  %v1903_v1 = vld [vmem:[#allocation2 + $0x99] sm:$0xff]  ;;  %v1696_v46 = vpack.c.bf16 %v1669_v0, %v1668_v35  ;;  %v1904_v35 = vld [vmem:[#allocation2 + $0xa9] sm:$0xff]  ;;  %v1905_v0 = vld [vmem:[#allocation2 + $0xb1] sm:$0xff] }
 0x198   : > { %v698_v53 = vpop.f32.mrf.mxu1 }
 0x199   : > { %v1180_v28 = vadd.f32 %v1131_v50, %v946_v6  ;;  %v699_v61 = vadd.f32 %v698_v53, %v3734_v5  ;;  %v1461_v5 = vpack.c.bf16 %v1434_v43, %v1433_v12  ;;  %v1930_v50 = vpack.c.bf16 %v1903_v1, %v1902_v37  ;;  %v1670_v12 = vld [vmem:[#allocation2 + $0xa8] sm:$0xff]  ;;  %v1671_v43 = vld [vmem:[#allocation2 + $0xb0] sm:$0xff] }
 0x19a   : > { %v1368_v10 = vpop.f32.mrf.mxu0  ;;  %v1697_v1 = vpack.c.bf16 %v1671_v43, %v1670_v12 }
 0x19b   : > { %1561 = vmatmul.bf16.gmra.mxu1 %v1460_v51  ;;  %1796 = vmatmul.bf16.gmra.mxu2 %v1695_v49  ;;  %v3933_v54 = vadd.f32 %v1365_v24, %v1180_v28 }
 0x19c   : > { %2030 = vmatmul.bf16.gmra.mxu3 %v1929_v7 }
 0x19d   : > { %2264 = vmatmul.bf16.gmra.mxu0 %v3671_v26 }
 0x19e   : > { %v900_v16 = vpop.f32.mrf.mxu2 }
 0x19f   : > { %v947_v13 = vadd.f32 %v900_v16, %v699_v61  ;;  %v1134_v40 = vpop.f32.mrf.mxu3 }
 0x1a0   : > { %v700_v27 = vpop.f32.mrf.mxu1 }
 0x1a1   : > { %v1181_v47 = vadd.f32 %v1134_v40, %v947_v13  ;;  %v701_v24 = vadd.f32 %v700_v27, %v3742_v22  ;;  %v1435_v40 = vld [vmem:[#allocation2 + $0x92] sm:$0xff] }
 0x1a2   : > { %v1370_v55 = vpop.f32.mrf.mxu0 }
 0x1a3   : > { %v3937_v19 = vadd.f32 %v1368_v10, %v1181_v47  ;;  %v1436_v47 = vld [vmem:[#allocation2 + $0x9a] sm:$0xff] }
 0x1a6   : > { %v902_v18 = vpop.f32.mrf.mxu2 }
 0x1a7   : > { %v948_v26 = vadd.f32 %v902_v18, %v701_v24  ;;  %v1136_v59 = vpop.f32.mrf.mxu3 }
 0x1a8   : > { %v703_v6 = vpop.f32.mrf.mxu1 }
 0x1a9   : > { %v1182_v51 = vadd.f32 %v1136_v59, %v948_v26  ;;  %v704_v22 = vadd.f32 %v703_v6, %v3655_v14  ;;  %v1462_v14 = vpack.c.bf16 %v1436_v47, %v1435_v40  ;;  %v1931_v26 = vpack.c.bf16 %v1905_v0, %v1904_v35 }
 0x1aa   : > { %v1373_v49 = vpop.f32.mrf.mxu0 }
 0x1ab   : > { %1566 = vmatmul.bf16.gmra.mxu1 %v1461_v5  ;;  %1801 = vmatmul.bf16.gmra.mxu2 %v1696_v46  ;;  %v3940_v53 = vadd.f32 %v1370_v55, %v1182_v51 }
 0x1ac   : > { %2035 = vmatmul.bf16.gmra.mxu3 %v1930_v50 }
 0x1ad   : > { %2269 = vmatmul.bf16.gmra.mxu0 %v3691_v42 }
 0x1ae   : > { %v905_v7 = vpop.f32.mrf.mxu2 }
 0x1af   : > { %v949_v28 = vadd.f32 %v905_v7, %v704_v22  ;;  %v1139_v10 = vpop.f32.mrf.mxu3 }
 0x1b0   : > { %v705_v61 = vpop.f32.mrf.mxu1 }
 0x1b1   : > { %v1183_v16 = vadd.f32 %v1139_v10, %v949_v28  ;;  %v706_v55 = vadd.f32 %v705_v61, %v3669_v25  ;;  %v1906_v61 = vld [vmem:[#allocation2 + $0xc1] sm:$0xff] }
 0x1b2   : > { %v1375_v13 = vpop.f32.mrf.mxu0 }
 0x1b3   : > { %v3944_v27 = vadd.f32 %v1373_v49, %v1183_v16  ;;  %v1907_v16 = vld [vmem:[#allocation2 + $0xc9] sm:$0xff] }
 0x1b4   : > { %v1932_v43 = vpack.c.bf16 %v1907_v16, %v1906_v61 }
 0x1b6   : > { %v907_v24 = vpop.f32.mrf.mxu2 }
 0x1b7   : > { %v950_v42 = vadd.f32 %v907_v24, %v706_v55  ;;  %v1141_v37 = vpop.f32.mrf.mxu3 }
 0x1b8   : > { %v708_v18 = vpop.f32.mrf.mxu1 }
 0x1b9   : > { %v1184_v59 = vadd.f32 %v1141_v37, %v950_v42  ;;  %v709_v25 = vadd.f32 %v708_v18, %v3681_v33  ;;  %v1439_v18 = vld [vmem:[#allocation2 + $0xc2] sm:$0xff] }
 0x1ba   : > { %v1378_v5 = vpop.f32.mrf.mxu0 }
 0x1bb   : > { %1571 = vmatmul.bf16.gmra.mxu1 %v1462_v14  ;;  %1806 = vmatmul.bf16.gmra.mxu2 %v1697_v1  ;;  %v3947_v46 = vadd.f32 %v1375_v13, %v1184_v59  ;;  %v1440_v59 = vld [vmem:[#allocation2 + $0xca] sm:$0xff] }
 0x1bc   : > { %2040 = vmatmul.bf16.gmra.mxu3 %v1931_v26 }
 0x1bd   : > { %2274 = vmatmul.bf16.gmra.mxu0 %v3723_v63 }
 0x1be   : > { %v910_v6 = vpop.f32.mrf.mxu2 }
 0x1bf   : > { %v951_v50 = vadd.f32 %v910_v6, %v709_v25  ;;  %v1144_v51 = vpop.f32.mrf.mxu3  ;;  %v1908_v25 = vld [vmem:[#allocation2 + $0xd9] sm:$0xff]  ;;  %v1909_v6 = vld [vmem:[#allocation2 + $0xe1] sm:$0xff] }
 0x1c0   : > { %v710_v49 = vpop.f32.mrf.mxu1 }
 0x1c1   : > { %v1185_v22 = vadd.f32 %v1144_v51, %v951_v50  ;;  %v711_v10 = vadd.f32 %v710_v49, %v3689_v41 }
 0x1c2   : > { %v1380_v7 = vpop.f32.mrf.mxu0 }
 0x1c3   : > { %v3951_v28 = vadd.f32 %v1378_v5, %v1185_v22  ;;  %v1675_v5 = vld [vmem:[#allocation2 + $0xe0] sm:$0xff] }
 0x1c6   : > { %v912_v40 = vpop.f32.mrf.mxu2 }
 0x1c7   : > { %v952_v13 = vadd.f32 %v912_v40, %v711_v10  ;;  %v1146_v47 = vpop.f32.mrf.mxu3 }
 0x1c8   : > { %v713_v12 = vpop.f32.mrf.mxu1 }
 0x1c9   : > { %v1186_v55 = vadd.f32 %v1146_v47, %v952_v13  ;;  %v714_v41 = vadd.f32 %v713_v12, %v3707_v52  ;;  %v1464_v52 = vpack.c.bf16 %v1440_v59, %v1439_v18 }
 0x1ca   : > { %v1383_v35 = vpop.f32.mrf.mxu0 }
 0x1cb   : > { %1576 = vmatmul.bf16.gmra.mxu1 %v3723_v63  ;;  %1811 = vmatmul.bf16.gmra.mxu2 %v3727_v3  ;;  %v3956_v33 = vadd.f32 %v1380_v7, %v1186_v55  ;;  %v1674_v63 = vld [vmem:[#allocation2 + $0xd8] sm:$0xff]  ;;  %v1933_v7 = vpack.c.bf16 %v1909_v6, %v1908_v25 }
 0x1cc   : > { %2045 = vmatmul.bf16.gmra.mxu3 %v1932_v43  ;;  %v1699_v49 = vpack.c.bf16 %v1675_v5, %v1674_v63 }
 0x1cd   : > { %2279 = vmatmul.bf16.gmra.mxu0 %v3746_v30 }
 0x1ce   : > { %v915_v0 = vpop.f32.mrf.mxu2 }
 0x1cf   : > { %v953_v24 = vadd.f32 %v915_v0, %v714_v41  ;;  %v1149_v42 = vpop.f32.mrf.mxu3  ;;  %v1910_v0 = vld [vmem:[#allocation2 + $0xf1] sm:$0xff] }
 0x1d0   : > { %v715_v37 = vpop.f32.mrf.mxu1 }
 0x1d1   : > { %v1187_v14 = vadd.f32 %v1149_v42, %v953_v24  ;;  %v716_v3 = vadd.f32 %v715_v37, %v3721_v62  ;;  %v1911_v24 = vld [vmem:[#allocation2 + $0xf9] sm:$0xff] }
 0x1d2   : > { %v1385_v1 = vpop.f32.mrf.mxu0  ;;  %v1934_v18 = vpack.c.bf16 %v1911_v24, %v1910_v0  ;;  %v4282_v0 = vld [vmem:[#allocation4_spill] sm:$0xff] }
 0x1d3   : > { %v3960_v26 = vadd.f32 %v1383_v35, %v1187_v14 }
 0x1d6   : > { %v917_v50 = vpop.f32.mrf.mxu2 }
 0x1d7   : > { %v954_v30 = vadd.f32 %v917_v50, %v716_v3  ;;  %v1151_v51 = vpop.f32.mrf.mxu3 }
 0x1d8   : > { %v718_v22 = vpop.f32.mrf.mxu1 }
 0x1d9   : > { %v1188_v10 = vadd.f32 %v1151_v51, %v954_v30  ;;  %v719_v62 = vadd.f32 %v718_v22, %v3736_v8  ;;  %v4281_v30 = vld [vmem:[#allocation3_spill] sm:$0xff] }
 0x1da   : > { %v1388_v61 = vpop.f32.mrf.mxu0 }
 0x1db   : > { %1581 = vmatmul.bf16.gmra.mxu1 %v1464_v52  ;;  %1816 = vmatmul.bf16.gmra.mxu2 %v1699_v49  ;;  %v3963_v16 = vadd.f32 %v1385_v1, %v1188_v10  ;;  %v1913_v52 = vld [vmem:[#allocation2 + $0x111] sm:$0xff] }
 0x1dc   : > { %2050 = vmatmul.bf16.gmra.mxu3 %v1933_v7 }
 0x1dd   : > { %2284 = vmatmul.bf16.gmra.mxu0 %v3767_v39 }
 0x1de   : > { %v920_v40 = vpop.f32.mrf.mxu2 }
 0x1df   : > { %v955_v13 = vadd.f32 %v920_v40, %v719_v62  ;;  %v1154_v47 = vpop.f32.mrf.mxu3 }
 0x1e0   : > { %v720_v12 = vpop.f32.mrf.mxu1 }
 0x1e1   : > { %v1189_v43 = vadd.f32 %v1154_v47, %v955_v13  ;;  %v721_v41 = vadd.f32 %v720_v12, %v3744_v23 }
 0x1e2   : > { %v1390_v55 = vpop.f32.mrf.mxu0 }
 0x1e3   : > { %v3967_v35 = vadd.f32 %v1388_v61, %v1189_v43 }
 0x1e6   : > { %v922_v42 = vpop.f32.mrf.mxu2 }
 0x1e7   : > { %v956_v37 = vadd.f32 %v922_v42, %v721_v41  ;;  %v1156_v14 = vpop.f32.mrf.mxu3 }
 0x1e8   : > { %v1547_v1 = vpop.f32.mrf.mxu1 }
 0x1e9   : > { %v1190_v59 = vadd.f32 %v1156_v14, %v956_v37  ;;  %v1627_v25 = vadd.f32 %v1547_v1, %v3765_v60 }
 0x1ea   : > { %v2250_v8 = vpop.f32.mrf.mxu0 }
 0x1eb   : > { %1586 = vmatmul.bf16.gmra.mxu1 %v3767_v39  ;;  %1821 = vmatmul.bf16.gmra.mxu2 %v3769_v45  ;;  %v3972_v63 = vadd.f32 %v1390_v55, %v1190_v59  ;;  %v1912_v39 = vld [vmem:[#allocation2 + $0x109] sm:$0xff] }
 0x1ec   : > { %2055 = vmatmul.bf16.gmra.mxu3 %v1934_v18  ;;  %v1935_v61 = vpack.c.bf16 %v1913_v52, %v1912_v39 }
 0x1ed   : > { %2289 = vmatmul.bf16.gmra.mxu0 %v3780_v9 }
 0x1ee   : > { %v1782_v23 = vpop.f32.mrf.mxu2 }
 0x1ef   : > { %v2016_v5 = vpop.f32.mrf.mxu3  ;;  %v1862_v50 = vadd.f32 %v1782_v23, %v1627_v25 }
 0x1f0   : > { %v1549_v3 = vpop.f32.mrf.mxu1 }
 0x1f1   : > { %v1628_v51 = vadd.f32 %v1549_v3, %v4281_v30  ;;  %v2096_v49 = vadd.f32 %v2016_v5, %v1862_v50  ;;  %v4284_v3 = vld [vmem:[#allocation9_spill] sm:$0xff] }
 0x1f2   : > { %v2252_v6 = vpop.f32.mrf.mxu0 }
 0x1f3   : > { %v3978_v13 = vadd.f32 %v2250_v8, %v2096_v49  ;;  %v4286_v49 = vld [vmem:[#allocation7_spill] sm:$0xff] }
 0x1f6   : > { %v1784_v45 = vpop.f32.mrf.mxu2 }
 0x1f7   : > { %v1863_v22 = vadd.f32 %v1784_v45, %v1628_v51  ;;  %v2018_v7 = vpop.f32.mrf.mxu3  ;;  %v4285_v51 = vld [vmem:[#allocation5_spill] sm:$0xff] }
 0x1f8   : > { %v1552_v10 = vpop.f32.mrf.mxu1 }
 0x1f9   : > { %v2097_v62 = vadd.f32 %v2018_v7, %v1863_v22 }
 0x1fa   : > { %v2255_v40 = vpop.f32.mrf.mxu0 }
 0x1fb   : > { %v3980_v60 = vadd.f32 %v2252_v6, %v2097_v62  ;;  %1591 = vmatmul.bf16.gmra.mxu1 %v3780_v9  ;;  %1826 = vmatmul.bf16.gmra.mxu2 %v3782_v38  ;;  %v1629_v9 = vadd.f32 %v1552_v10, %v3778_v21  ;;  %v4283_v21 = vld [vmem:[#allocation6_spill] sm:$0xff] }
 0x1fc   : > { %2060 = vmatmul.bf16.gmra.mxu3 %v1935_v61 }
 0x1fd   : > { %2294 = vmatmul.bf16.gmra.mxu0 %v3806_v44  ;;  %v3176_v47 = vpack.c.bf16 %v3980_v60, %v3978_v13 }
 0x1fe   : > { %v1787_v12 = vpop.f32.mrf.mxu2 }
 0x1ff   : > { %3177 = vst [vmem:[%s3987_s10] sm:$0xff] %v3176_v47   ;;  %v2021_v43 = vpop.f32.mrf.mxu3  ;;  %v1864_v38 = vadd.f32 %v1787_v12, %v1629_v9  ;;  %v4289_v9 = vld [vmem:[#allocation14_spill] sm:$0xff] }
 0x200   : > { %v1554_v55 = vpop.f32.mrf.mxu1 }
 0x201   : > { %v1630_v24 = vadd.f32 %v1554_v55, %v4282_v0  ;;  %v2098_v37 = vadd.f32 %v2021_v43, %v1864_v38  ;;  %v4287_v43 = vld [vmem:[#allocation10_spill] sm:$0xff]  ;;  %v4288_v55 = vld [vmem:[#allocation11_spill] sm:$0xff] }
 0x202   : > { %v2257_v41 = vpop.f32.mrf.mxu0 }
 0x203   : > { %v3995_v23 = vadd.f32 %v2255_v40, %v2098_v37 }
 0x206   : > { %v1789_v42 = vpop.f32.mrf.mxu2 }
 0x207   : > { %v1865_v14 = vadd.f32 %v1789_v42, %v1630_v24  ;;  %v2023_v1 = vpop.f32.mrf.mxu3  ;;  %v4290_v42 = vld [vmem:[#allocation8_spill] sm:$0xff] }
 0x208   : > { %v1557_v18 = vpop.f32.mrf.mxu1 }
 0x209   : > { %v2099_v59 = vadd.f32 %v2023_v1, %v1865_v14  ;;  %v1631_v39 = vadd.f32 %v1557_v18, %v4285_v51  ;;  %v4291_v18 = vld [vmem:[#allocation12_spill] sm:$0xff] }
 0x20a   : > { %v2260_v8 = vpop.f32.mrf.mxu0 }
 0x20b   : > { %v3997_v5 = vadd.f32 %v2257_v41, %v2099_v59  ;;  %1596 = vmatmul.bf16.gmra.mxu1 %v3806_v44  ;;  %1831 = vmatmul.bf16.gmra.mxu2 %v3808_v15 }
 0x20c   : > { %2065 = vmatmul.bf16.gmra.mxu3 %v4283_v21 }
 0x20d   : > { %2299 = vmatmul.bf16.gmra.mxu0 %v4284_v3  ;;  %v3181_v25 = vpack.c.bf16 %v3997_v5, %v3995_v23 }
 0x20e   : > { %v1792_v6 = vpop.f32.mrf.mxu2 }
 0x20f   : > { %3253 = vst [vmem:[%s3987_s10 + $0x8] sm:$0xff] %v3181_v25   ;;  %v2026_v50 = vpop.f32.mrf.mxu3  ;;  %v1866_v45 = vadd.f32 %v1792_v6, %v1631_v39 }
 0x210   : > { %v1559_v30 = vpop.f32.mrf.mxu1 }
 0x211   : > { %v1632_v22 = vadd.f32 %v1559_v30, %v4286_v49  ;;  %v2100_v15 = vadd.f32 %v2026_v50, %v1866_v45 }
 0x212   : > { %v2262_v52 = vpop.f32.mrf.mxu0 }
 0x213   : > { %v4008_v47 = vadd.f32 %v2260_v8, %v2100_v15  ;;  %v4293_v15 = vld [vmem:[#allocation13_spill] sm:$0xff] }
 0x216   : > { %v1794_v44 = vpop.f32.mrf.mxu2 }
 0x217   : > { %v1867_v7 = vadd.f32 %v1794_v44, %v1632_v22  ;;  %v2028_v10 = vpop.f32.mrf.mxu3 }
 0x218   : > { %v1562_v61 = vpop.f32.mrf.mxu1 }
 0x219   : > { %v2101_v62 = vadd.f32 %v2028_v10, %v1867_v7  ;;  %v1633_v37 = vadd.f32 %v1562_v61, %v4290_v42 }
 0x21a   : > { %v2265_v40 = vpop.f32.mrf.mxu0 }
 0x21b   : > { %v4010_v12 = vadd.f32 %v2262_v52, %v2101_v62  ;;  %1601 = vmatmul.bf16.gmra.mxu1 %v4284_v3  ;;  %1836 = vmatmul.bf16.gmra.mxu2 %v4287_v43  ;;  %v4292_v52 = vld [vmem:[#allocation15_spill] sm:$0xff]  ;;  %v4294_v62 = vld [vmem:[#allocation16_spill] sm:$0xff] }
 0x21c   : > { %2070 = vmatmul.bf16.gmra.mxu3 %v4288_v55 }
 0x21d   : > { %2304 = vmatmul.bf16.gmra.mxu0 %v4289_v9  ;;  %v3186_v41 = vpack.c.bf16 %v4010_v12, %v4008_v47 }
 0x21e   : > { %v1797_v38 = vpop.f32.mrf.mxu2 }
 0x21f   : > { %3254 = vst [vmem:[%s3987_s10 + $0x10] sm:$0xff] %v3186_v41   ;;  %v2031_v0 = vpop.f32.mrf.mxu3  ;;  %v1868_v1 = vadd.f32 %v1797_v38, %v1633_v37 }
 0x220   : > { %v1564_v24 = vpop.f32.mrf.mxu1 }
 0x221   : > { %v1634_v59 = vadd.f32 %v1564_v24, %v4291_v18  ;;  %v2102_v21 = vadd.f32 %v2031_v0, %v1868_v1 }
 0x222   : > { %v2267_v14 = vpop.f32.mrf.mxu0 }
 0x223   : > { %v4021_v51 = vadd.f32 %v2265_v40, %v2102_v21 }
 0x226   : > { %v1799_v8 = vpop.f32.mrf.mxu2 }
 0x227   : > { %v1869_v3 = vadd.f32 %v1799_v8, %v1634_v59  ;;  %v2033_v25 = vpop.f32.mrf.mxu3  ;;  %v4295_v59 = vld [vmem:[#allocation17_spill] sm:$0xff] }
 0x228   : > { %v1567_v6 = vpop.f32.mrf.mxu1 }
 0x229   : > { %v2103_v50 = vadd.f32 %v2033_v25, %v1869_v3  ;;  %v1635_v7 = vadd.f32 %v1567_v6, %v4293_v15  ;;  %v4296_v25 = vld [vmem:[#allocation18_spill] sm:$0xff] }
 0x22a   : > { %v2270_v30 = vpop.f32.mrf.mxu0 }
 0x22b   : > { %v4023_v39 = vadd.f32 %v2267_v14, %v2103_v50  ;;  %1606 = vmatmul.bf16.gmra.mxu1 %v4289_v9  ;;  %1841 = vmatmul.bf16.gmra.mxu2 %v3860_v48  ;;  %v2157_v50 = vld [vmem:[#allocation2 + $0x18a] sm:$0xff] }
 0x22c   : > { %2075 = vmatmul.bf16.gmra.mxu3 %v4292_v52 }
 0x22d   : > { %2309 = vmatmul.bf16.gmra.mxu0 %v3874_v29  ;;  %v3191_v45 = vpack.c.bf16 %v4023_v39, %v4021_v51 }
 0x22e   : > { %v1802_v49 = vpop.f32.mrf.mxu2 }
 0x22f   : > { %3255 = vst [vmem:[%s3987_s10 + $0x18] sm:$0xff] %v3191_v45   ;;  %v2036_v22 = vpop.f32.mrf.mxu3  ;;  %v1870_v61 = vadd.f32 %v1802_v49, %v1635_v7 }
 0x230   : > { %v1569_v44 = vpop.f32.mrf.mxu1 }
 0x231   : > { %v1636_v40 = vadd.f32 %v1569_v44, %v4294_v62  ;;  %v2104_v48 = vadd.f32 %v2036_v22, %v1870_v61 }
 0x232   : > { %v2272_v10 = vpop.f32.mrf.mxu0 }
 0x233   : > { %v4034_v24 = vadd.f32 %v2270_v30, %v2104_v48 }
 0x236   : > { %v1804_v43 = vpop.f32.mrf.mxu2 }
 0x237   : > { %v1871_v55 = vadd.f32 %v1804_v43, %v1636_v40  ;;  %v2038_v9 = vpop.f32.mrf.mxu3  ;;  %v4297_v43 = vld [vmem:[#allocation19_spill] sm:$0xff] }
 0x238   : > { %v1572_v41 = vpop.f32.mrf.mxu1 }
 0x239   : > { %v2105_v38 = vadd.f32 %v2038_v9, %v1871_v55  ;;  %v1637_v8 = vadd.f32 %v1572_v41, %v4295_v59  ;;  %v1924_v41 = vld [vmem:[#allocation2 + $0x199] sm:$0xff] }
 0x23a   : > { %v2275_v0 = vpop.f32.mrf.mxu0  ;;  %v3301_v59 = vld [vmem:[#allocation2] sm:$0xff] }
 0x23b   : > { %v4036_v42 = vadd.f32 %v2272_v10, %v2105_v38  ;;  %1611 = vmatmul.bf16.gmra.mxu1 %v3874_v29  ;;  %1846 = vmatmul.bf16.gmra.mxu2 %v3876_v56  ;;  %v2156_v29 = vld [vmem:[#allocation2 + $0x182] sm:$0xff]  ;;  %v4298_v38 = vld [vmem:[#allocation20_spill] sm:$0xff] }
 0x23c   : > { %2080 = vmatmul.bf16.gmra.mxu3 %v3878_v57  ;;  %v2174_v49 = vpack.c.bf16 %v2157_v50, %v2156_v29 }
 0x23d   : > { %2314 = vmatmul.bf16.gmra.mxu0 %v3890_v4  ;;  %v3196_v37 = vpack.c.bf16 %v4036_v42, %v4034_v24 }
 0x23e   : > { %v1807_v14 = vpop.f32.mrf.mxu2 }
 0x23f   : > { %3256 = vst [vmem:[%s3987_s10 + $0x20] sm:$0xff] %v3196_v37   ;;  %v2041_v1 = vpop.f32.mrf.mxu3  ;;  %v1872_v3 = vadd.f32 %v1807_v14, %v1637_v8  ;;  %v2158_v37 = vld [vmem:[#allocation2 + $0x19a] sm:$0xff]  ;;  %v1707_v8 = vpack.c.bf16 %v3301_v59, %v3301_v59 }
 0x240   : > { %v1574_v18 = vpop.f32.mrf.mxu1 }
 0x241   : > { %v1638_v6 = vadd.f32 %v1574_v18, %v4296_v25  ;;  %v2106_v57 = vadd.f32 %v2041_v1, %v1872_v3 }
 0x242   : > { %v2277_v21 = vpop.f32.mrf.mxu0 }
 0x243   : > { %v4047_v15 = vadd.f32 %v2275_v0, %v2106_v57 }
 0x246   : > { %v1809_v56 = vpop.f32.mrf.mxu2 }
 0x247   : > { %v1873_v30 = vadd.f32 %v1809_v56, %v1638_v6  ;;  %v2043_v52 = vpop.f32.mrf.mxu3 }
 0x248   : > { %v1577_v45 = vpop.f32.mrf.mxu1 }
 0x249   : > { %v2107_v22 = vadd.f32 %v2043_v52, %v1873_v30  ;;  %v1639_v48 = vadd.f32 %v1577_v45, %v4297_v43 }
 0x24a   : > { %v2280_v44 = vpop.f32.mrf.mxu0 }
 0x24b   : > { %v4049_v7 = vadd.f32 %v2277_v21, %v2107_v22  ;;  %1616 = vmatmul.bf16.gmra.mxu1 %v3890_v4  ;;  %1851 = vmatmul.bf16.gmra.mxu2 %v3892_v17  ;;  %v1925_v4 = vld [vmem:[#allocation2 + $0x1a1] sm:$0xff] }
 0x24c   : > { %2085 = vmatmul.bf16.gmra.mxu3 %v3896_v58  ;;  %v2159_v17 = vld [vmem:[#allocation2 + $0x1a2] sm:$0xff]  ;;  %v1941_v3 = vpack.c.bf16 %v1925_v4, %v1924_v41 }
 0x24d   : > { %2319 = vmatmul.bf16.gmra.mxu0 %v2174_v49  ;;  %v3201_v10 = vpack.c.bf16 %v4049_v7, %v4047_v15  ;;  %v2175_v25 = vpack.c.bf16 %v2159_v17, %v2158_v37 }
 0x24e   : > { %v1812_v61 = vpop.f32.mrf.mxu2 }
 0x24f   : > { %3257 = vst [vmem:[%s3987_s10 + $0x28] sm:$0xff] %v3201_v10   ;;  %v2046_v62 = vpop.f32.mrf.mxu3  ;;  %v1874_v9 = vadd.f32 %v1812_v61, %v1639_v48 }
 0x250   : > { %v1579_v40 = vpop.f32.mrf.mxu1 }
 0x251   : > { %v1640_v0 = vadd.f32 %v1579_v40, %v4298_v38  ;;  %v2108_v58 = vadd.f32 %v2046_v62, %v1874_v9 }
 0x252   : > { %v2282_v55 = vpop.f32.mrf.mxu0 }
 0x253   : > { %v4059_v50 = vadd.f32 %v2280_v44, %v2108_v58 }
 0x256   : > { %v1814_v14 = vpop.f32.mrf.mxu2 }
 0x257   : > { %v1875_v1 = vadd.f32 %v1814_v14, %v1640_v0  ;;  %v2048_v18 = vpop.f32.mrf.mxu3 }
 0x258   : > { %v1582_v21 = vpop.f32.mrf.mxu1 }
 0x259   : > { %v2109_v6 = vadd.f32 %v2048_v18, %v1875_v1  ;;  %v1641_v22 = vadd.f32 %v1582_v21, %v3905_v34 }
 0x25a   : > { %v2285_v29 = vpop.f32.mrf.mxu0 }
 0x25b   : > { %v4061_v56 = vadd.f32 %v2282_v55, %v2109_v6  ;;  %1621 = vmatmul.bf16.gmra.mxu1 %v2174_v49  ;;  %1856 = vmatmul.bf16.gmra.mxu2 %v1707_v8 }
 0x25c   : > { %2090 = vmatmul.bf16.gmra.mxu3 %v1941_v3 }
 0x25d   : > { %2324 = vmatmul.bf16.gmra.mxu0 %v2175_v25  ;;  %v3206_v57 = vpack.c.bf16 %v4061_v56, %v4059_v50 }
 0x25e   : > { %v1817_v30 = vpop.f32.mrf.mxu2 }
 0x25f   : > { %3258 = vst [vmem:[%s3987_s10 + $0x30] sm:$0xff] %v3206_v57   ;;  %v2051_v52 = vpop.f32.mrf.mxu3  ;;  %v1876_v61 = vadd.f32 %v1817_v30, %v1641_v22 }
 0x260   : > { %v1584_v45 = vpop.f32.mrf.mxu1 }
 0x261   : > { %v1642_v44 = vadd.f32 %v1584_v45, %v3910_v2  ;;  %v2110_v40 = vadd.f32 %v2051_v52, %v1876_v61 }
 0x262   : > { %v2287_v10 = vpop.f32.mrf.mxu0 }
 0x263   : > { %v4068_v41 = vadd.f32 %v2285_v29, %v2110_v40 }
 0x266   : > { %v1819_v62 = vpop.f32.mrf.mxu2 }
 0x267   : > { %v1877_v49 = vadd.f32 %v1819_v62, %v1642_v44  ;;  %v2053_v43 = vpop.f32.mrf.mxu3 }
 0x268   : > { %v1587_v48 = vpop.f32.mrf.mxu1 }
 0x269   : > { %v2111_v55 = vadd.f32 %v2053_v43, %v1877_v49  ;;  %v1643_v2 = vadd.f32 %v1587_v48, %v3914_v20 }
 0x26a   : > { %v2290_v9 = vpop.f32.mrf.mxu0 }
 0x26b   : > { %v4070_v38 = vadd.f32 %v2287_v10, %v2111_v55 }
 0x26d   : > { %v3211_v0 = vpack.c.bf16 %v4070_v38, %v4068_v41 }
 0x26e   : > { %v1822_v4 = vpop.f32.mrf.mxu2 }
 0x26f   : > { %3259 = vst [vmem:[%s3987_s10 + $0x38] sm:$0xff] %v3211_v0   ;;  %v2056_v34 = vpop.f32.mrf.mxu3  ;;  %v1878_v14 = vadd.f32 %v1822_v4, %v1643_v2 }
 0x270   : > { %v1589_v37 = vpop.f32.mrf.mxu1 }
 0x271   : > { %v1644_v58 = vadd.f32 %v1589_v37, %v3917_v31  ;;  %v2112_v18 = vadd.f32 %v2056_v34, %v1878_v14 }
 0x272   : > { %v2292_v17 = vpop.f32.mrf.mxu0 }
 0x273   : > { %v4077_v6 = vadd.f32 %v2290_v9, %v2112_v18 }
 0x276   : > { %v1824_v1 = vpop.f32.mrf.mxu2 }
 0x277   : > { %v1879_v59 = vadd.f32 %v1824_v1, %v1644_v58  ;;  %v2058_v8 = vpop.f32.mrf.mxu3 }
 0x278   : > { %v1592_v21 = vpop.f32.mrf.mxu1 }
 0x279   : > { %v2113_v3 = vadd.f32 %v2058_v8, %v1879_v59  ;;  %v1645_v31 = vadd.f32 %v1592_v21, %v3921_v11  ;;  %v2362_v8 = vadd.f32 %v3980_v60, %v3978_v13 }
 0x27a   : > { %v2295_v25 = vpop.f32.mrf.mxu0 }
 0x27b   : > { %v4079_v29 = vadd.f32 %v2292_v17, %v2113_v3 }
 0x27d   : > { %v3216_v57 = vpack.c.bf16 %v4079_v29, %v4077_v6 }
 0x27e   : > { %v1827_v30 = vpop.f32.mrf.mxu2 }
 0x27f   : > { %3260 = vst [vmem:[%s3987_s10 + $0x40] sm:$0xff] %v3216_v57   ;;  %v2061_v20 = vpop.f32.mrf.mxu3  ;;  %v1880_v22 = vadd.f32 %v1827_v30, %v1645_v31 }
 0x280   : > { %v1594_v52 = vpop.f32.mrf.mxu1 }
 0x281   : > { %v1646_v10 = vadd.f32 %v1594_v52, %v3926_v32  ;;  %v2114_v44 = vadd.f32 %v2061_v20, %v1880_v22 }
 0x282   : > { %v2297_v45 = vpop.f32.mrf.mxu0 }
 0x283   : > { %v4086_v55 = vadd.f32 %v2295_v25, %v2114_v44  ;;  %v2363_v25 = vadd.f32 %v2362_v8, %v3995_v23 }
 0x285   : > { %v2364_v30 = vadd.f32 %v2363_v25, %v3997_v5 }
 0x286   : > { %v1829_v61 = vpop.f32.mrf.mxu2 }
 0x287   : > { %v1881_v62 = vadd.f32 %v1829_v61, %v1646_v10  ;;  %v2063_v40 = vpop.f32.mrf.mxu3  ;;  %v2365_v52 = vadd.f32 %v2364_v30, %v4008_v47 }
 0x288   : > { %v1597_v49 = vpop.f32.mrf.mxu1 }
 0x289   : > { %v2115_v43 = vadd.f32 %v2063_v40, %v1881_v62  ;;  %v1647_v32 = vadd.f32 %v1597_v49, %v3930_v36  ;;  %v2366_v22 = vadd.f32 %v2365_v52, %v4010_v12 }
 0x28a   : > { %v2300_v48 = vpop.f32.mrf.mxu0 }
 0x28b   : > { %v4088_v9 = vadd.f32 %v2297_v45, %v2115_v43  ;;  %v2367_v44 = vadd.f32 %v2366_v22, %v4021_v51 }
 0x28d   : > { %v3221_v0 = vpack.c.bf16 %v4088_v9, %v4086_v55  ;;  %v2368_v40 = vadd.f32 %v2367_v44, %v4023_v39 }
 0x28e   : > { %v1832_v4 = vpop.f32.mrf.mxu2 }
 0x28f   : > { %3261 = vst [vmem:[%s3987_s10 + $0x48] sm:$0xff] %v3221_v0   ;;  %v2066_v11 = vpop.f32.mrf.mxu3  ;;  %v1882_v2 = vadd.f32 %v1832_v4, %v1647_v32 }
 0x290   : > { %v1599_v34 = vpop.f32.mrf.mxu1 }
 0x291   : > { %v1648_v17 = vadd.f32 %v1599_v34, %v3933_v54  ;;  %v2116_v58 = vadd.f32 %v2066_v11, %v1882_v2 }
 0x292   : > { %v2302_v37 = vpop.f32.mrf.mxu0 }
 0x293   : > { %v4098_v57 = vadd.f32 %v2300_v48, %v2116_v58  ;;  %v2369_v48 = vadd.f32 %v2368_v40, %v4034_v24 }
 0x295   : > { %v2370_v32 = vadd.f32 %v2369_v48, %v4036_v42 }
 0x296   : > { %v1834_v14 = vpop.f32.mrf.mxu2 }
 0x297   : > { %v1883_v1 = vadd.f32 %v1834_v14, %v1648_v17  ;;  %v2068_v18 = vpop.f32.mrf.mxu3  ;;  %v2371_v2 = vadd.f32 %v2370_v32, %v4047_v15 }
 0x298   : > { %v1602_v59 = vpop.f32.mrf.mxu1 }
 0x299   : > { %v2117_v21 = vadd.f32 %v2068_v18, %v1883_v1  ;;  %v1649_v10 = vadd.f32 %v1602_v59, %v3937_v19 }
 0x29a   : > { %v2305_v3 = vpop.f32.mrf.mxu0 }
 0x29b   : > { %v4100_v36 = vadd.f32 %v2302_v37, %v2117_v21 }
 0x29d   : > { %v3226_v54 = vpack.c.bf16 %v4100_v36, %v4098_v57 }
 0x29e   : > { %v1837_v20 = vpop.f32.mrf.mxu2 }
 0x29f   : > { %3262 = vst [vmem:[%s3987_s10 + $0x50] sm:$0xff] %v3226_v54   ;;  %v2071_v31 = vpop.f32.mrf.mxu3  ;;  %v1884_v62 = vadd.f32 %v1837_v20, %v1649_v10 }
 0x2a0   : > { %v1604_v45 = vpop.f32.mrf.mxu1 }
 0x2a1   : > { %v1650_v49 = vadd.f32 %v1604_v45, %v3940_v53  ;;  %v2118_v0 = vadd.f32 %v2071_v31, %v1884_v62  ;;  %v2372_v53 = vadd.f32 %v2371_v2, %v4049_v7 }
 0x2a2   : > { %v2307_v61 = vpop.f32.mrf.mxu0 }
 0x2a3   : > { %v4115_v17 = vadd.f32 %v2305_v3, %v2118_v0  ;;  %v2373_v18 = vadd.f32 %v2372_v53, %v4059_v50 }
 0x2a5   : > { %v2374_v21 = vadd.f32 %v2373_v18, %v4061_v56 }
 0x2a6   : > { %v1839_v43 = vpop.f32.mrf.mxu2 }
 0x2a7   : > { %v1885_v4 = vadd.f32 %v1839_v43, %v1650_v49  ;;  %v2073_v11 = vpop.f32.mrf.mxu3  ;;  %v2375_v3 = vadd.f32 %v2374_v21, %v4068_v41 }
 0x2a8   : > { %v1607_v34 = vpop.f32.mrf.mxu1 }
 0x2a9   : > { %v2119_v37 = vadd.f32 %v2073_v11, %v1885_v4  ;;  %v1651_v25 = vadd.f32 %v1607_v34, %v3944_v27  ;;  %v2376_v20 = vadd.f32 %v2375_v3, %v4070_v38 }
 0x2aa   : > { %v2310_v19 = vpop.f32.mrf.mxu0 }
 0x2ab   : > { %v4117_v14 = vadd.f32 %v2307_v61, %v2119_v37  ;;  %v2377_v45 = vadd.f32 %v2376_v20, %v4077_v6 }
 0x2ad   : > { %v3231_v58 = vpack.c.bf16 %v4117_v14, %v4115_v17  ;;  %v2378_v62 = vadd.f32 %v2377_v45, %v4079_v29 }
 0x2ae   : > { %v1842_v1 = vpop.f32.mrf.mxu2 }
 0x2af   : > { %3263 = vst [vmem:[%s3987_s10 + $0x58] sm:$0xff] %v3231_v58   ;;  %v2076_v59 = vpop.f32.mrf.mxu3  ;;  %v1886_v54 = vadd.f32 %v1842_v1, %v1651_v25  ;;  %v2379_v49 = vadd.f32 %v2378_v62, %v4086_v55 }
 0x2b0   : > { %v1609_v8 = vpop.f32.mrf.mxu1 }
 0x2b1   : > { %v1652_v52 = vadd.f32 %v1609_v8, %v3947_v46  ;;  %v2120_v22 = vadd.f32 %v2076_v59, %v1886_v54  ;;  %v2380_v46 = vadd.f32 %v2379_v49, %v4088_v9 }
 0x2b2   : > { %v2312_v30 = vpop.f32.mrf.mxu0 }
 0x2b3   : > { %v4132_v43 = vadd.f32 %v2310_v19, %v2120_v22  ;;  %v2381_v34 = vadd.f32 %v2380_v46, %v4098_v57 }
 0x2b5   : > { %v2382_v53 = vadd.f32 %v2381_v34, %v4100_v36 }
 0x2b6   : > { %v1844_v31 = vpop.f32.mrf.mxu2 }
 0x2b7   : > { %v1887_v10 = vadd.f32 %v1844_v31, %v1652_v52  ;;  %v2078_v61 = vpop.f32.mrf.mxu3  ;;  %v2383_v58 = vadd.f32 %v2382_v53, %v4115_v17 }
 0x2b8   : > { %v1612_v44 = vpop.f32.mrf.mxu1 }
 0x2b9   : > { %v2121_v40 = vadd.f32 %v2078_v61, %v1887_v10  ;;  %v1653_v4 = vadd.f32 %v1612_v44, %v3951_v28  ;;  %v2384_v18 = vadd.f32 %v2383_v58, %v4117_v14 }
 0x2ba   : > { %v2315_v27 = vpop.f32.mrf.mxu0 }
 0x2bb   : > { %v4134_v48 = vadd.f32 %v2312_v30, %v2121_v40  ;;  %v2385_v28 = vadd.f32 %v2384_v18, %v4132_v43 }
 0x2bd   : > { %v3236_v0 = vpack.c.bf16 %v4134_v48, %v4132_v43  ;;  %v2386_v54 = vadd.f32 %v2385_v28, %v4134_v48 }
 0x2be   : > { %v1847_v11 = vpop.f32.mrf.mxu2 }
 0x2bf   : > { %3264 = vst [vmem:[%s3987_s10 + $0x60] sm:$0xff] %v3236_v0   ;;  %v1888_v32 = vadd.f32 %v1847_v11, %v1653_v4  ;;  %v2081_v37 = vpop.f32.mrf.mxu3 }
 0x2c0   : > { %v1614_v2 = vpop.f32.mrf.mxu1 }
 0x2c1   : > { %v2122_v1 = vadd.f32 %v2081_v37, %v1888_v32  ;;  %v1654_v59 = vadd.f32 %v1614_v2, %v3956_v33 }
 0x2c2   : > { %v2317_v19 = vpop.f32.mrf.mxu0 }
 0x2c3   : > { %v2356_v21 = vadd.f32 %v2315_v27, %v2122_v1 }
 0x2c5   : > { %v2387_v52 = vadd.f32 %v2386_v54, %v2356_v21 }
 0x2c6   : > { %v1849_v8 = vpop.f32.mrf.mxu2 }
 0x2c7   : > { %v1889_v25 = vadd.f32 %v1849_v8, %v1654_v59  ;;  %v2083_v30 = vpop.f32.mrf.mxu3 }
 0x2c8   : > { %v1617_v3 = vpop.f32.mrf.mxu1 }
 0x2c9   : > { %v2123_v20 = vadd.f32 %v2083_v30, %v1889_v25  ;;  %v1655_v61 = vadd.f32 %v1617_v3, %v3960_v26 }
 0x2ca   : > { %v2320_v45 = vpop.f32.mrf.mxu0 }
 0x2cb   : > { %v2357_v31 = vadd.f32 %v2317_v19, %v2123_v20 }
 0x2cd   : > { %v2388_v22 = vadd.f32 %v2387_v52, %v2357_v31  ;;  %v3241_v10 = vpack.c.bf16 %v2357_v31, %v2356_v21 }
 0x2ce   : > { %v1852_v44 = vpop.f32.mrf.mxu2 }
 0x2cf   : > { %3265 = vst [vmem:[%s3987_s10 + $0x68] sm:$0xff] %v3241_v10   ;;  %v1890_v33 = vadd.f32 %v1852_v44, %v1655_v61  ;;  %v2086_v62 = vpop.f32.mrf.mxu3 }
 0x2d0   : > { %v1619_v40 = vpop.f32.mrf.mxu1 }
 0x2d1   : > { %v2124_v27 = vadd.f32 %v2086_v62, %v1890_v33  ;;  %v1656_v0 = vadd.f32 %v1619_v40, %v3963_v16 }
 0x2d2   : > { %v2322_v4 = vpop.f32.mrf.mxu0 }
 0x2d3   : > { %v2358_v49 = vadd.f32 %v2320_v45, %v2124_v27 }
 0x2d5   : > { %v2389_v46 = vadd.f32 %v2388_v22, %v2358_v49 }
 0x2d6   : > { %v1854_v11 = vpop.f32.mrf.mxu2 }
 0x2d7   : > { %v1891_v34 = vadd.f32 %v1854_v11, %v1656_v0  ;;  %v2088_v32 = vpop.f32.mrf.mxu3 }
 0x2d8   : > { %v1622_v37 = vpop.f32.mrf.mxu1 }
 0x2d9   : > { %v2125_v2 = vadd.f32 %v2088_v32, %v1891_v34  ;;  %v1657_v58 = vadd.f32 %v1622_v37, %v3967_v35 }
 0x2da   : > { %v2325_v8 = vpop.f32.mrf.mxu0 }
 0x2db   : > { %v2359_v53 = vadd.f32 %v2322_v4, %v2125_v2 }
 0x2dd   : > { %v2390_v19 = vadd.f32 %v2389_v46, %v2359_v53  ;;  %v3246_v26 = vpack.c.bf16 %v2359_v53, %v2358_v49 }
 0x2de   : > { %v1857_v1 = vpop.f32.mrf.mxu2 }
 0x2df   : > { %3266 = vst [vmem:[%s3987_s10 + $0x70] sm:$0xff] %v3246_v26   ;;  %v1892_v18 = vadd.f32 %v1857_v1, %v1657_v58  ;;  %v2091_v59 = vpop.f32.mrf.mxu3 }
 0x2e0   : > { %v1624_v25 = vpop.f32.mrf.mxu1 }
 0x2e1   : > { %v2126_v28 = vadd.f32 %v2091_v59, %v1892_v18  ;;  %v1658_v3 = vadd.f32 %v1624_v25, %v3972_v63 }
 0x2e2   : > { %v2327_v22 = vpop.f32.mrf.mxu0 }
 0x2e3   : > { %v2360_v16 = vadd.f32 %v2325_v8, %v2126_v28 }
 0x2e5   : > { %v2391_v30 = vadd.f32 %v2390_v19, %v2360_v16 }
 0x2e6   : > { %v1859_v54 = vpop.f32.mrf.mxu2 }
 0x2e7   : > { %v1893_v20 = vadd.f32 %v1859_v54, %v1658_v3  ;;  %v2093_v52 = vpop.f32.mrf.mxu3 }
 0x2e9   : > { %v2127_v45 = vadd.f32 %v2093_v52, %v1893_v20 }
 0x2eb   : > { %v2361_v10 = vadd.f32 %v2327_v22, %v2127_v45 }
 0x2ed   : > { %v2392_v35 = vadd.f32 %v2391_v30, %v2361_v10  ;;  %v3251_v61 = vpack.c.bf16 %v2361_v10, %v2360_v16 }
 0x2ef   : > { %v2393_v44 = vrot.slane %v2392_v35, 4  ;;  %3267 = vst [vmem:[%s3987_s10 + $0x78] sm:$0xff] %v3251_v61  }
 0x2f1   : > { %v2394_v33 = vadd.f32 %v2393_v44, %v2392_v35 }
 0x2f3   : > { %v2395_v62 = vrot.slane %v2394_v33, 2 }
 0x2f5   : > { %v2396_v40 = vadd.f32 %v2395_v62, %v2394_v33 }
 0x2f7   : > { %v2397_v27 = vrot.slane %v2396_v40, 1 }
 0x2f9   : > { %v2398_v46 = vadd.f32 %v2397_v27, %v2396_v40 }
 0x2fb   : > { %2501 = vst [vmem:[%s212_s13] sm:$0x1] %v2398_v46  ;;  %v4159_v63 = vmul.f32 0.00390625, %v2398_v46 }
 0x2fd   : > { %v4162_v0 = vsub.f32 %v2356_v21, %v4159_v63  ;;  %v4165_v4 = vsub.f32 %v2357_v31, %v4159_v63  ;;  %v4168_v11 = vsub.f32 %v2358_v49, %v4159_v63  ;;  %v4171_v34 = vsub.f32 %v2359_v53, %v4159_v63 }
 0x2fe   : > { %v4174_v32 = vsub.f32 %v2360_v16, %v4159_v63  ;;  %v4177_v37 = vsub.f32 %v2361_v10, %v4159_v63  ;;  %v2400_v2 = vsub.f32 %v3978_v13, %v4159_v63  ;;  %v2401_v21 = vsub.f32 %v3980_v60, %v4159_v63 }
 0x2ff   : > { %v2402_v31 = vsub.f32 %v3995_v23, %v4159_v63  ;;  %v2403_v53 = vsub.f32 %v3997_v5, %v4159_v63  ;;  %v2404_v26 = vsub.f32 %v4008_v47, %v4159_v63  ;;  %v2405_v18 = vsub.f32 %v4010_v12, %v4159_v63 }
 0x300   : > { %v2432_v49 = vmul.f32 %v2400_v2, %v2400_v2  ;;  %v2433_v19 = vmul.f32 %v2401_v21, %v2401_v21  ;;  %v2406_v60 = vsub.f32 %v4021_v51, %v4159_v63  ;;  %v2407_v28 = vsub.f32 %v4023_v39, %v4159_v63 }
 0x301   : > { %v2434_v58 = vmul.f32 %v2402_v31, %v2402_v31  ;;  %v2435_v13 = vmul.f32 %v2403_v53, %v2403_v53  ;;  %v2436_v8 = vmul.f32 %v2404_v26, %v2404_v26  ;;  %v2437_v25 = vmul.f32 %v2405_v18, %v2405_v18 }
 0x302   : > { %v2464_v1 = vadd.f32 %v2433_v19, %v2432_v49  ;;  %v2408_v47 = vsub.f32 %v4034_v24, %v4159_v63  ;;  %v2438_v16 = vmul.f32 %v2406_v60, %v2406_v60  ;;  %v2409_v12 = vsub.f32 %v4036_v42, %v4159_v63 }
 0x303   : > { %v2439_v3 = vmul.f32 %v2407_v28, %v2407_v28  ;;  %v2410_v51 = vsub.f32 %v4047_v15, %v4159_v63  ;;  %v2411_v39 = vsub.f32 %v4049_v7, %v4159_v63  ;;  %v2412_v24 = vsub.f32 %v4059_v50, %v4159_v63 }
 0x304   : > { %v2465_v59 = vadd.f32 %v2464_v1, %v2434_v58  ;;  %v2440_v20 = vmul.f32 %v2408_v47, %v2408_v47  ;;  %v2441_v45 = vmul.f32 %v2409_v12, %v2409_v12  ;;  %v2413_v42 = vsub.f32 %v4061_v56, %v4159_v63 }
 0x305   : > { %v2442_v10 = vmul.f32 %v2410_v51, %v2410_v51  ;;  %v2443_v61 = vmul.f32 %v2411_v39, %v2411_v39  ;;  %v2414_v15 = vsub.f32 %v4068_v41, %v4159_v63  ;;  %v2444_v33 = vmul.f32 %v2412_v24, %v2412_v24 }
 0x306   : > { %v2466_v23 = vadd.f32 %v2465_v59, %v2435_v13  ;;  %v2415_v7 = vsub.f32 %v4070_v38, %v4159_v63  ;;  %v2445_v40 = vmul.f32 %v2413_v42, %v2413_v42  ;;  %v2416_v50 = vsub.f32 %v4077_v6, %v4159_v63 }
 0x307   : > { %v2446_v46 = vmul.f32 %v2414_v15, %v2414_v15  ;;  %v2417_v56 = vsub.f32 %v4079_v29, %v4159_v63  ;;  %v2418_v41 = vsub.f32 %v4086_v55, %v4159_v63  ;;  %v2419_v38 = vsub.f32 %v4088_v9, %v4159_v63 }
 0x308   : > { %v2467_v5 = vadd.f32 %v2466_v23, %v2436_v8  ;;  %v2447_v21 = vmul.f32 %v2415_v7, %v2415_v7  ;;  %v2448_v49 = vmul.f32 %v2416_v50, %v2416_v50  ;;  %v2420_v6 = vsub.f32 %v4098_v57, %v4159_v63 }
 0x309   : > { %v2449_v53 = vmul.f32 %v2417_v56, %v2417_v56  ;;  %v2450_v58 = vmul.f32 %v2418_v41, %v2418_v41  ;;  %v2421_v29 = vsub.f32 %v4100_v36, %v4159_v63  ;;  %v2451_v18 = vmul.f32 %v2419_v38, %v2419_v38 }
 0x30a   : > { %v2468_v30 = vadd.f32 %v2467_v5, %v2437_v25  ;;  %v2422_v55 = vsub.f32 %v4115_v17, %v4159_v63  ;;  %v2452_v59 = vmul.f32 %v2420_v6, %v2420_v6  ;;  %v2423_v9 = vsub.f32 %v4117_v14, %v4159_v63 }
 0x30b   : > { %v2453_v8 = vmul.f32 %v2421_v29, %v2421_v29  ;;  %v2424_v57 = vsub.f32 %v4132_v43, %v4159_v63  ;;  %v2425_v36 = vsub.f32 %v4134_v48, %v4159_v63  ;;  %v2460_v51 = vmul.f32 %v4168_v11, %v4168_v11 }
 0x30c   : > { %v2469_v54 = vadd.f32 %v2468_v30, %v2438_v16  ;;  %v2454_v28 = vmul.f32 %v2422_v55, %v2422_v55  ;;  %v2455_v5 = vmul.f32 %v2423_v9, %v2423_v9  ;;  %v2461_v48 = vmul.f32 %v4171_v34, %v4171_v34 }
 0x30d   : > { %v2456_v16 = vmul.f32 %v2424_v57, %v2424_v57  ;;  %v2457_v17 = vmul.f32 %v2425_v36, %v2425_v36 }
 0x30e   : > { %v2470_v52 = vadd.f32 %v2469_v54, %v2439_v3  ;;  %v2458_v3 = vmul.f32 %v4162_v0, %v4162_v0  ;;  %v2459_v54 = vmul.f32 %v4165_v4, %v4165_v4  ;;  %v2463_v0 = vmul.f32 %v4177_v37, %v4177_v37 }
 0x310   : > { %v2471_v22 = vadd.f32 %v2470_v52, %v2440_v20  ;;  %v2462_v52 = vmul.f32 %v4174_v32, %v4174_v32 }
 0x312   : > { %v2472_v35 = vadd.f32 %v2471_v22, %v2441_v45 }
 0x314   : > { %v2473_v44 = vadd.f32 %v2472_v35, %v2442_v10 }
 0x316   : > { %v2474_v62 = vadd.f32 %v2473_v44, %v2443_v61 }
 0x318   : > { %v2475_v27 = vadd.f32 %v2474_v62, %v2444_v33 }
 0x31a   : > { %v2476_v2 = vadd.f32 %v2475_v27, %v2445_v40 }
 0x31c   : > { %v2477_v31 = vadd.f32 %v2476_v2, %v2446_v46 }
 0x31e   : > { %v2478_v19 = vadd.f32 %v2477_v31, %v2447_v21 }
 0x320   : > { %v2479_v26 = vadd.f32 %v2478_v19, %v2448_v49 }
 0x322   : > { %v2480_v1 = vadd.f32 %v2479_v26, %v2449_v53 }
 0x324   : > { %v2481_v13 = vadd.f32 %v2480_v1, %v2450_v58 }
 0x326   : > { %v2482_v60 = vadd.f32 %v2481_v13, %v2451_v18 }
 0x328   : > { %v2483_v23 = vadd.f32 %v2482_v60, %v2452_v59 }
 0x32a   : > { %v2484_v25 = vadd.f32 %v2483_v23, %v2453_v8 }
 0x32c   : > { %v2485_v47 = vadd.f32 %v2484_v25, %v2454_v28 }
 0x32e   : > { %v2486_v30 = vadd.f32 %v2485_v47, %v2455_v5 }
 0x330   : > { %v2487_v12 = vadd.f32 %v2486_v30, %v2456_v16 }
 0x332   : > { %v2488_v14 = vadd.f32 %v2487_v12, %v2457_v17 }
 0x334   : > { %v2489_v43 = vadd.f32 %v2488_v14, %v2458_v3 }
 0x336   : > { %v2490_v20 = vadd.f32 %v2489_v43, %v2459_v54 }
 0x338   : > { %v2491_v63 = vadd.f32 %v2490_v20, %v2460_v51 }
 0x33a   : > { %v2492_v39 = vadd.f32 %v2491_v63, %v2461_v48 }
 0x33c   : > { %v2493_v45 = vadd.f32 %v2492_v39, %v2462_v52 }
 0x33e   : > { %v2494_v22 = vadd.f32 %v2493_v45, %v2463_v0 }
 0x340   : > { %v2495_v4 = vrot.slane %v2494_v22, 4 }
 0x342   : > { %v2496_v24 = vadd.f32 %v2495_v4, %v2494_v22 }
 0x344   : > { %v2497_v10 = vrot.slane %v2496_v24, 2 }
 0x346   : > { %v2498_v35 = vadd.f32 %v2497_v10, %v2496_v24 }
 0x348   : > { %v2499_v42 = vrot.slane %v2498_v35, 1 }
 0x34a   : > { %v2500_v11 = vadd.f32 %v2499_v42, %v2498_v35 }
 0x34c   : > { %2502 = vst [vmem:[%s215_s18] sm:$0x1] %v2500_v11 }
 0x34d PF: > { %s15_s15 = sadd.s32 1, %s3308_s15  }
 0x34e   : > { %p12_p5 = scmp.ge.s32.totalorder %s15_s15, 4  }
 0x350   :  { %14 = sbr.rel (!%p12_p5) target bundleno = 1 (0x1), region = 93 }

</bundles_post_ra>
